<compile_context>
chip_gen: v7x
topology: tpu7x:2x2x1
jax: 0.10.0
libtpu: 0.0.40
codegen_flags: <defaults>
</compile_context>

<pallas_src>
import functools

import jax
import jax.numpy as jnp
from jax.experimental import pallas as pl
from jax.experimental.pallas import tpu as pltpu

# ----------------------------- small, ViT-consistent config -----------------------------
BATCH = 2
IN_CHANS = 3
IMG = 32
PATCH = 8
EMBED_DIM = 32
DEPTH = 2
NUM_HEADS = 4
MLP_RATIO = 4.0
EMBED_RATIO = 1

PADDING = 4 + 2 * (EMBED_RATIO // 2 - 1)           # = 2 for ratio=1 (as in PatchEmbed)
STRIDE = PATCH // EMBED_RATIO                      # = PATCH -> non-overlapping windows
HP = (IMG + 2 * PADDING - PATCH) // STRIDE + 1
WP = HP
NUM_PATCHES = (IMG // PATCH) * (IMG // PATCH) * EMBED_RATIO ** 2
assert NUM_PATCHES == HP * WP
SEQ = NUM_PATCHES
HEAD_DIM = EMBED_DIM // NUM_HEADS
SCALE = HEAD_DIM ** -0.5
MLP_HIDDEN = int(EMBED_DIM * MLP_RATIO)
PATCH_K = IN_CHANS * PATCH * PATCH
LN_EPS = 1e-6

# Batch tile per grid step.  BATCH_TILE = BATCH  -> single grid step (best on
# single-TensorCore v5e/v6e).  BATCH_TILE = 1    -> grid=(B,) "parallel" so the
# two batch elements shard one-per-TensorCore on dual-TC v7x.
BATCH_TILE = BATCH
assert BATCH % BATCH_TILE == 0

# ----------------------------- in-kernel math helpers -----------------------------------
# fp32-accurate rational erf (XLA's f32 erf polynomial) -> exact-GELU semantics of
# nn.GELU() without relying on an erf lowering inside Mosaic.
_ERF_ALPHA = (-2.72614225801306e-10, 2.77068142495902e-08, -2.10102402082508e-06,
              -5.69250639462346e-05, -7.34990630326855e-04, -2.95459980854025e-03,
              -1.60960333262415e-02)
_ERF_BETA = (-1.45660718464996e-05, -2.13374055278905e-04, -1.68282697438203e-03,
             -7.37332916720468e-03, -1.42647390514189e-02)


def _erf_f32(x):
    x = jnp.clip(x, -3.832506856900711, 3.832506856900711)
    x2 = x * x
    p = jnp.full_like(x, _ERF_ALPHA[0])
    for c in _ERF_ALPHA[1:]:
        p = p * x2 + c
    q = jnp.full_like(x, _ERF_BETA[0])
    for c in _ERF_BETA[1:]:
        q = q * x2 + c
    # reciprocal (EUP slot) instead of a full-precision VALU divide
    return (x * p) * pl.reciprocal(q)


def _gelu_exact(x):
    return 0.5 * x * (1.0 + _erf_f32(x * 0.7071067811865476))


def _layer_norm(x, w, b, eps=LN_EPS):
    mu = jnp.mean(x, axis=-1, keepdims=True)
    var = jnp.mean(jnp.square(x - mu), axis=-1, keepdims=True)
    return (x - mu) * jax.lax.rsqrt(var + eps) * w + b


# ----------------------------- fused Pallas kernel ---------------------------------------
def vit_kernel(patches_ref, pos_ref, pw_ref, pb_ref,
               ln1w_ref, ln1b_ref, qkvw_ref, ow_ref, ob_ref,
               ln2w_ref, ln2b_ref, f1w_ref, f1b_ref, f2w_ref, f2b_ref,
               nw_ref, nb_ref, o_ref, *, depth, num_heads, head_dim, seq, bb):
    """One batch tile (bb elements) per grid step.  Entire ViT forward fused."""
    f32, bf16 = jnp.float32, jnp.bfloat16
    H, hd, L = num_heads, head_dim, seq
    D = H * hd

    # batched contractions over a (bb*H,) leading batch axis
    DN_QKT = (((2,), (2,)), ((0,), (0,)))   # (G,L,hd) x (G,L,hd) -> (G,L,L)
    DN_PV = (((2,), (1,)), ((0,), (0,)))    # (G,L,L)  x (G,L,hd) -> (G,L,hd)

    def mm(a, b):  # bf16 MXU matmul with f32 accumulation
        return jnp.dot(a.astype(bf16), b, preferred_element_type=f32)

    # ---- patch embedding (+bias +pos_embed) ----  rows = bb*L tokens
    x = mm(patches_ref[...], pw_ref[...]) + pb_ref[...] + pos_ref[...]        # (bb*L, D) f32

    for d in range(depth):                                                    # static unroll (DEPTH=2)
        # ---- attention branch: x = x + proj(MHSA(LN1(x))) ----
        xn = _layer_norm(x, ln1w_ref[d], ln1b_ref[d])                         # (bb*L, D) f32
        qkv = mm(xn, qkvw_ref[d])                                             # (bb*L, 3D) f32, scale folded into q

        def head(part, b, h):  # static 2-D slice of the fused qkv output
            return qkv[b * L:(b + 1) * L, part * D + h * hd: part * D + (h + 1) * hd]

        qh = jnp.stack([head(0, b, h) for b in range(bb) for h in range(H)]).astype(bf16)
        kh = jnp.stack([head(1, b, h) for b in range(bb) for h in range(H)]).astype(bf16)
        vh = jnp.stack([head(2, b, h) for b in range(bb) for h in range(H)]).astype(bf16)

        s = jax.lax.dot_general(qh, kh, DN_QKT, preferred_element_type=f32)   # (bb*H, L, L) f32
        s = s - jnp.max(s, axis=-1, keepdims=True)
        e = jnp.exp(s)
        attn = e * pl.reciprocal(jnp.sum(e, axis=-1, keepdims=True), approx=True)

        oh = jax.lax.dot_general(attn.astype(bf16), vh, DN_PV,
                                 preferred_element_type=f32)                  # (bb*H, L, hd) f32
        # head-concat back to lane-dense (bb*L, D); proj is ONE (N,D)@(D,D) matmul
        ocat = jnp.concatenate(
            [jnp.concatenate([oh[b * H + h] for h in range(H)], axis=-1)
             for b in range(bb)], axis=0)                                     # (bb*L, D)
        x = x + mm(ocat, ow_ref[d]) + ob_ref[d]

        # ---- MLP branch: x = x + fc2(GELU(fc1(LN2(x)))) ----
        xn2 = _layer_norm(x, ln2w_ref[d], ln2b_ref[d])
        h1 = mm(xn2, f1w_ref[d]) + f1b_ref[d]                                 # (bb*L, Hm) f32
        x = x + mm(_gelu_exact(h1), f2w_ref[d]) + f2b_ref[d]

    # ---- final LayerNorm ----
    x = _layer_norm(x, nw_ref[...], nb_ref[...])
    o_ref[...] = x.astype(o_ref.dtype)


# ----------------------------- wrapper ----------------------------------------------------
@jax.jit
def vit_forward(x_nchw, params):
    """ViT.forward_features: NCHW image -> (B, embed_dim, Hp, Wp) feature map."""
    B = x_nchw.shape[0]
    D, H, hd, Hm, K, L = EMBED_DIM, NUM_HEADS, HEAD_DIM, MLP_HIDDEN, PATCH_K, SEQ
    bf16 = jnp.bfloat16

    # Patch-embed conv as im2col (stride == kernel -> non-overlapping windows in padded image).
    pad = PADDING
    xpad = jnp.pad(x_nchw, ((0, 0), (0, 0), (pad, pad), (pad, pad)))
    xpad = xpad[:, :, :HP * PATCH, :WP * PATCH]
    patches = xpad.reshape(B, IN_CHANS, HP, PATCH, WP, PATCH)
    patches = patches.transpose(0, 2, 4, 1, 3, 5).reshape(B * L, K).astype(bf16)

    # pos_embed pre-tiled over the batch (tiny; free XLA op)
    pos = jnp.broadcast_to(params['pos_embed'], (B, L, D)).reshape(B * L, D)

    # ---- wrapper-side weight repacking: lane-dense, depth-stacked, bf16 ----
    blocks = params['blocks']
    ln1_w = jnp.stack([b['ln1_w'] for b in blocks])                           # (DEPTH, 1, D) f32
    ln1_b = jnp.stack([b['ln1_b'] for b in blocks])
    qkv_w = jnp.stack([jnp.concatenate([b['qkv_w'][:, :D] * SCALE,           # scale folded into q
                                        b['qkv_w'][:, D:]], axis=1)
                       for b in blocks]).astype(bf16)                         # (DEPTH, D, 3D) bf16
    proj_w = jnp.stack([b['proj_w'] for b in blocks]).astype(bf16)            # (DEPTH, D, D)  bf16
    proj_b = jnp.stack([b['proj_b'] for b in blocks])
    ln2_w = jnp.stack([b['ln2_w'] for b in blocks])
    ln2_b = jnp.stack([b['ln2_b'] for b in blocks])
    fc1_w = jnp.stack([b['fc1_w'] for b in blocks]).astype(bf16)              # (DEPTH, D, Hm) bf16
    fc1_b = jnp.stack([b['fc1_b'] for b in blocks])
    fc2_w = jnp.stack([b['fc2_w'] for b in blocks]).astype(bf16)              # (DEPTH, Hm, D) bf16
    fc2_b = jnp.stack([b['fc2_b'] for b in blocks])

    BB = BATCH_TILE
    NB = B // BB

    kern = functools.partial(vit_kernel, depth=DEPTH, num_heads=H, head_dim=hd, seq=L, bb=BB)

    def full(shape):
        n = len(shape)
        return pl.BlockSpec(shape, lambda b, _n=n: (0,) * _n)

    # advisory cost estimate (helps XLA schedule the im2col / transpose around the call)
    N = B * L
    flops = (2 * N * K * D
             + DEPTH * (2 * N * D * 3 * D + 4 * B * H * L * L * hd + 2 * N * D * D + 4 * N * D * Hm))
    transcendentals = DEPTH * (B * H * L * L + N * Hm)
    bytes_accessed = (N * K * 2 + N * D * 4 + K * D * 2 + N * D * 4
                      + DEPTH * (3 * D * D * 2 + D * D * 2 + 2 * D * Hm * 2 + 8 * D * 4 + Hm * 4))

    x_tok = pl.pallas_call(
        kern,
        out_shape=jax.ShapeDtypeStruct((B * L, D), jnp.float32),
        grid=(NB,),
        in_specs=[
            pl.BlockSpec((BB * L, K), lambda b: (b, 0)),      # patches (bf16), one batch tile/step
            pl.BlockSpec((BB * L, D), lambda b: (b, 0)),      # pos_embed (pre-tiled, f32)
            full((K, D)), full((1, D)),                       # patch-embed weight (bf16) / bias
            full((DEPTH, 1, D)), full((DEPTH, 1, D)),         # LN1 weight / bias
            full((DEPTH, D, 3 * D)),                          # fused qkv weights (bf16, scale folded)
            full((DEPTH, D, D)), full((DEPTH, 1, D)),         # proj weight (bf16, lane-dense) / bias
            full((DEPTH, 1, D)), full((DEPTH, 1, D)),         # LN2 weight / bias
            full((DEPTH, D, Hm)), full((DEPTH, 1, Hm)),       # fc1 weight (bf16) / bias
            full((DEPTH, Hm, D)), full((DEPTH, 1, D)),        # fc2 weight (bf16) / bias
            full((1, D)), full((1, D)),                       # final norm weight / bias
        ],
        out_specs=pl.BlockSpec((BB * L, D), lambda b: (b, 0)),
        compiler_params=pltpu.CompilerParams(dimension_semantics=("parallel",)),
        cost_estimate=pl.CostEstimate(flops=flops, transcendentals=transcendentals,
                                      bytes_accessed=bytes_accessed),
    )(patches, pos, params['patch_w'].astype(bf16), params['patch_b'],
      ln1_w, ln1_b, qkv_w, proj_w, proj_b,
      ln2_w, ln2_b, fc1_w, fc1_b, fc2_w, fc2_b,
      params['norm_w'], params['norm_b'])

    # x.permute(0, 2, 1).reshape(B, -1, Hp, Wp)
    return x_tok.reshape(B, L, D).transpose(0, 2, 1).reshape(B, D, HP, WP)


# ----------------------------- deterministic parameter init ------------------------------
def init_params(key):
    D, K, Hm = EMBED_DIM, PATCH_K, MLP_HIDDEN
    keys = jax.random.split(key, 2 + DEPTH)

    def trunc_normal(k, shape, std=0.02):
        return std * jax.random.truncated_normal(k, -2.0, 2.0, shape, jnp.float32)

    params = dict(
        # conv proj weight already in im2col layout (C*kh*kw, D); bias = 0
        patch_w=0.02 * jax.random.normal(keys[0], (K, D), jnp.float32),
        patch_b=jnp.zeros((1, D), jnp.float32),
        pos_embed=trunc_normal(keys[1], (1, SEQ, D)),
        norm_w=jnp.ones((1, D), jnp.float32),
        norm_b=jnp.zeros((1, D), jnp.float32),
    )
    blocks = []
    for i in range(DEPTH):
        bk = jax.random.split(keys[2 + i], 4)
        blocks.append(dict(
            ln1_w=jnp.ones((1, D), jnp.float32), ln1_b=jnp.zeros((1, D), jnp.float32),
            qkv_w=trunc_normal(bk[0], (D, 3 * D)),                 # qkv_bias=False
            proj_w=trunc_normal(bk[1], (D, D)),
            proj_b=jnp.zeros((1, D), jnp.float32),
            ln2_w=jnp.ones((1, D), jnp.float32), ln2_b=jnp.zeros((1, D), jnp.float32),
            fc1_w=trunc_normal(bk[2], (D, Hm)), fc1_b=jnp.zeros((1, Hm), jnp.float32),
            fc2_w=trunc_normal(bk[3], (Hm, D)), fc2_b=jnp.zeros((1, D), jnp.float32),
        ))
    params['blocks'] = blocks
    return params


# TODO(synk): prompt_embeds / attn_mask path (forward_features_with_embeds), checkpoint
#             loading and torch.distributed logic are not part of the default forward and
#             are not implemented.

if __name__ == "__main__":
    key = jax.random.PRNGKey(0)
    kx, kp = jax.random.split(key)
    x = jax.random.normal(kx, (BATCH, IN_CHANS, IMG, IMG), jnp.float32)
    params = init_params(kp)

    out = vit_forward(x, params)
    out = jax.block_until_ready(out)

    assert out.shape == (BATCH, EMBED_DIM, HP, WP), out.shape
    assert bool(jnp.all(jnp.isfinite(out)))
    print("KERNEL_OK")
</pallas_src>

<mosaic_0001>
module attributes {stable_mosaic.version = 11 : i64} {
  func.func @vit_kernel(%arg0: i32, %arg1: memref<32x192xbf16, #tpu.memory_space<vmem>>, %arg2: memref<32x32xf32, #tpu.memory_space<vmem>>, %arg3: memref<192x32xbf16, #tpu.memory_space<vmem>>, %arg4: memref<1x32xf32, #tpu.memory_space<vmem>>, %arg5: memref<2x1x32xf32, #tpu.memory_space<vmem>>, %arg6: memref<2x1x32xf32, #tpu.memory_space<vmem>>, %arg7: memref<2x32x96xbf16, #tpu.memory_space<vmem>>, %arg8: memref<2x32x32xbf16, #tpu.memory_space<vmem>>, %arg9: memref<2x1x32xf32, #tpu.memory_space<vmem>>, %arg10: memref<2x1x32xf32, #tpu.memory_space<vmem>>, %arg11: memref<2x1x32xf32, #tpu.memory_space<vmem>>, %arg12: memref<2x32x128xbf16, #tpu.memory_space<vmem>>, %arg13: memref<2x1x128xf32, #tpu.memory_space<vmem>>, %arg14: memref<2x128x32xbf16, #tpu.memory_space<vmem>>, %arg15: memref<2x1x32xf32, #tpu.memory_space<vmem>>, %arg16: memref<1x32xf32, #tpu.memory_space<vmem>>, %arg17: memref<1x32xf32, #tpu.memory_space<vmem>>, %arg18: memref<32x32xf32, #tpu.memory_space<vmem>>) attributes {dimension_semantics = [#tpu.dimension_semantics<parallel>], iteration_bounds = array<i64: 1>, scalar_prefetch = 0 : i64, scratch_operands = 0 : i64, tpu.core_type = #tpu.core_type<tc>, window_params = [{transform_indices = @transform_0, window_bounds = array<i64: 32, 192>}, {transform_indices = @transform_1, window_bounds = array<i64: 32, 32>}, {pipeline_mode = #tpu.pipeline_mode<synchronous>, transform_indices = @transform_2, window_bounds = array<i64: 192, 32>}, {pipeline_mode = #tpu.pipeline_mode<synchronous>, transform_indices = @transform_3, window_bounds = array<i64: 1, 32>}, {pipeline_mode = #tpu.pipeline_mode<synchronous>, transform_indices = @transform_4, window_bounds = array<i64: 2, 1, 32>}, {pipeline_mode = #tpu.pipeline_mode<synchronous>, transform_indices = @transform_5, window_bounds = array<i64: 2, 1, 32>}, {pipeline_mode = #tpu.pipeline_mode<synchronous>, transform_indices = @transform_6, window_bounds = array<i64: 2, 32, 96>}, {pipeline_mode = #tpu.pipeline_mode<synchronous>, transform_indices = @transform_7, window_bounds = array<i64: 2, 32, 32>}, {pipeline_mode = #tpu.pipeline_mode<synchronous>, transform_indices = @transform_8, window_bounds = array<i64: 2, 1, 32>}, {pipeline_mode = #tpu.pipeline_mode<synchronous>, transform_indices = @transform_9, window_bounds = array<i64: 2, 1, 32>}, {pipeline_mode = #tpu.pipeline_mode<synchronous>, transform_indices = @transform_10, window_bounds = array<i64: 2, 1, 32>}, {pipeline_mode = #tpu.pipeline_mode<synchronous>, transform_indices = @transform_11, window_bounds = array<i64: 2, 32, 128>}, {pipeline_mode = #tpu.pipeline_mode<synchronous>, transform_indices = @transform_12, window_bounds = array<i64: 2, 1, 128>}, {pipeline_mode = #tpu.pipeline_mode<synchronous>, transform_indices = @transform_13, window_bounds = array<i64: 2, 128, 32>}, {pipeline_mode = #tpu.pipeline_mode<synchronous>, transform_indices = @transform_14, window_bounds = array<i64: 2, 1, 32>}, {pipeline_mode = #tpu.pipeline_mode<synchronous>, transform_indices = @transform_15, window_bounds = array<i64: 1, 32>}, {pipeline_mode = #tpu.pipeline_mode<synchronous>, transform_indices = @transform_16, window_bounds = array<i64: 1, 32>}, {transform_indices = @transform_17, window_bounds = array<i64: 32, 32>}]} {
    %c0 = arith.constant 0 : index
    %c0_0 = arith.constant 0 : index
    %0 = vector.load %arg1[%c0, %c0_0] : memref<32x192xbf16, #tpu.memory_space<vmem>>, vector<32x192xbf16>
    %c0_1 = arith.constant 0 : index
    %c0_2 = arith.constant 0 : index
    %1 = vector.load %arg3[%c0_1, %c0_2] : memref<192x32xbf16, #tpu.memory_space<vmem>>, vector<192x32xbf16>
    %cst = arith.constant dense<0.000000e+00> : vector<32x32xf32>
    %2 = tpu.matmul %0, %1, %cst {dimension_numbers = #tpu.dot_dimension_numbers<[1], [0], [0], [1], [0, 0, 1, 1], [], []>} : vector<32x192xbf16>, vector<192x32xbf16>, vector<32x32xf32> -> vector<32x32xf32>
    %c0_3 = arith.constant 0 : index
    %c0_4 = arith.constant 0 : index
    %3 = vector.load %arg4[%c0_3, %c0_4] : memref<1x32xf32, #tpu.memory_space<vmem>>, vector<1x32xf32>
    %4 = vector.broadcast %3 : vector<1x32xf32> to vector<32x32xf32>
    %5 = arith.addf %2, %4 : vector<32x32xf32>
    %c0_5 = arith.constant 0 : index
    %c0_6 = arith.constant 0 : index
    %6 = vector.load %arg2[%c0_5, %c0_6] : memref<32x32xf32, #tpu.memory_space<vmem>>, vector<32x32xf32>
    %7 = arith.addf %5, %6 : vector<32x32xf32>
    %c0_7 = arith.constant 0 : index
    %c0_8 = arith.constant 0 : index
    %c0_9 = arith.constant 0 : index
    %8 = vector.load %arg5[%c0_7, %c0_8, %c0_9] : memref<2x1x32xf32, #tpu.memory_space<vmem>>, vector<1x1x32xf32>
    %9 = vector.shape_cast %8 : vector<1x1x32xf32> to vector<1x32xf32>
    %c0_10 = arith.constant 0 : index
    %c0_11 = arith.constant 0 : index
    %c0_12 = arith.constant 0 : index
    %10 = vector.load %arg6[%c0_10, %c0_11, %c0_12] : memref<2x1x32xf32, #tpu.memory_space<vmem>>, vector<1x1x32xf32>
    %11 = vector.shape_cast %10 : vector<1x1x32xf32> to vector<1x32xf32>
    %cst_13 = arith.constant dense<0.000000e+00> : vector<32xf32>
    %12 = vector.multi_reduction <add>, %7, %cst_13 [1] : vector<32x32xf32> to vector<32xf32>
    %13 = vector.shape_cast %12 : vector<32xf32> to vector<32x1xf32>
    %cst_14 = arith.constant 3.200000e+01 : f32
    %14 = vector.broadcast %cst_14 : f32 to vector<32x1xf32>
    %15 = arith.divf %13, %14 : vector<32x1xf32>
    %16 = vector.broadcast %15 : vector<32x1xf32> to vector<32x32xf32>
    %17 = arith.subf %7, %16 : vector<32x32xf32>
    %18 = arith.mulf %17, %17 : vector<32x32xf32>
    %cst_15 = arith.constant dense<0.000000e+00> : vector<32xf32>
    %19 = vector.multi_reduction <add>, %18, %cst_15 [1] : vector<32x32xf32> to vector<32xf32>
    %20 = vector.shape_cast %19 : vector<32xf32> to vector<32x1xf32>
    %cst_16 = arith.constant 3.200000e+01 : f32
    %21 = vector.broadcast %cst_16 : f32 to vector<32x1xf32>
    %22 = arith.divf %20, %21 : vector<32x1xf32>
    %23 = vector.broadcast %15 : vector<32x1xf32> to vector<32x32xf32>
    %24 = arith.subf %7, %23 : vector<32x32xf32>
    %cst_17 = arith.constant 9.99999997E-7 : f32
    %25 = vector.broadcast %cst_17 : f32 to vector<32x1xf32>
    %26 = arith.addf %22, %25 : vector<32x1xf32>
    %27 = math.rsqrt %26 : vector<32x1xf32>
    %28 = vector.broadcast %27 : vector<32x1xf32> to vector<32x32xf32>
    %29 = arith.mulf %24, %28 : vector<32x32xf32>
    %30 = vector.broadcast %9 : vector<1x32xf32> to vector<32x32xf32>
    %31 = arith.mulf %29, %30 : vector<32x32xf32>
    %32 = vector.broadcast %11 : vector<1x32xf32> to vector<32x32xf32>
    %33 = arith.addf %31, %32 : vector<32x32xf32>
    %c0_18 = arith.constant 0 : index
    %c0_19 = arith.constant 0 : index
    %c0_20 = arith.constant 0 : index
    %34 = vector.load %arg7[%c0_18, %c0_19, %c0_20] : memref<2x32x96xbf16, #tpu.memory_space<vmem>>, vector<1x32x96xbf16>
    %35 = vector.shape_cast %34 : vector<1x32x96xbf16> to vector<32x96xbf16>
    %36 = arith.truncf %33 : vector<32x32xf32> to vector<32x32xbf16>
    %cst_21 = arith.constant dense<0.000000e+00> : vector<32x96xf32>
    %37 = tpu.matmul %36, %35, %cst_21 {dimension_numbers = #tpu.dot_dimension_numbers<[1], [0], [0], [1], [0, 0, 1, 1], [], []>} : vector<32x32xbf16>, vector<32x96xbf16>, vector<32x96xf32> -> vector<32x96xf32>
    %38 = vector.extract_strided_slice %37 {offsets = [0, 0], sizes = [16, 8], strides = [1, 1]} : vector<32x96xf32> to vector<16x8xf32>
    %39 = vector.extract_strided_slice %37 {offsets = [0, 8], sizes = [16, 8], strides = [1, 1]} : vector<32x96xf32> to vector<16x8xf32>
    %40 = vector.extract_strided_slice %37 {offsets = [0, 16], sizes = [16, 8], strides = [1, 1]} : vector<32x96xf32> to vector<16x8xf32>
    %41 = vector.extract_strided_slice %37 {offsets = [0, 24], sizes = [16, 8], strides = [1, 1]} : vector<32x96xf32> to vector<16x8xf32>
    %42 = vector.extract_strided_slice %37 {offsets = [16, 0], sizes = [16, 8], strides = [1, 1]} : vector<32x96xf32> to vector<16x8xf32>
    %43 = vector.extract_strided_slice %37 {offsets = [16, 8], sizes = [16, 8], strides = [1, 1]} : vector<32x96xf32> to vector<16x8xf32>
    %44 = vector.extract_strided_slice %37 {offsets = [16, 16], sizes = [16, 8], strides = [1, 1]} : vector<32x96xf32> to vector<16x8xf32>
    %45 = vector.extract_strided_slice %37 {offsets = [16, 24], sizes = [16, 8], strides = [1, 1]} : vector<32x96xf32> to vector<16x8xf32>
    %46 = vector.shape_cast %38 : vector<16x8xf32> to vector<1x16x8xf32>
    %47 = vector.shape_cast %39 : vector<16x8xf32> to vector<1x16x8xf32>
    %48 = vector.shape_cast %40 : vector<16x8xf32> to vector<1x16x8xf32>
    %49 = vector.shape_cast %41 : vector<16x8xf32> to vector<1x16x8xf32>
    %50 = vector.shape_cast %42 : vector<16x8xf32> to vector<1x16x8xf32>
    %51 = vector.shape_cast %43 : vector<16x8xf32> to vector<1x16x8xf32>
    %52 = vector.shape_cast %44 : vector<16x8xf32> to vector<1x16x8xf32>
    %53 = vector.shape_cast %45 : vector<16x8xf32> to vector<1x16x8xf32>
    %54 = tpu.concatenate %46, %47, %48, %49, %50, %51, %52, %53 in 0 : vector<1x16x8xf32>, vector<1x16x8xf32>, vector<1x16x8xf32>, vector<1x16x8xf32>, vector<1x16x8xf32>, vector<1x16x8xf32>, vector<1x16x8xf32>, vector<1x16x8xf32> -> vector<8x16x8xf32>
    %55 = arith.truncf %54 : vector<8x16x8xf32> to vector<8x16x8xbf16>
    %56 = vector.extract_strided_slice %37 {offsets = [0, 32], sizes = [16, 8], strides = [1, 1]} : vector<32x96xf32> to vector<16x8xf32>
    %57 = vector.extract_strided_slice %37 {offsets = [0, 40], sizes = [16, 8], strides = [1, 1]} : vector<32x96xf32> to vector<16x8xf32>
    %58 = vector.extract_strided_slice %37 {offsets = [0, 48], sizes = [16, 8], strides = [1, 1]} : vector<32x96xf32> to vector<16x8xf32>
    %59 = vector.extract_strided_slice %37 {offsets = [0, 56], sizes = [16, 8], strides = [1, 1]} : vector<32x96xf32> to vector<16x8xf32>
    %60 = vector.extract_strided_slice %37 {offsets = [16, 32], sizes = [16, 8], strides = [1, 1]} : vector<32x96xf32> to vector<16x8xf32>
    %61 = vector.extract_strided_slice %37 {offsets = [16, 40], sizes = [16, 8], strides = [1, 1]} : vector<32x96xf32> to vector<16x8xf32>
    %62 = vector.extract_strided_slice %37 {offsets = [16, 48], sizes = [16, 8], strides = [1, 1]} : vector<32x96xf32> to vector<16x8xf32>
    %63 = vector.extract_strided_slice %37 {offsets = [16, 56], sizes = [16, 8], strides = [1, 1]} : vector<32x96xf32> to vector<16x8xf32>
    %64 = vector.shape_cast %56 : vector<16x8xf32> to vector<1x16x8xf32>
    %65 = vector.shape_cast %57 : vector<16x8xf32> to vector<1x16x8xf32>
    %66 = vector.shape_cast %58 : vector<16x8xf32> to vector<1x16x8xf32>
    %67 = vector.shape_cast %59 : vector<16x8xf32> to vector<1x16x8xf32>
    %68 = vector.shape_cast %60 : vector<16x8xf32> to vector<1x16x8xf32>
    %69 = vector.shape_cast %61 : vector<16x8xf32> to vector<1x16x8xf32>
    %70 = vector.shape_cast %62 : vector<16x8xf32> to vector<1x16x8xf32>
    %71 = vector.shape_cast %63 : vector<16x8xf32> to vector<1x16x8xf32>
    %72 = tpu.concatenate %64, %65, %66, %67, %68, %69, %70, %71 in 0 : vector<1x16x8xf32>, vector<1x16x8xf32>, vector<1x16x8xf32>, vector<1x16x8xf32>, vector<1x16x8xf32>, vector<1x16x8xf32>, vector<1x16x8xf32>, vector<1x16x8xf32> -> vector<8x16x8xf32>
    %73 = arith.truncf %72 : vector<8x16x8xf32> to vector<8x16x8xbf16>
    %74 = vector.extract_strided_slice %37 {offsets = [0, 64], sizes = [16, 8], strides = [1, 1]} : vector<32x96xf32> to vector<16x8xf32>
    %75 = vector.extract_strided_slice %37 {offsets = [0, 72], sizes = [16, 8], strides = [1, 1]} : vector<32x96xf32> to vector<16x8xf32>
    %76 = vector.extract_strided_slice %37 {offsets = [0, 80], sizes = [16, 8], strides = [1, 1]} : vector<32x96xf32> to vector<16x8xf32>
    %77 = vector.extract_strided_slice %37 {offsets = [0, 88], sizes = [16, 8], strides = [1, 1]} : vector<32x96xf32> to vector<16x8xf32>
    %78 = vector.extract_strided_slice %37 {offsets = [16, 64], sizes = [16, 8], strides = [1, 1]} : vector<32x96xf32> to vector<16x8xf32>
    %79 = vector.extract_strided_slice %37 {offsets = [16, 72], sizes = [16, 8], strides = [1, 1]} : vector<32x96xf32> to vector<16x8xf32>
    %80 = vector.extract_strided_slice %37 {offsets = [16, 80], sizes = [16, 8], strides = [1, 1]} : vector<32x96xf32> to vector<16x8xf32>
    %81 = vector.extract_strided_slice %37 {offsets = [16, 88], sizes = [16, 8], strides = [1, 1]} : vector<32x96xf32> to vector<16x8xf32>
    %82 = vector.shape_cast %74 : vector<16x8xf32> to vector<1x16x8xf32>
    %83 = vector.shape_cast %75 : vector<16x8xf32> to vector<1x16x8xf32>
    %84 = vector.shape_cast %76 : vector<16x8xf32> to vector<1x16x8xf32>
    %85 = vector.shape_cast %77 : vector<16x8xf32> to vector<1x16x8xf32>
    %86 = vector.shape_cast %78 : vector<16x8xf32> to vector<1x16x8xf32>
    %87 = vector.shape_cast %79 : vector<16x8xf32> to vector<1x16x8xf32>
    %88 = vector.shape_cast %80 : vector<16x8xf32> to vector<1x16x8xf32>
    %89 = vector.shape_cast %81 : vector<16x8xf32> to vector<1x16x8xf32>
    %90 = tpu.concatenate %82, %83, %84, %85, %86, %87, %88, %89 in 0 : vector<1x16x8xf32>, vector<1x16x8xf32>, vector<1x16x8xf32>, vector<1x16x8xf32>, vector<1x16x8xf32>, vector<1x16x8xf32>, vector<1x16x8xf32>, vector<1x16x8xf32> -> vector<8x16x8xf32>
    %91 = arith.truncf %90 : vector<8x16x8xf32> to vector<8x16x8xbf16>
    %cst_22 = arith.constant dense<0.000000e+00> : vector<8x16x16xf32>
    %92 = tpu.matmul %55, %73, %cst_22 {dimension_numbers = #tpu.dot_dimension_numbers<[2], [2], [1], [1], [0, 0, 0, 1, 1, 1], [0], [0]>} : vector<8x16x8xbf16>, vector<8x16x8xbf16>, vector<8x16x16xf32> -> vector<8x16x16xf32>
    %cst_23 = arith.constant dense<0xFF800000> : vector<8x16xf32>
    %93 = vector.multi_reduction <maximumf>, %92, %cst_23 [2] : vector<8x16x16xf32> to vector<8x16xf32>
    %94 = vector.shape_cast %93 : vector<8x16xf32> to vector<8x16x1xf32>
    %95 = vector.broadcast %94 : vector<8x16x1xf32> to vector<8x16x16xf32>
    %96 = arith.subf %92, %95 : vector<8x16x16xf32>
    %97 = math.exp %96 : vector<8x16x16xf32>
    %cst_24 = arith.constant dense<0.000000e+00> : vector<8x16xf32>
    %98 = vector.multi_reduction <add>, %97, %cst_24 [2] : vector<8x16x16xf32> to vector<8x16xf32>
    %99 = vector.shape_cast %98 : vector<8x16xf32> to vector<8x16x1xf32>
    %100 = tpu.reciprocal %99 {approx = true} : vector<8x16x1xf32> -> vector<8x16x1xf32>
    %101 = vector.broadcast %100 : vector<8x16x1xf32> to vector<8x16x16xf32>
    %102 = arith.mulf %97, %101 : vector<8x16x16xf32>
    %103 = arith.truncf %102 : vector<8x16x16xf32> to vector<8x16x16xbf16>
    %cst_25 = arith.constant dense<0.000000e+00> : vector<8x16x8xf32>
    %104 = tpu.matmul %103, %91, %cst_25 {dimension_numbers = #tpu.dot_dimension_numbers<[2], [1], [1], [2], [0, 0, 0, 1, 1, 2], [0], [0]>} : vector<8x16x16xbf16>, vector<8x16x8xbf16>, vector<8x16x8xf32> -> vector<8x16x8xf32>
    %105 = vector.extract_strided_slice %104 {offsets = [0, 0, 0], sizes = [1, 16, 8], strides = [1, 1, 1]} : vector<8x16x8xf32> to vector<1x16x8xf32>
    %106 = vector.shape_cast %105 : vector<1x16x8xf32> to vector<16x8xf32>
    %107 = vector.extract_strided_slice %104 {offsets = [1, 0, 0], sizes = [1, 16, 8], strides = [1, 1, 1]} : vector<8x16x8xf32> to vector<1x16x8xf32>
    %108 = vector.shape_cast %107 : vector<1x16x8xf32> to vector<16x8xf32>
    %109 = vector.extract_strided_slice %104 {offsets = [2, 0, 0], sizes = [1, 16, 8], strides = [1, 1, 1]} : vector<8x16x8xf32> to vector<1x16x8xf32>
    %110 = vector.shape_cast %109 : vector<1x16x8xf32> to vector<16x8xf32>
    %111 = vector.extract_strided_slice %104 {offsets = [3, 0, 0], sizes = [1, 16, 8], strides = [1, 1, 1]} : vector<8x16x8xf32> to vector<1x16x8xf32>
    %112 = vector.shape_cast %111 : vector<1x16x8xf32> to vector<16x8xf32>
    %113 = tpu.concatenate %106, %108, %110, %112 in 1 : vector<16x8xf32>, vector<16x8xf32>, vector<16x8xf32>, vector<16x8xf32> -> vector<16x32xf32>
    %114 = vector.extract_strided_slice %104 {offsets = [4, 0, 0], sizes = [1, 16, 8], strides = [1, 1, 1]} : vector<8x16x8xf32> to vector<1x16x8xf32>
    %115 = vector.shape_cast %114 : vector<1x16x8xf32> to vector<16x8xf32>
    %116 = vector.extract_strided_slice %104 {offsets = [5, 0, 0], sizes = [1, 16, 8], strides = [1, 1, 1]} : vector<8x16x8xf32> to vector<1x16x8xf32>
    %117 = vector.shape_cast %116 : vector<1x16x8xf32> to vector<16x8xf32>
    %118 = vector.extract_strided_slice %104 {offsets = [6, 0, 0], sizes = [1, 16, 8], strides = [1, 1, 1]} : vector<8x16x8xf32> to vector<1x16x8xf32>
    %119 = vector.shape_cast %118 : vector<1x16x8xf32> to vector<16x8xf32>
    %120 = vector.extract_strided_slice %104 {offsets = [7, 0, 0], sizes = [1, 16, 8], strides = [1, 1, 1]} : vector<8x16x8xf32> to vector<1x16x8xf32>
    %121 = vector.shape_cast %120 : vector<1x16x8xf32> to vector<16x8xf32>
    %122 = tpu.concatenate %115, %117, %119, %121 in 1 : vector<16x8xf32>, vector<16x8xf32>, vector<16x8xf32>, vector<16x8xf32> -> vector<16x32xf32>
    %123 = tpu.concatenate %113, %122 in 0 : vector<16x32xf32>, vector<16x32xf32> -> vector<32x32xf32>
    %c0_26 = arith.constant 0 : index
    %c0_27 = arith.constant 0 : index
    %c0_28 = arith.constant 0 : index
    %124 = vector.load %arg8[%c0_26, %c0_27, %c0_28] : memref<2x32x32xbf16, #tpu.memory_space<vmem>>, vector<1x32x32xbf16>
    %125 = vector.shape_cast %124 : vector<1x32x32xbf16> to vector<32x32xbf16>
    %126 = arith.truncf %123 : vector<32x32xf32> to vector<32x32xbf16>
    %cst_29 = arith.constant dense<0.000000e+00> : vector<32x32xf32>
    %127 = tpu.matmul %126, %125, %cst_29 {dimension_numbers = #tpu.dot_dimension_numbers<[1], [0], [0], [1], [0, 0, 1, 1], [], []>} : vector<32x32xbf16>, vector<32x32xbf16>, vector<32x32xf32> -> vector<32x32xf32>
    %128 = arith.addf %7, %127 : vector<32x32xf32>
    %c0_30 = arith.constant 0 : index
    %c0_31 = arith.constant 0 : index
    %c0_32 = arith.constant 0 : index
    %129 = vector.load %arg9[%c0_30, %c0_31, %c0_32] : memref<2x1x32xf32, #tpu.memory_space<vmem>>, vector<1x1x32xf32>
    %130 = vector.shape_cast %129 : vector<1x1x32xf32> to vector<1x32xf32>
    %131 = vector.broadcast %130 : vector<1x32xf32> to vector<32x32xf32>
    %132 = arith.addf %128, %131 : vector<32x32xf32>
    %c0_33 = arith.constant 0 : index
    %c0_34 = arith.constant 0 : index
    %c0_35 = arith.constant 0 : index
    %133 = vector.load %arg10[%c0_33, %c0_34, %c0_35] : memref<2x1x32xf32, #tpu.memory_space<vmem>>, vector<1x1x32xf32>
    %134 = vector.shape_cast %133 : vector<1x1x32xf32> to vector<1x32xf32>
    %c0_36 = arith.constant 0 : index
    %c0_37 = arith.constant 0 : index
    %c0_38 = arith.constant 0 : index
    %135 = vector.load %arg11[%c0_36, %c0_37, %c0_38] : memref<2x1x32xf32, #tpu.memory_space<vmem>>, vector<1x1x32xf32>
    %136 = vector.shape_cast %135 : vector<1x1x32xf32> to vector<1x32xf32>
    %cst_39 = arith.constant dense<0.000000e+00> : vector<32xf32>
    %137 = vector.multi_reduction <add>, %132, %cst_39 [1] : vector<32x32xf32> to vector<32xf32>
    %138 = vector.shape_cast %137 : vector<32xf32> to vector<32x1xf32>
    %cst_40 = arith.constant 3.200000e+01 : f32
    %139 = vector.broadcast %cst_40 : f32 to vector<32x1xf32>
    %140 = arith.divf %138, %139 : vector<32x1xf32>
    %141 = vector.broadcast %140 : vector<32x1xf32> to vector<32x32xf32>
    %142 = arith.subf %132, %141 : vector<32x32xf32>
    %143 = arith.mulf %142, %142 : vector<32x32xf32>
    %cst_41 = arith.constant dense<0.000000e+00> : vector<32xf32>
    %144 = vector.multi_reduction <add>, %143, %cst_41 [1] : vector<32x32xf32> to vector<32xf32>
    %145 = vector.shape_cast %144 : vector<32xf32> to vector<32x1xf32>
    %cst_42 = arith.constant 3.200000e+01 : f32
    %146 = vector.broadcast %cst_42 : f32 to vector<32x1xf32>
    %147 = arith.divf %145, %146 : vector<32x1xf32>
    %148 = vector.broadcast %140 : vector<32x1xf32> to vector<32x32xf32>
    %149 = arith.subf %132, %148 : vector<32x32xf32>
    %cst_43 = arith.constant 9.99999997E-7 : f32
    %150 = vector.broadcast %cst_43 : f32 to vector<32x1xf32>
    %151 = arith.addf %147, %150 : vector<32x1xf32>
    %152 = math.rsqrt %151 : vector<32x1xf32>
    %153 = vector.broadcast %152 : vector<32x1xf32> to vector<32x32xf32>
    %154 = arith.mulf %149, %153 : vector<32x32xf32>
    %155 = vector.broadcast %134 : vector<1x32xf32> to vector<32x32xf32>
    %156 = arith.mulf %154, %155 : vector<32x32xf32>
    %157 = vector.broadcast %136 : vector<1x32xf32> to vector<32x32xf32>
    %158 = arith.addf %156, %157 : vector<32x32xf32>
    %c0_44 = arith.constant 0 : index
    %c0_45 = arith.constant 0 : index
    %c0_46 = arith.constant 0 : index
    %159 = vector.load %arg12[%c0_44, %c0_45, %c0_46] : memref<2x32x128xbf16, #tpu.memory_space<vmem>>, vector<1x32x128xbf16>
    %160 = vector.shape_cast %159 : vector<1x32x128xbf16> to vector<32x128xbf16>
    %161 = arith.truncf %158 : vector<32x32xf32> to vector<32x32xbf16>
    %cst_47 = arith.constant dense<0.000000e+00> : vector<32x128xf32>
    %162 = tpu.matmul %161, %160, %cst_47 {dimension_numbers = #tpu.dot_dimension_numbers<[1], [0], [0], [1], [0, 0, 1, 1], [], []>} : vector<32x32xbf16>, vector<32x128xbf16>, vector<32x128xf32> -> vector<32x128xf32>
    %c0_48 = arith.constant 0 : index
    %c0_49 = arith.constant 0 : index
    %c0_50 = arith.constant 0 : index
    %163 = vector.load %arg13[%c0_48, %c0_49, %c0_50] : memref<2x1x128xf32, #tpu.memory_space<vmem>>, vector<1x1x128xf32>
    %164 = vector.shape_cast %163 : vector<1x1x128xf32> to vector<1x128xf32>
    %165 = vector.broadcast %164 : vector<1x128xf32> to vector<32x128xf32>
    %166 = arith.addf %162, %165 : vector<32x128xf32>
    %cst_51 = arith.constant 5.000000e-01 : f32
    %167 = vector.broadcast %cst_51 : f32 to vector<32x128xf32>
    %168 = arith.mulf %167, %166 : vector<32x128xf32>
    %cst_52 = arith.constant 0.707106769 : f32
    %169 = vector.broadcast %cst_52 : f32 to vector<32x128xf32>
    %170 = arith.mulf %166, %169 : vector<32x128xf32>
    %cst_53 = arith.constant -3.8325069 : f32
    %cst_54 = arith.constant 3.8325069 : f32
    %171 = vector.broadcast %cst_53 : f32 to vector<32x128xf32>
    %172 = arith.maximumf %171, %170 : vector<32x128xf32>
    %173 = vector.broadcast %cst_54 : f32 to vector<32x128xf32>
    %174 = arith.minimumf %173, %172 : vector<32x128xf32>
    %175 = arith.mulf %174, %174 : vector<32x128xf32>
    %cst_55 = arith.constant -2.72614237E-10 : f32
    %176 = vector.broadcast %cst_55 : f32 to vector<32x128xf32>
    %177 = arith.mulf %176, %175 : vector<32x128xf32>
    %cst_56 = arith.constant 2.77068146E-8 : f32
    %178 = vector.broadcast %cst_56 : f32 to vector<32x128xf32>
    %179 = arith.addf %177, %178 : vector<32x128xf32>
    %180 = arith.mulf %179, %175 : vector<32x128xf32>
    %cst_57 = arith.constant -2.10102394E-6 : f32
    %181 = vector.broadcast %cst_57 : f32 to vector<32x128xf32>
    %182 = arith.addf %180, %181 : vector<32x128xf32>
    %183 = arith.mulf %182, %175 : vector<32x128xf32>
    %cst_58 = arith.constant -5.69250624E-5 : f32
    %184 = vector.broadcast %cst_58 : f32 to vector<32x128xf32>
    %185 = arith.addf %183, %184 : vector<32x128xf32>
    %186 = arith.mulf %185, %175 : vector<32x128xf32>
    %cst_59 = arith.constant -7.34990637E-4 : f32
    %187 = vector.broadcast %cst_59 : f32 to vector<32x128xf32>
    %188 = arith.addf %186, %187 : vector<32x128xf32>
    %189 = arith.mulf %188, %175 : vector<32x128xf32>
    %cst_60 = arith.constant -2.954600e-03 : f32
    %190 = vector.broadcast %cst_60 : f32 to vector<32x128xf32>
    %191 = arith.addf %189, %190 : vector<32x128xf32>
    %192 = arith.mulf %191, %175 : vector<32x128xf32>
    %cst_61 = arith.constant -0.0160960332 : f32
    %193 = vector.broadcast %cst_61 : f32 to vector<32x128xf32>
    %194 = arith.addf %192, %193 : vector<32x128xf32>
    %cst_62 = arith.constant -1.45660715E-5 : f32
    %195 = vector.broadcast %cst_62 : f32 to vector<32x128xf32>
    %196 = arith.mulf %195, %175 : vector<32x128xf32>
    %cst_63 = arith.constant -2.13374049E-4 : f32
    %197 = vector.broadcast %cst_63 : f32 to vector<32x128xf32>
    %198 = arith.addf %196, %197 : vector<32x128xf32>
    %199 = arith.mulf %198, %175 : vector<32x128xf32>
    %cst_64 = arith.constant -0.00168282702 : f32
    %200 = vector.broadcast %cst_64 : f32 to vector<32x128xf32>
    %201 = arith.addf %199, %200 : vector<32x128xf32>
    %202 = arith.mulf %201, %175 : vector<32x128xf32>
    %cst_65 = arith.constant -0.00737332925 : f32
    %203 = vector.broadcast %cst_65 : f32 to vector<32x128xf32>
    %204 = arith.addf %202, %203 : vector<32x128xf32>
    %205 = arith.mulf %204, %175 : vector<32x128xf32>
    %cst_66 = arith.constant -0.0142647391 : f32
    %206 = vector.broadcast %cst_66 : f32 to vector<32x128xf32>
    %207 = arith.addf %205, %206 : vector<32x128xf32>
    %208 = arith.mulf %174, %194 : vector<32x128xf32>
    %209 = tpu.reciprocal %207 : vector<32x128xf32> -> vector<32x128xf32>
    %210 = arith.mulf %208, %209 : vector<32x128xf32>
    %cst_67 = arith.constant 1.000000e+00 : f32
    %211 = vector.broadcast %cst_67 : f32 to vector<32x128xf32>
    %212 = arith.addf %211, %210 : vector<32x128xf32>
    %213 = arith.mulf %168, %212 : vector<32x128xf32>
    %c0_68 = arith.constant 0 : index
    %c0_69 = arith.constant 0 : index
    %c0_70 = arith.constant 0 : index
    %214 = vector.load %arg14[%c0_68, %c0_69, %c0_70] : memref<2x128x32xbf16, #tpu.memory_space<vmem>>, vector<1x128x32xbf16>
    %215 = vector.shape_cast %214 : vector<1x128x32xbf16> to vector<128x32xbf16>
    %216 = arith.truncf %213 : vector<32x128xf32> to vector<32x128xbf16>
    %cst_71 = arith.constant dense<0.000000e+00> : vector<32x32xf32>
    %217 = tpu.matmul %216, %215, %cst_71 {dimension_numbers = #tpu.dot_dimension_numbers<[1], [0], [0], [1], [0, 0, 1, 1], [], []>} : vector<32x128xbf16>, vector<128x32xbf16>, vector<32x32xf32> -> vector<32x32xf32>
    %218 = arith.addf %132, %217 : vector<32x32xf32>
    %c0_72 = arith.constant 0 : index
    %c0_73 = arith.constant 0 : index
    %c0_74 = arith.constant 0 : index
    %219 = vector.load %arg15[%c0_72, %c0_73, %c0_74] : memref<2x1x32xf32, #tpu.memory_space<vmem>>, vector<1x1x32xf32>
    %220 = vector.shape_cast %219 : vector<1x1x32xf32> to vector<1x32xf32>
    %221 = vector.broadcast %220 : vector<1x32xf32> to vector<32x32xf32>
    %222 = arith.addf %218, %221 : vector<32x32xf32>
    %c1 = arith.constant 1 : index
    %c0_75 = arith.constant 0 : index
    %c0_76 = arith.constant 0 : index
    %223 = vector.load %arg5[%c1, %c0_75, %c0_76] : memref<2x1x32xf32, #tpu.memory_space<vmem>>, vector<1x1x32xf32>
    %224 = vector.shape_cast %223 : vector<1x1x32xf32> to vector<1x32xf32>
    %c1_77 = arith.constant 1 : index
    %c0_78 = arith.constant 0 : index
    %c0_79 = arith.constant 0 : index
    %225 = vector.load %arg6[%c1_77, %c0_78, %c0_79] : memref<2x1x32xf32, #tpu.memory_space<vmem>>, vector<1x1x32xf32>
    %226 = vector.shape_cast %225 : vector<1x1x32xf32> to vector<1x32xf32>
    %cst_80 = arith.constant dense<0.000000e+00> : vector<32xf32>
    %227 = vector.multi_reduction <add>, %222, %cst_80 [1] : vector<32x32xf32> to vector<32xf32>
    %228 = vector.shape_cast %227 : vector<32xf32> to vector<32x1xf32>
    %cst_81 = arith.constant 3.200000e+01 : f32
    %229 = vector.broadcast %cst_81 : f32 to vector<32x1xf32>
    %230 = arith.divf %228, %229 : vector<32x1xf32>
    %231 = vector.broadcast %230 : vector<32x1xf32> to vector<32x32xf32>
    %232 = arith.subf %222, %231 : vector<32x32xf32>
    %233 = arith.mulf %232, %232 : vector<32x32xf32>
    %cst_82 = arith.constant dense<0.000000e+00> : vector<32xf32>
    %234 = vector.multi_reduction <add>, %233, %cst_82 [1] : vector<32x32xf32> to vector<32xf32>
    %235 = vector.shape_cast %234 : vector<32xf32> to vector<32x1xf32>
    %cst_83 = arith.constant 3.200000e+01 : f32
    %236 = vector.broadcast %cst_83 : f32 to vector<32x1xf32>
    %237 = arith.divf %235, %236 : vector<32x1xf32>
    %238 = vector.broadcast %230 : vector<32x1xf32> to vector<32x32xf32>
    %239 = arith.subf %222, %238 : vector<32x32xf32>
    %cst_84 = arith.constant 9.99999997E-7 : f32
    %240 = vector.broadcast %cst_84 : f32 to vector<32x1xf32>
    %241 = arith.addf %237, %240 : vector<32x1xf32>
    %242 = math.rsqrt %241 : vector<32x1xf32>
    %243 = vector.broadcast %242 : vector<32x1xf32> to vector<32x32xf32>
    %244 = arith.mulf %239, %243 : vector<32x32xf32>
    %245 = vector.broadcast %224 : vector<1x32xf32> to vector<32x32xf32>
    %246 = arith.mulf %244, %245 : vector<32x32xf32>
    %247 = vector.broadcast %226 : vector<1x32xf32> to vector<32x32xf32>
    %248 = arith.addf %246, %247 : vector<32x32xf32>
    %c1_85 = arith.constant 1 : index
    %c0_86 = arith.constant 0 : index
    %c0_87 = arith.constant 0 : index
    %249 = vector.load %arg7[%c1_85, %c0_86, %c0_87] : memref<2x32x96xbf16, #tpu.memory_space<vmem>>, vector<1x32x96xbf16>
    %250 = vector.shape_cast %249 : vector<1x32x96xbf16> to vector<32x96xbf16>
    %251 = arith.truncf %248 : vector<32x32xf32> to vector<32x32xbf16>
    %cst_88 = arith.constant dense<0.000000e+00> : vector<32x96xf32>
    %252 = tpu.matmul %251, %250, %cst_88 {dimension_numbers = #tpu.dot_dimension_numbers<[1], [0], [0], [1], [0, 0, 1, 1], [], []>} : vector<32x32xbf16>, vector<32x96xbf16>, vector<32x96xf32> -> vector<32x96xf32>
    %253 = vector.extract_strided_slice %252 {offsets = [0, 0], sizes = [16, 8], strides = [1, 1]} : vector<32x96xf32> to vector<16x8xf32>
    %254 = vector.extract_strided_slice %252 {offsets = [0, 8], sizes = [16, 8], strides = [1, 1]} : vector<32x96xf32> to vector<16x8xf32>
    %255 = vector.extract_strided_slice %252 {offsets = [0, 16], sizes = [16, 8], strides = [1, 1]} : vector<32x96xf32> to vector<16x8xf32>
    %256 = vector.extract_strided_slice %252 {offsets = [0, 24], sizes = [16, 8], strides = [1, 1]} : vector<32x96xf32> to vector<16x8xf32>
    %257 = vector.extract_strided_slice %252 {offsets = [16, 0], sizes = [16, 8], strides = [1, 1]} : vector<32x96xf32> to vector<16x8xf32>
    %258 = vector.extract_strided_slice %252 {offsets = [16, 8], sizes = [16, 8], strides = [1, 1]} : vector<32x96xf32> to vector<16x8xf32>
    %259 = vector.extract_strided_slice %252 {offsets = [16, 16], sizes = [16, 8], strides = [1, 1]} : vector<32x96xf32> to vector<16x8xf32>
    %260 = vector.extract_strided_slice %252 {offsets = [16, 24], sizes = [16, 8], strides = [1, 1]} : vector<32x96xf32> to vector<16x8xf32>
    %261 = vector.shape_cast %253 : vector<16x8xf32> to vector<1x16x8xf32>
    %262 = vector.shape_cast %254 : vector<16x8xf32> to vector<1x16x8xf32>
    %263 = vector.shape_cast %255 : vector<16x8xf32> to vector<1x16x8xf32>
    %264 = vector.shape_cast %256 : vector<16x8xf32> to vector<1x16x8xf32>
    %265 = vector.shape_cast %257 : vector<16x8xf32> to vector<1x16x8xf32>
    %266 = vector.shape_cast %258 : vector<16x8xf32> to vector<1x16x8xf32>
    %267 = vector.shape_cast %259 : vector<16x8xf32> to vector<1x16x8xf32>
    %268 = vector.shape_cast %260 : vector<16x8xf32> to vector<1x16x8xf32>
    %269 = tpu.concatenate %261, %262, %263, %264, %265, %266, %267, %268 in 0 : vector<1x16x8xf32>, vector<1x16x8xf32>, vector<1x16x8xf32>, vector<1x16x8xf32>, vector<1x16x8xf32>, vector<1x16x8xf32>, vector<1x16x8xf32>, vector<1x16x8xf32> -> vector<8x16x8xf32>
    %270 = arith.truncf %269 : vector<8x16x8xf32> to vector<8x16x8xbf16>
    %271 = vector.extract_strided_slice %252 {offsets = [0, 32], sizes = [16, 8], strides = [1, 1]} : vector<32x96xf32> to vector<16x8xf32>
    %272 = vector.extract_strided_slice %252 {offsets = [0, 40], sizes = [16, 8], strides = [1, 1]} : vector<32x96xf32> to vector<16x8xf32>
    %273 = vector.extract_strided_slice %252 {offsets = [0, 48], sizes = [16, 8], strides = [1, 1]} : vector<32x96xf32> to vector<16x8xf32>
    %274 = vector.extract_strided_slice %252 {offsets = [0, 56], sizes = [16, 8], strides = [1, 1]} : vector<32x96xf32> to vector<16x8xf32>
    %275 = vector.extract_strided_slice %252 {offsets = [16, 32], sizes = [16, 8], strides = [1, 1]} : vector<32x96xf32> to vector<16x8xf32>
    %276 = vector.extract_strided_slice %252 {offsets = [16, 40], sizes = [16, 8], strides = [1, 1]} : vector<32x96xf32> to vector<16x8xf32>
    %277 = vector.extract_strided_slice %252 {offsets = [16, 48], sizes = [16, 8], strides = [1, 1]} : vector<32x96xf32> to vector<16x8xf32>
    %278 = vector.extract_strided_slice %252 {offsets = [16, 56], sizes = [16, 8], strides = [1, 1]} : vector<32x96xf32> to vector<16x8xf32>
    %279 = vector.shape_cast %271 : vector<16x8xf32> to vector<1x16x8xf32>
    %280 = vector.shape_cast %272 : vector<16x8xf32> to vector<1x16x8xf32>
    %281 = vector.shape_cast %273 : vector<16x8xf32> to vector<1x16x8xf32>
    %282 = vector.shape_cast %274 : vector<16x8xf32> to vector<1x16x8xf32>
    %283 = vector.shape_cast %275 : vector<16x8xf32> to vector<1x16x8xf32>
    %284 = vector.shape_cast %276 : vector<16x8xf32> to vector<1x16x8xf32>
    %285 = vector.shape_cast %277 : vector<16x8xf32> to vector<1x16x8xf32>
    %286 = vector.shape_cast %278 : vector<16x8xf32> to vector<1x16x8xf32>
    %287 = tpu.concatenate %279, %280, %281, %282, %283, %284, %285, %286 in 0 : vector<1x16x8xf32>, vector<1x16x8xf32>, vector<1x16x8xf32>, vector<1x16x8xf32>, vector<1x16x8xf32>, vector<1x16x8xf32>, vector<1x16x8xf32>, vector<1x16x8xf32> -> vector<8x16x8xf32>
    %288 = arith.truncf %287 : vector<8x16x8xf32> to vector<8x16x8xbf16>
    %289 = vector.extract_strided_slice %252 {offsets = [0, 64], sizes = [16, 8], strides = [1, 1]} : vector<32x96xf32> to vector<16x8xf32>
    %290 = vector.extract_strided_slice %252 {offsets = [0, 72], sizes = [16, 8], strides = [1, 1]} : vector<32x96xf32> to vector<16x8xf32>
    %291 = vector.extract_strided_slice %252 {offsets = [0, 80], sizes = [16, 8], strides = [1, 1]} : vector<32x96xf32> to vector<16x8xf32>
    %292 = vector.extract_strided_slice %252 {offsets = [0, 88], sizes = [16, 8], strides = [1, 1]} : vector<32x96xf32> to vector<16x8xf32>
    %293 = vector.extract_strided_slice %252 {offsets = [16, 64], sizes = [16, 8], strides = [1, 1]} : vector<32x96xf32> to vector<16x8xf32>
    %294 = vector.extract_strided_slice %252 {offsets = [16, 72], sizes = [16, 8], strides = [1, 1]} : vector<32x96xf32> to vector<16x8xf32>
    %295 = vector.extract_strided_slice %252 {offsets = [16, 80], sizes = [16, 8], strides = [1, 1]} : vector<32x96xf32> to vector<16x8xf32>
    %296 = vector.extract_strided_slice %252 {offsets = [16, 88], sizes = [16, 8], strides = [1, 1]} : vector<32x96xf32> to vector<16x8xf32>
    %297 = vector.shape_cast %289 : vector<16x8xf32> to vector<1x16x8xf32>
    %298 = vector.shape_cast %290 : vector<16x8xf32> to vector<1x16x8xf32>
    %299 = vector.shape_cast %291 : vector<16x8xf32> to vector<1x16x8xf32>
    %300 = vector.shape_cast %292 : vector<16x8xf32> to vector<1x16x8xf32>
    %301 = vector.shape_cast %293 : vector<16x8xf32> to vector<1x16x8xf32>
    %302 = vector.shape_cast %294 : vector<16x8xf32> to vector<1x16x8xf32>
    %303 = vector.shape_cast %295 : vector<16x8xf32> to vector<1x16x8xf32>
    %304 = vector.shape_cast %296 : vector<16x8xf32> to vector<1x16x8xf32>
    %305 = tpu.concatenate %297, %298, %299, %300, %301, %302, %303, %304 in 0 : vector<1x16x8xf32>, vector<1x16x8xf32>, vector<1x16x8xf32>, vector<1x16x8xf32>, vector<1x16x8xf32>, vector<1x16x8xf32>, vector<1x16x8xf32>, vector<1x16x8xf32> -> vector<8x16x8xf32>
    %306 = arith.truncf %305 : vector<8x16x8xf32> to vector<8x16x8xbf16>
    %cst_89 = arith.constant dense<0.000000e+00> : vector<8x16x16xf32>
    %307 = tpu.matmul %270, %288, %cst_89 {dimension_numbers = #tpu.dot_dimension_numbers<[2], [2], [1], [1], [0, 0, 0, 1, 1, 1], [0], [0]>} : vector<8x16x8xbf16>, vector<8x16x8xbf16>, vector<8x16x16xf32> -> vector<8x16x16xf32>
    %cst_90 = arith.constant dense<0xFF800000> : vector<8x16xf32>
    %308 = vector.multi_reduction <maximumf>, %307, %cst_90 [2] : vector<8x16x16xf32> to vector<8x16xf32>
    %309 = vector.shape_cast %308 : vector<8x16xf32> to vector<8x16x1xf32>
    %310 = vector.broadcast %309 : vector<8x16x1xf32> to vector<8x16x16xf32>
    %311 = arith.subf %307, %310 : vector<8x16x16xf32>
    %312 = math.exp %311 : vector<8x16x16xf32>
    %cst_91 = arith.constant dense<0.000000e+00> : vector<8x16xf32>
    %313 = vector.multi_reduction <add>, %312, %cst_91 [2] : vector<8x16x16xf32> to vector<8x16xf32>
    %314 = vector.shape_cast %313 : vector<8x16xf32> to vector<8x16x1xf32>
    %315 = tpu.reciprocal %314 {approx = true} : vector<8x16x1xf32> -> vector<8x16x1xf32>
    %316 = vector.broadcast %315 : vector<8x16x1xf32> to vector<8x16x16xf32>
    %317 = arith.mulf %312, %316 : vector<8x16x16xf32>
    %318 = arith.truncf %317 : vector<8x16x16xf32> to vector<8x16x16xbf16>
    %cst_92 = arith.constant dense<0.000000e+00> : vector<8x16x8xf32>
    %319 = tpu.matmul %318, %306, %cst_92 {dimension_numbers = #tpu.dot_dimension_numbers<[2], [1], [1], [2], [0, 0, 0, 1, 1, 2], [0], [0]>} : vector<8x16x16xbf16>, vector<8x16x8xbf16>, vector<8x16x8xf32> -> vector<8x16x8xf32>
    %320 = vector.extract_strided_slice %319 {offsets = [0, 0, 0], sizes = [1, 16, 8], strides = [1, 1, 1]} : vector<8x16x8xf32> to vector<1x16x8xf32>
    %321 = vector.shape_cast %320 : vector<1x16x8xf32> to vector<16x8xf32>
    %322 = vector.extract_strided_slice %319 {offsets = [1, 0, 0], sizes = [1, 16, 8], strides = [1, 1, 1]} : vector<8x16x8xf32> to vector<1x16x8xf32>
    %323 = vector.shape_cast %322 : vector<1x16x8xf32> to vector<16x8xf32>
    %324 = vector.extract_strided_slice %319 {offsets = [2, 0, 0], sizes = [1, 16, 8], strides = [1, 1, 1]} : vector<8x16x8xf32> to vector<1x16x8xf32>
    %325 = vector.shape_cast %324 : vector<1x16x8xf32> to vector<16x8xf32>
    %326 = vector.extract_strided_slice %319 {offsets = [3, 0, 0], sizes = [1, 16, 8], strides = [1, 1, 1]} : vector<8x16x8xf32> to vector<1x16x8xf32>
    %327 = vector.shape_cast %326 : vector<1x16x8xf32> to vector<16x8xf32>
    %328 = tpu.concatenate %321, %323, %325, %327 in 1 : vector<16x8xf32>, vector<16x8xf32>, vector<16x8xf32>, vector<16x8xf32> -> vector<16x32xf32>
    %329 = vector.extract_strided_slice %319 {offsets = [4, 0, 0], sizes = [1, 16, 8], strides = [1, 1, 1]} : vector<8x16x8xf32> to vector<1x16x8xf32>
    %330 = vector.shape_cast %329 : vector<1x16x8xf32> to vector<16x8xf32>
    %331 = vector.extract_strided_slice %319 {offsets = [5, 0, 0], sizes = [1, 16, 8], strides = [1, 1, 1]} : vector<8x16x8xf32> to vector<1x16x8xf32>
    %332 = vector.shape_cast %331 : vector<1x16x8xf32> to vector<16x8xf32>
    %333 = vector.extract_strided_slice %319 {offsets = [6, 0, 0], sizes = [1, 16, 8], strides = [1, 1, 1]} : vector<8x16x8xf32> to vector<1x16x8xf32>
    %334 = vector.shape_cast %333 : vector<1x16x8xf32> to vector<16x8xf32>
    %335 = vector.extract_strided_slice %319 {offsets = [7, 0, 0], sizes = [1, 16, 8], strides = [1, 1, 1]} : vector<8x16x8xf32> to vector<1x16x8xf32>
    %336 = vector.shape_cast %335 : vector<1x16x8xf32> to vector<16x8xf32>
    %337 = tpu.concatenate %330, %332, %334, %336 in 1 : vector<16x8xf32>, vector<16x8xf32>, vector<16x8xf32>, vector<16x8xf32> -> vector<16x32xf32>
    %338 = tpu.concatenate %328, %337 in 0 : vector<16x32xf32>, vector<16x32xf32> -> vector<32x32xf32>
    %c1_93 = arith.constant 1 : index
    %c0_94 = arith.constant 0 : index
    %c0_95 = arith.constant 0 : index
    %339 = vector.load %arg8[%c1_93, %c0_94, %c0_95] : memref<2x32x32xbf16, #tpu.memory_space<vmem>>, vector<1x32x32xbf16>
    %340 = vector.shape_cast %339 : vector<1x32x32xbf16> to vector<32x32xbf16>
    %341 = arith.truncf %338 : vector<32x32xf32> to vector<32x32xbf16>
    %cst_96 = arith.constant dense<0.000000e+00> : vector<32x32xf32>
    %342 = tpu.matmul %341, %340, %cst_96 {dimension_numbers = #tpu.dot_dimension_numbers<[1], [0], [0], [1], [0, 0, 1, 1], [], []>} : vector<32x32xbf16>, vector<32x32xbf16>, vector<32x32xf32> -> vector<32x32xf32>
    %343 = arith.addf %222, %342 : vector<32x32xf32>
    %c1_97 = arith.constant 1 : index
    %c0_98 = arith.constant 0 : index
    %c0_99 = arith.constant 0 : index
    %344 = vector.load %arg9[%c1_97, %c0_98, %c0_99] : memref<2x1x32xf32, #tpu.memory_space<vmem>>, vector<1x1x32xf32>
    %345 = vector.shape_cast %344 : vector<1x1x32xf32> to vector<1x32xf32>
    %346 = vector.broadcast %345 : vector<1x32xf32> to vector<32x32xf32>
    %347 = arith.addf %343, %346 : vector<32x32xf32>
    %c1_100 = arith.constant 1 : index
    %c0_101 = arith.constant 0 : index
    %c0_102 = arith.constant 0 : index
    %348 = vector.load %arg10[%c1_100, %c0_101, %c0_102] : memref<2x1x32xf32, #tpu.memory_space<vmem>>, vector<1x1x32xf32>
    %349 = vector.shape_cast %348 : vector<1x1x32xf32> to vector<1x32xf32>
    %c1_103 = arith.constant 1 : index
    %c0_104 = arith.constant 0 : index
    %c0_105 = arith.constant 0 : index
    %350 = vector.load %arg11[%c1_103, %c0_104, %c0_105] : memref<2x1x32xf32, #tpu.memory_space<vmem>>, vector<1x1x32xf32>
    %351 = vector.shape_cast %350 : vector<1x1x32xf32> to vector<1x32xf32>
    %cst_106 = arith.constant dense<0.000000e+00> : vector<32xf32>
    %352 = vector.multi_reduction <add>, %347, %cst_106 [1] : vector<32x32xf32> to vector<32xf32>
    %353 = vector.shape_cast %352 : vector<32xf32> to vector<32x1xf32>
    %cst_107 = arith.constant 3.200000e+01 : f32
    %354 = vector.broadcast %cst_107 : f32 to vector<32x1xf32>
    %355 = arith.divf %353, %354 : vector<32x1xf32>
    %356 = vector.broadcast %355 : vector<32x1xf32> to vector<32x32xf32>
    %357 = arith.subf %347, %356 : vector<32x32xf32>
    %358 = arith.mulf %357, %357 : vector<32x32xf32>
    %cst_108 = arith.constant dense<0.000000e+00> : vector<32xf32>
    %359 = vector.multi_reduction <add>, %358, %cst_108 [1] : vector<32x32xf32> to vector<32xf32>
    %360 = vector.shape_cast %359 : vector<32xf32> to vector<32x1xf32>
    %cst_109 = arith.constant 3.200000e+01 : f32
    %361 = vector.broadcast %cst_109 : f32 to vector<32x1xf32>
    %362 = arith.divf %360, %361 : vector<32x1xf32>
    %363 = vector.broadcast %355 : vector<32x1xf32> to vector<32x32xf32>
    %364 = arith.subf %347, %363 : vector<32x32xf32>
    %cst_110 = arith.constant 9.99999997E-7 : f32
    %365 = vector.broadcast %cst_110 : f32 to vector<32x1xf32>
    %366 = arith.addf %362, %365 : vector<32x1xf32>
    %367 = math.rsqrt %366 : vector<32x1xf32>
    %368 = vector.broadcast %367 : vector<32x1xf32> to vector<32x32xf32>
    %369 = arith.mulf %364, %368 : vector<32x32xf32>
    %370 = vector.broadcast %349 : vector<1x32xf32> to vector<32x32xf32>
    %371 = arith.mulf %369, %370 : vector<32x32xf32>
    %372 = vector.broadcast %351 : vector<1x32xf32> to vector<32x32xf32>
    %373 = arith.addf %371, %372 : vector<32x32xf32>
    %c1_111 = arith.constant 1 : index
    %c0_112 = arith.constant 0 : index
    %c0_113 = arith.constant 0 : index
    %374 = vector.load %arg12[%c1_111, %c0_112, %c0_113] : memref<2x32x128xbf16, #tpu.memory_space<vmem>>, vector<1x32x128xbf16>
    %375 = vector.shape_cast %374 : vector<1x32x128xbf16> to vector<32x128xbf16>
    %376 = arith.truncf %373 : vector<32x32xf32> to vector<32x32xbf16>
    %cst_114 = arith.constant dense<0.000000e+00> : vector<32x128xf32>
    %377 = tpu.matmul %376, %375, %cst_114 {dimension_numbers = #tpu.dot_dimension_numbers<[1], [0], [0], [1], [0, 0, 1, 1], [], []>} : vector<32x32xbf16>, vector<32x128xbf16>, vector<32x128xf32> -> vector<32x128xf32>
    %c1_115 = arith.constant 1 : index
    %c0_116 = arith.constant 0 : index
    %c0_117 = arith.constant 0 : index
    %378 = vector.load %arg13[%c1_115, %c0_116, %c0_117] : memref<2x1x128xf32, #tpu.memory_space<vmem>>, vector<1x1x128xf32>
    %379 = vector.shape_cast %378 : vector<1x1x128xf32> to vector<1x128xf32>
    %380 = vector.broadcast %379 : vector<1x128xf32> to vector<32x128xf32>
    %381 = arith.addf %377, %380 : vector<32x128xf32>
    %cst_118 = arith.constant 5.000000e-01 : f32
    %382 = vector.broadcast %cst_118 : f32 to vector<32x128xf32>
    %383 = arith.mulf %382, %381 : vector<32x128xf32>
    %cst_119 = arith.constant 0.707106769 : f32
    %384 = vector.broadcast %cst_119 : f32 to vector<32x128xf32>
    %385 = arith.mulf %381, %384 : vector<32x128xf32>
    %cst_120 = arith.constant -3.8325069 : f32
    %cst_121 = arith.constant 3.8325069 : f32
    %386 = vector.broadcast %cst_120 : f32 to vector<32x128xf32>
    %387 = arith.maximumf %386, %385 : vector<32x128xf32>
    %388 = vector.broadcast %cst_121 : f32 to vector<32x128xf32>
    %389 = arith.minimumf %388, %387 : vector<32x128xf32>
    %390 = arith.mulf %389, %389 : vector<32x128xf32>
    %cst_122 = arith.constant -2.72614237E-10 : f32
    %391 = vector.broadcast %cst_122 : f32 to vector<32x128xf32>
    %392 = arith.mulf %391, %390 : vector<32x128xf32>
    %cst_123 = arith.constant 2.77068146E-8 : f32
    %393 = vector.broadcast %cst_123 : f32 to vector<32x128xf32>
    %394 = arith.addf %392, %393 : vector<32x128xf32>
    %395 = arith.mulf %394, %390 : vector<32x128xf32>
    %cst_124 = arith.constant -2.10102394E-6 : f32
    %396 = vector.broadcast %cst_124 : f32 to vector<32x128xf32>
    %397 = arith.addf %395, %396 : vector<32x128xf32>
    %398 = arith.mulf %397, %390 : vector<32x128xf32>
    %cst_125 = arith.constant -5.69250624E-5 : f32
    %399 = vector.broadcast %cst_125 : f32 to vector<32x128xf32>
    %400 = arith.addf %398, %399 : vector<32x128xf32>
    %401 = arith.mulf %400, %390 : vector<32x128xf32>
    %cst_126 = arith.constant -7.34990637E-4 : f32
    %402 = vector.broadcast %cst_126 : f32 to vector<32x128xf32>
    %403 = arith.addf %401, %402 : vector<32x128xf32>
    %404 = arith.mulf %403, %390 : vector<32x128xf32>
    %cst_127 = arith.constant -2.954600e-03 : f32
    %405 = vector.broadcast %cst_127 : f32 to vector<32x128xf32>
    %406 = arith.addf %404, %405 : vector<32x128xf32>
    %407 = arith.mulf %406, %390 : vector<32x128xf32>
    %cst_128 = arith.constant -0.0160960332 : f32
    %408 = vector.broadcast %cst_128 : f32 to vector<32x128xf32>
    %409 = arith.addf %407, %408 : vector<32x128xf32>
    %cst_129 = arith.constant -1.45660715E-5 : f32
    %410 = vector.broadcast %cst_129 : f32 to vector<32x128xf32>
    %411 = arith.mulf %410, %390 : vector<32x128xf32>
    %cst_130 = arith.constant -2.13374049E-4 : f32
    %412 = vector.broadcast %cst_130 : f32 to vector<32x128xf32>
    %413 = arith.addf %411, %412 : vector<32x128xf32>
    %414 = arith.mulf %413, %390 : vector<32x128xf32>
    %cst_131 = arith.constant -0.00168282702 : f32
    %415 = vector.broadcast %cst_131 : f32 to vector<32x128xf32>
    %416 = arith.addf %414, %415 : vector<32x128xf32>
    %417 = arith.mulf %416, %390 : vector<32x128xf32>
    %cst_132 = arith.constant -0.00737332925 : f32
    %418 = vector.broadcast %cst_132 : f32 to vector<32x128xf32>
    %419 = arith.addf %417, %418 : vector<32x128xf32>
    %420 = arith.mulf %419, %390 : vector<32x128xf32>
    %cst_133 = arith.constant -0.0142647391 : f32
    %421 = vector.broadcast %cst_133 : f32 to vector<32x128xf32>
    %422 = arith.addf %420, %421 : vector<32x128xf32>
    %423 = arith.mulf %389, %409 : vector<32x128xf32>
    %424 = tpu.reciprocal %422 : vector<32x128xf32> -> vector<32x128xf32>
    %425 = arith.mulf %423, %424 : vector<32x128xf32>
    %cst_134 = arith.constant 1.000000e+00 : f32
    %426 = vector.broadcast %cst_134 : f32 to vector<32x128xf32>
    %427 = arith.addf %426, %425 : vector<32x128xf32>
    %428 = arith.mulf %383, %427 : vector<32x128xf32>
    %c1_135 = arith.constant 1 : index
    %c0_136 = arith.constant 0 : index
    %c0_137 = arith.constant 0 : index
    %429 = vector.load %arg14[%c1_135, %c0_136, %c0_137] : memref<2x128x32xbf16, #tpu.memory_space<vmem>>, vector<1x128x32xbf16>
    %430 = vector.shape_cast %429 : vector<1x128x32xbf16> to vector<128x32xbf16>
    %431 = arith.truncf %428 : vector<32x128xf32> to vector<32x128xbf16>
    %cst_138 = arith.constant dense<0.000000e+00> : vector<32x32xf32>
    %432 = tpu.matmul %431, %430, %cst_138 {dimension_numbers = #tpu.dot_dimension_numbers<[1], [0], [0], [1], [0, 0, 1, 1], [], []>} : vector<32x128xbf16>, vector<128x32xbf16>, vector<32x32xf32> -> vector<32x32xf32>
    %433 = arith.addf %347, %432 : vector<32x32xf32>
    %c1_139 = arith.constant 1 : index
    %c0_140 = arith.constant 0 : index
    %c0_141 = arith.constant 0 : index
    %434 = vector.load %arg15[%c1_139, %c0_140, %c0_141] : memref<2x1x32xf32, #tpu.memory_space<vmem>>, vector<1x1x32xf32>
    %435 = vector.shape_cast %434 : vector<1x1x32xf32> to vector<1x32xf32>
    %436 = vector.broadcast %435 : vector<1x32xf32> to vector<32x32xf32>
    %437 = arith.addf %433, %436 : vector<32x32xf32>
    %c0_142 = arith.constant 0 : index
    %c0_143 = arith.constant 0 : index
    %438 = vector.load %arg16[%c0_142, %c0_143] : memref<1x32xf32, #tpu.memory_space<vmem>>, vector<1x32xf32>
    %c0_144 = arith.constant 0 : index
    %c0_145 = arith.constant 0 : index
    %439 = vector.load %arg17[%c0_144, %c0_145] : memref<1x32xf32, #tpu.memory_space<vmem>>, vector<1x32xf32>
    %cst_146 = arith.constant dense<0.000000e+00> : vector<32xf32>
    %440 = vector.multi_reduction <add>, %437, %cst_146 [1] : vector<32x32xf32> to vector<32xf32>
    %441 = vector.shape_cast %440 : vector<32xf32> to vector<32x1xf32>
    %cst_147 = arith.constant 3.200000e+01 : f32
    %442 = vector.broadcast %cst_147 : f32 to vector<32x1xf32>
    %443 = arith.divf %441, %442 : vector<32x1xf32>
    %444 = vector.broadcast %443 : vector<32x1xf32> to vector<32x32xf32>
    %445 = arith.subf %437, %444 : vector<32x32xf32>
    %446 = arith.mulf %445, %445 : vector<32x32xf32>
    %cst_148 = arith.constant dense<0.000000e+00> : vector<32xf32>
    %447 = vector.multi_reduction <add>, %446, %cst_148 [1] : vector<32x32xf32> to vector<32xf32>
    %448 = vector.shape_cast %447 : vector<32xf32> to vector<32x1xf32>
    %cst_149 = arith.constant 3.200000e+01 : f32
    %449 = vector.broadcast %cst_149 : f32 to vector<32x1xf32>
    %450 = arith.divf %448, %449 : vector<32x1xf32>
    %451 = vector.broadcast %443 : vector<32x1xf32> to vector<32x32xf32>
    %452 = arith.subf %437, %451 : vector<32x32xf32>
    %cst_150 = arith.constant 9.99999997E-7 : f32
    %453 = vector.broadcast %cst_150 : f32 to vector<32x1xf32>
    %454 = arith.addf %450, %453 : vector<32x1xf32>
    %455 = math.rsqrt %454 : vector<32x1xf32>
    %456 = vector.broadcast %455 : vector<32x1xf32> to vector<32x32xf32>
    %457 = arith.mulf %452, %456 : vector<32x32xf32>
    %458 = vector.broadcast %438 : vector<1x32xf32> to vector<32x32xf32>
    %459 = arith.mulf %457, %458 : vector<32x32xf32>
    %460 = vector.broadcast %439 : vector<1x32xf32> to vector<32x32xf32>
    %461 = arith.addf %459, %460 : vector<32x32xf32>
    %c0_151 = arith.constant 0 : index
    %c0_152 = arith.constant 0 : index
    %462 = vector.load %arg18[%c0_151, %c0_152] : memref<32x32xf32, #tpu.memory_space<vmem>>, vector<32x32xf32>
    tpu.vector_store %arg18[%c0_151, %c0_152], %461 {strides = array<i32>} : memref<32x32xf32, #tpu.memory_space<vmem>>, vector<32x32xf32>,
    return
  }
  func.func @transform_0(%arg0: i32) -> (i32, i32) {
    %c0_i32 = arith.constant 0 : i32
    %c0_i32_0 = arith.constant 0 : i32
    return %arg0, %c0_i32 : i32, i32
  }
  func.func @transform_1(%arg0: i32) -> (i32, i32) {
    %c0_i32 = arith.constant 0 : i32
    %c0_i32_0 = arith.constant 0 : i32
    return %arg0, %c0_i32 : i32, i32
  }
  func.func @transform_2(%arg0: i32) -> (i32, i32) {
    %c0_i32 = arith.constant 0 : i32
    %c0_i32_0 = arith.constant 0 : i32
    %c0_i32_1 = arith.constant 0 : i32
    return %c0_i32, %c0_i32_0 : i32, i32
  }
  func.func @transform_3(%arg0: i32) -> (i32, i32) {
    %c0_i32 = arith.constant 0 : i32
    %c0_i32_0 = arith.constant 0 : i32
    %c0_i32_1 = arith.constant 0 : i32
    return %c0_i32, %c0_i32_0 : i32, i32
  }
  func.func @transform_4(%arg0: i32) -> (i32, i32, i32) {
    %c0_i32 = arith.constant 0 : i32
    %c0_i32_0 = arith.constant 0 : i32
    %c0_i32_1 = arith.constant 0 : i32
    %c0_i32_2 = arith.constant 0 : i32
    return %c0_i32, %c0_i32_0, %c0_i32_1 : i32, i32, i32
  }
  func.func @transform_5(%arg0: i32) -> (i32, i32, i32) {
    %c0_i32 = arith.constant 0 : i32
    %c0_i32_0 = arith.constant 0 : i32
    %c0_i32_1 = arith.constant 0 : i32
    %c0_i32_2 = arith.constant 0 : i32
    return %c0_i32, %c0_i32_0, %c0_i32_1 : i32, i32, i32
  }
  func.func @transform_6(%arg0: i32) -> (i32, i32, i32) {
    %c0_i32 = arith.constant 0 : i32
    %c0_i32_0 = arith.constant 0 : i32
    %c0_i32_1 = arith.constant 0 : i32
    %c0_i32_2 = arith.constant 0 : i32
    return %c0_i32, %c0_i32_0, %c0_i32_1 : i32, i32, i32
  }
  func.func @transform_7(%arg0: i32) -> (i32, i32, i32) {
    %c0_i32 = arith.constant 0 : i32
    %c0_i32_0 = arith.constant 0 : i32
    %c0_i32_1 = arith.constant 0 : i32
    %c0_i32_2 = arith.constant 0 : i32
    return %c0_i32, %c0_i32_0, %c0_i32_1 : i32, i32, i32
  }
  func.func @transform_8(%arg0: i32) -> (i32, i32, i32) {
    %c0_i32 = arith.constant 0 : i32
    %c0_i32_0 = arith.constant 0 : i32
    %c0_i32_1 = arith.constant 0 : i32
    %c0_i32_2 = arith.constant 0 : i32
    return %c0_i32, %c0_i32_0, %c0_i32_1 : i32, i32, i32
  }
  func.func @transform_9(%arg0: i32) -> (i32, i32, i32) {
    %c0_i32 = arith.constant 0 : i32
    %c0_i32_0 = arith.constant 0 : i32
    %c0_i32_1 = arith.constant 0 : i32
    %c0_i32_2 = arith.constant 0 : i32
    return %c0_i32, %c0_i32_0, %c0_i32_1 : i32, i32, i32
  }
  func.func @transform_10(%arg0: i32) -> (i32, i32, i32) {
    %c0_i32 = arith.constant 0 : i32
    %c0_i32_0 = arith.constant 0 : i32
    %c0_i32_1 = arith.constant 0 : i32
    %c0_i32_2 = arith.constant 0 : i32
    return %c0_i32, %c0_i32_0, %c0_i32_1 : i32, i32, i32
  }
  func.func @transform_11(%arg0: i32) -> (i32, i32, i32) {
    %c0_i32 = arith.constant 0 : i32
    %c0_i32_0 = arith.constant 0 : i32
    %c0_i32_1 = arith.constant 0 : i32
    %c0_i32_2 = arith.constant 0 : i32
    return %c0_i32, %c0_i32_0, %c0_i32_1 : i32, i32, i32
  }
  func.func @transform_12(%arg0: i32) -> (i32, i32, i32) {
    %c0_i32 = arith.constant 0 : i32
    %c0_i32_0 = arith.constant 0 : i32
    %c0_i32_1 = arith.constant 0 : i32
    %c0_i32_2 = arith.constant 0 : i32
    return %c0_i32, %c0_i32_0, %c0_i32_1 : i32, i32, i32
  }
  func.func @transform_13(%arg0: i32) -> (i32, i32, i32) {
    %c0_i32 = arith.constant 0 : i32
    %c0_i32_0 = arith.constant 0 : i32
    %c0_i32_1 = arith.constant 0 : i32
    %c0_i32_2 = arith.constant 0 : i32
    return %c0_i32, %c0_i32_0, %c0_i32_1 : i32, i32, i32
  }
  func.func @transform_14(%arg0: i32) -> (i32, i32, i32) {
    %c0_i32 = arith.constant 0 : i32
    %c0_i32_0 = arith.constant 0 : i32
    %c0_i32_1 = arith.constant 0 : i32
    %c0_i32_2 = arith.constant 0 : i32
    return %c0_i32, %c0_i32_0, %c0_i32_1 : i32, i32, i32
  }
  func.func @transform_15(%arg0: i32) -> (i32, i32) {
    %c0_i32 = arith.constant 0 : i32
    %c0_i32_0 = arith.constant 0 : i32
    %c0_i32_1 = arith.constant 0 : i32
    return %c0_i32, %c0_i32_0 : i32, i32
  }
  func.func @transform_16(%arg0: i32) -> (i32, i32) {
    %c0_i32 = arith.constant 0 : i32
    %c0_i32_0 = arith.constant 0 : i32
    %c0_i32_1 = arith.constant 0 : i32
    return %c0_i32, %c0_i32_0 : i32, i32
  }
  func.func @transform_17(%arg0: i32) -> (i32, i32) {
    %c0_i32 = arith.constant 0 : i32
    %c0_i32_0 = arith.constant 0 : i32
    return %arg0, %c0_i32 : i32, i32
  }
}

</mosaic_0001>

<bundles_post_ra>
// kernel: vit_forward.1
= control target key start
LH: loop header
LB: loop body
LE: loop exit
PB: predicated region body
PF: predicated region fallthrough
CT: control target
= control target key end

     0   :  { %s5943_s0 = inlined_call_operand.vmem [shape: bf16[32,192], index: 0, kind: input, shape index: {}]   ;;  %s5944_s1 = inlined_call_operand.vmem [shape: f32[32,32], index: 1, kind: input, shape index: {}]   ;;  %s5945_s2 = inlined_call_operand.vmem [shape: bf16[192,32], index: 2, kind: input, shape index: {}]   ;;  %s5946_s3 = inlined_call_operand.vmem [shape: f32[1,32], index: 3, kind: input, shape index: {}]   ;;  %s5947_s4 = inlined_call_operand.vmem [shape: f32[2,1,32], index: 4, kind: input, shape index: {}]   ;;  %s5948_s5 = inlined_call_operand.vmem [shape: f32[2,1,32], index: 5, kind: input, shape index: {}]   ;;  %s5949_s6 = inlined_call_operand.vmem [shape: bf16[2,32,96], index: 6, kind: input, shape index: {}]   ;;  %s5950_s7 = inlined_call_operand.vmem [shape: bf16[2,32,32], index: 7, kind: input, shape index: {}]   ;;  %s5951_s8 = inlined_call_operand.vmem [shape: f32[2,1,32], index: 8, kind: input, shape index: {}]   ;;  %s5952_s9 = inlined_call_operand.vmem [shape: f32[2,1,32], index: 9, kind: input, shape index: {}]   ;;  %s5953_s10 = inlined_call_operand.vmem [shape: f32[2,1,32], index: 10, kind: input, shape index: {}]   ;;  %s5954_s11 = inlined_call_operand.vmem [shape: bf16[2,32,128], index: 11, kind: input, shape index: {}]   ;;  %s5955_s12 = inlined_call_operand.vmem [shape: f32[2,1,128], index: 12, kind: input, shape index: {}]   ;;  %s5956_s13 = inlined_call_operand.vmem [shape: bf16[2,128,32], index: 13, kind: input, shape index: {}]   ;;  %s5957_s14 = inlined_call_operand.vmem [shape: f32[2,1,32], index: 14, kind: input, shape index: {}]   ;;  %s5958_s15 = inlined_call_operand.vmem [shape: f32[1,32], index: 15, kind: input, shape index: {}]   ;;  %s5959_s16 = inlined_call_operand.vmem [shape: f32[1,32], index: 16, kind: input, shape index: {}]   ;;  %s5960_s17 = inlined_call_operand.hbm [shape: f32[32,32], index: 17, kind: output, shape index: {}]  }
   0x1   :  { %5963 = sst [smem:[#allocation5_spill]] %s5943_s0 }
   0x2   :  { %5964 = sst [smem:[#allocation6_spill]] %s5944_s1 }
   0x3   :  { %v4442_v0 = vld [vmem:[%s5945_s2] sm:$0xff]   ;;  %v4696_v1 = vmov 0   ;;  %v4443_v2 = vld [vmem:[%s5945_s2 + $0x8] sm:$0xff]   ;;  %v4444_v3 = vld [vmem:[%s5945_s2 + $0x10] sm:$0xff]   ;;  %vm183_vm0 = vcmask 523264   ;;  %s5965_s1 = sld [smem:[#allocation5_spill]] }
   0x4   :  { %190 = vmatprep.subr.bf16.mxu0 %v4696_v1  ;;  %v4445_v4 = vld [vmem:[%s5945_s2 + $0x18] sm:$0xff]   ;;  %v4446_v6 = vld [vmem:[%s5945_s2 + $0x20] sm:$0xff]   ;;  %v4447_v7 = vld [vmem:[%s5945_s2 + $0x28] sm:$0xff]  }
   0x5   :  { %191 = vmatpush1.bf16.msra.mxu0 %v4442_v0  ;;  %v4448_v8 = vld [vmem:[%s5945_s2 + $0x30] sm:$0xff]   ;;  %v4449_v9 = vld [vmem:[%s5945_s2 + $0x38] sm:$0xff]   ;;  %v4450_v10 = vld [vmem:[%s5945_s2 + $0x40] sm:$0xff]  }
   0x6   :  { %192 = vmatprep.subr.bf16.mxu0 %v4696_v1 }
   0x9   :  { %193 = vmatpush1.bf16.msra.mxu0 %v4443_v2  ;;  %v4456_v5 = vld [vmem:[%s5965_s1 + $0x4] ss:$8 sps:$4 sm:$0xff]  }
   0xa   :  { %194 = vmatprep.subr.bf16.mxu0 %v4696_v1  ;;  %3788 = vmatprep.mubr.msk.bf16.mxu0 %vm183_vm0, %v4456_v5 }
   0xd   :  { %195 = vmatpush1.bf16.msra.mxu0 %v4444_v3 }
   0xe   :  { %196 = vmatprep.subr.bf16.mxu0 %v4696_v1 }
  0x11   :  { %197 = vmatpush1.bf16.msra.mxu0 %v4445_v4 }
  0x12   :  { %198 = vmatprep.subr.bf16.mxu0 %v4696_v1 }
  0x15   :  { %199 = vmatpush1.bf16.msra.mxu0 %v4446_v6 }
  0x16   :  { %200 = vmatprep.subr.bf16.mxu0 %v4696_v1 }
  0x19   :  { %201 = vmatpush1.bf16.msra.mxu0 %v4447_v7 }
  0x1a   :  { %202 = vmatprep.subr.bf16.mxu0 %v4696_v1 }
  0x1d   :  { %203 = vmatpush1.bf16.msra.mxu0 %v4448_v8 }
  0x1e   :  { %204 = vmatprep.subr.bf16.mxu0 %v4696_v1 }
  0x21   :  { %205 = vmatpush1.bf16.msra.mxu0 %v4449_v9 }
  0x22   :  { %206 = vmatprep.subr.bf16.mxu0 %v4696_v1 }
  0x23   :  { %22 = vsyncpa [#allocation3], 0  ;;  %v4451_v11 = vld [vmem:[%s5945_s2 + $0x48] sm:$0xff]   ;;  %v4452_v12 = vld [vmem:[%s5945_s2 + $0x50] sm:$0xff]   ;;  %s5966_s30 = sld [smem:[#allocation6_spill]]  ;;  %vm249_vm1 = vcmask 261120  }
  0x24   :  { %v4453_v13 = vld [vmem:[%s5945_s2 + $0x58] sm:$0xff]   ;;  %v4454_v14 = vld [vmem:[%s5965_s1] ss:$8 sps:$4 sm:$0xff]   ;;  %s4698_s29 = smov 112   ;;  %s4699_s0 = smov 120   ;;  %vm4700_vm2 = vmmov 0  }
  0x25   :  { %207 = vmatpush1.bf16.msra.mxu0 %v4450_v10  ;;  %v4457_v15 = vld [vmem:[%s5965_s1 + $0x14] ss:$8 sps:$4 sm:$0xff]   ;;  %v4459_v16 = vld [vmem:[%s5965_s1 + $0x10] ss:$8 sps:$4 sm:$0xff]   ;;  %v3771_v17 = vld [vmem:[%s5946_s3] ss:$0 sm:$0xff] }
  0x26   :  { %208 = vmatprep.subr.bf16.mxu0 %v4696_v1  ;;  %v4460_v62 = vld [vmem:[%s5949_s6] sm:$0xff]   ;;  %v4461_v63 = vld [vmem:[%s5949_s6 + $0x8] sm:$0xff]   ;;  %s4702_s18 = smov 96   ;;  %vm447_vm3 = vcmask 64512   ;;  %vm845_vm4 = vcmask 130048   ;;  %s4703_s19 = smov 64  }
  0x27   :  { %s4704_s3 = smov 8   ;;  %s4705_s1 = smov 16   ;;  %vm1434_vm5 = vcmask 195584  }
  0x28   :  { %s4706_s20 = smov 24  }
  0x29   :  { %209 = vmatpush1.bf16.msra.mxu0 %v4451_v11  ;;  %v239_v19 = vld [vmem:[%s5966_s30] sm:$0xff]  ;;  %v240_v23 = vld [vmem:[%s5966_s30 + $0x8] sm:$0xff]  ;;  %v241_v30 = vld [vmem:[%s5966_s30 + $0x10] sm:$0xff] }
  0x2a   :  { %210 = vmatprep.subr.bf16.mxu0 %v4696_v1  ;;  %v242_v35 = vld [vmem:[%s5966_s30 + $0x18] sm:$0xff]  ;;  %s4701_s30 = smov 104  }
  0x2d   :  { %211 = vmatpush1.bf16.msra.mxu0 %v4452_v12 }
  0x2e   :  { %212 = vmatprep.subr.bf16.mxu0 %v4696_v1 }
  0x31   :  { %213 = vmatpush1.bf16.msra.mxu0 %v4453_v13 }
  0x32   :  { %4029 = vmatprep.subr.bf16.mxu0 %v4460_v62 }
  0x34   :  { %223 = vmatmul.mubr.bf16.vlgmr.msra.gmra.mrb[0].mxu0 %v4454_v14  ;;  %v3790_v14 = vld [vmem:[%s5947_s4] ss:$0 sm:$0xff] }
  0x35   :  { %3789 = vmatprep.mubr.msk.bf16.mxu0 %vm183_vm0, %v4457_v15  ;;  %4030 = vmatpush3.bf16.msra.mxu0 %v4460_v62 }
  0x36   :  { %4031 = vmatprep.subr.bf16.mxu0 %v4461_v63 }
  0x39   :  { %4032 = vmatpush3.bf16.msra.mxu0 %v4461_v63 }
  0x3c   :  { %231 = vmatmul.mubr.bf16.gmra.mrb[4].mxu0 %v4459_v16 }
 0x107   :  { %v224_v18 = vpop.f32.mrb[0].mxu0 }
 0x108   :  { %v225_v20 = vadd.f32 %v3771_v17, %v224_v18  ;;  %v226_v21 = vpop.f32.mrb[1].mxu0  ;;  %v3791_v18 = vld [vmem:[%s5948_s5] ss:$0 sm:$0xff] }
 0x109   :  { %v227_v22 = vpop.f32.mrb[2].mxu0 }
 0x10a   :  { %v4858_v24 = vadd.f32 %v239_v19, %v225_v20  ;;  %v228_v25 = vadd.f32 %v3771_v17, %v227_v22  ;;  %v229_v26 = vpop.f32.mrb[3].mxu0 }
 0x10c   :  { %v4860_v27 = vadd.f32 %v240_v23, %v228_v25  ;;  %v250_v28 = vsel %vm249_vm1, %v4858_v24, 0.0 }
 0x10d   :  { %251 = vadd.xlane.f32.xlu0 %v250_v28 }
 0x10e   :  { %v253_v33 = vsel %vm249_vm1, %v4860_v27, 0.0 }
 0x10f   :  { %v232_v29 = vpop.f32.mrb[4].mxu0 }
 0x110   :  { %v233_v31 = vadd.f32 %v3771_v17, %v232_v29  ;;  %v234_v32 = vpop.f32.mrb[5].mxu0 }
 0x111   :  { %v235_v34 = vpop.f32.mrb[6].mxu0  ;;  %254 = vadd.xlane.f32.xlu0 %v253_v33 }
 0x112   :  { %v4872_v36 = vadd.f32 %v241_v30, %v233_v31  ;;  %v236_v37 = vadd.f32 %v3771_v17, %v235_v34  ;;  %v237_v38 = vpop.f32.mrb[7].mxu0 }
 0x114   :  { %v4874_v39 = vadd.f32 %v242_v35, %v236_v37  ;;  %v256_v40 = vsel %vm249_vm1, %v4872_v36, 0.0  ;;  %v4697_v37 = vmov 0.0  }
 0x115   :  { %257 = vadd.xlane.f32.xlu1 %v256_v40  ;;  %4037 = vmatprep.subr.bf16.mxu1 %v4697_v37 }
 0x116   :  { %v259_v41 = vsel %vm249_vm1, %v4874_v39, 0.0  ;;  %4073 = vmatprep.subr.bf16.mxu0 %v4697_v37  ;;  %4039 = vmatprep.mubr.msk.bf16.mxu1 %vm4700_vm2, %v4697_v37 }
 0x119   :  { %260 = vadd.xlane.f32.xlu1 %v259_v41 }
 0x19a   :  { %v252_v42 = vpop.xlane.xlu0 %251 }
 0x19b   :  { %v263_v43 = vmul.f32 0.03125, %v252_v42 }
 0x19d   :  { %v267_v44 = vsub.f32 %v4858_v24, %v263_v43 }
 0x19e   :  { %v255_v45 = vpop.xlane.xlu0 %254 }
 0x19f   :  { %v264_v46 = vmul.f32 0.03125, %v255_v45  ;;  %v271_v47 = vmul.f32 %v267_v44, %v267_v44 }
 0x1a1   :  { %v268_v48 = vsub.f32 %v4860_v27, %v264_v46  ;;  %v275_v49 = vsel %vm249_vm1, %v271_v47, 0.0 }
 0x1a2   :  { %v258_v50 = vpop.xlane.xlu1 %257  ;;  %276 = vadd.xlane.f32.xlu0 %v275_v49 }
 0x1a3   :  { %v265_v51 = vmul.f32 0.03125, %v258_v50  ;;  %v272_v52 = vmul.f32 %v268_v48, %v268_v48 }
 0x1a5   :  { %v269_v53 = vsub.f32 %v4872_v36, %v265_v51  ;;  %v278_v54 = vsel %vm249_vm1, %v272_v52, 0.0 }
 0x1a6   :  { %v261_v55 = vpop.xlane.xlu1 %260  ;;  %279 = vadd.xlane.f32.xlu1 %v278_v54 }
 0x1a7   :  { %v266_v56 = vmul.f32 0.03125, %v261_v55  ;;  %v273_v57 = vmul.f32 %v269_v53, %v269_v53 }
 0x1a9   :  { %v270_v58 = vsub.f32 %v4874_v39, %v266_v56  ;;  %v281_v59 = vsel %vm249_vm1, %v273_v57, 0.0 }
 0x1aa   :  { %282 = vadd.xlane.f32.xlu0 %v281_v59 }
 0x1ab   :  { %v274_v60 = vmul.f32 %v270_v58, %v270_v58 }
 0x1ad   :  { %v284_v61 = vsel %vm249_vm1, %v274_v60, 0.0 }
 0x1ae   :  { %285 = vadd.xlane.f32.xlu1 %v284_v61 }
 0x22f   :  { %v277_v0 = vpop.xlane.xlu0 %276 }
 0x230   :  { %v287_v1 = vmul.f32 0.03125, %v277_v0 }
 0x232   :  { %v291_v2 = vadd.f32 1e-06, %v287_v1 }
 0x233   :  { %v280_v3 = vpop.xlane.xlu1 %279 }
 0x234   :  { %4488 = vrsqrt.f32 %v291_v2  ;;  %v288_v4 = vmul.f32 0.03125, %v280_v3 }
 0x236   :  { %v292_v5 = vadd.f32 1e-06, %v288_v4 }
 0x237   :  { %v283_v6 = vpop.xlane.xlu0 %282 }
 0x238   :  { %4490 = vrsqrt.f32 %v292_v5  ;;  %v289_v7 = vmul.f32 0.03125, %v283_v6 }
 0x23a   :  { %v293_v8 = vadd.f32 1e-06, %v289_v7 }
 0x23b   :  { %v286_v9 = vpop.xlane.xlu1 %285 }
 0x23c   :  { %4492 = vrsqrt.f32 %v293_v8  ;;  %v290_v10 = vmul.f32 0.03125, %v286_v9 }
 0x23e   :  { %v4489_v11 = vpop.eup %4488  ;;  %v294_v12 = vadd.f32 1e-06, %v290_v10 }
 0x23f   :  { %v299_v13 = vmul.f32 %v4489_v11, %v267_v44 }
 0x240   :  { %4494 = vrsqrt.f32 %v294_v12 }
 0x241   :  { %v309_v17 = vmul.f32 %v3790_v14, %v299_v13 }
 0x242   :  { %v4491_v15 = vpop.eup %4490 }
 0x243   :  { %v300_v16 = vmul.f32 %v4491_v15, %v268_v48  ;;  %v319_v22 = vadd.f32 %v3791_v18, %v309_v17 }
 0x245   :  { %v310_v19 = vmul.f32 %v3790_v14, %v300_v16 }
 0x246   :  { %v4493_v20 = vpop.eup %4492 }
 0x247   :  { %v301_v21 = vmul.f32 %v4493_v20, %v269_v53  ;;  %v320_v23 = vadd.f32 %v3791_v18, %v310_v19 }
 0x249   :  { %v327_v25 = vpack.c.bf16 %v320_v23, %v319_v22  ;;  %v311_v29 = vmul.f32 %v3790_v14, %v301_v21 }
 0x24a   :  { %v4495_v26 = vpop.eup %4494 }
 0x24b   :  { %v302_v28 = vmul.f32 %v4495_v26, %v270_v58  ;;  %4033 = vmatprep.mubr.msk.bf16.mxu0 %vm249_vm1, %v327_v25  ;;  %v321_v31 = vadd.f32 %v3791_v18, %v311_v29 }
 0x24d   :  { %v312_v30 = vmul.f32 %v3790_v14, %v302_v28 }
 0x24f   :  { %v322_v32 = vadd.f32 %v3791_v18, %v312_v30 }
 0x251   :  { %v328_v33 = vpack.c.bf16 %v322_v32, %v321_v31 }
 0x253   :  { %4034 = vmatmul.mubr.msk.bf16.vlgmr.msra.gmra.mrb[8].mxu0 %vm249_vm1, %v328_v33 }
 0x254   :  { %4075 = vmatprep.mubr.msk.bf16.mxu0 %vm4700_vm2, %v4697_v37 }
 0x326   :  { %v4035_v34 = vpop.f32.mrb[8].mxu0 }
 0x327   :  { %v381_v35 = vpop.f32.mrb[9].mxu0 }
 0x328   :  { %v4036_v38 = vpop.f32.mrb[10].mxu0 }
 0x329   :  { %v384_v40 = vpop.f32.mrb[11].mxu0  ;;  %v4342_v41 = vpack.i.bf16 %v4036_v38, %v4035_v34  ;;  %v4904_v42 = vpack.c.bf16 %v4036_v38, %v4035_v34 }
 0x32a   :  { %v4327_v43 = vpack.i.bf16 %v384_v40, %v381_v35  ;;  %v4906_v44 = vpack.c.bf16 %v384_v40, %v381_v35 }
 0x32c   :  { %4328 = vrot.lane.b32.xlu1 %v4327_v43, %s4698_s29  ;;  %4323 = vrot.lane.b32.xlu0 %v4327_v43, %s4699_s0 }
 0x330   :  { %4333 = vrot.lane.b32.xlu1 %v4327_v43, %s4701_s30  ;;  %4343 = vrot.lane.b32.xlu0 %v4342_v41, %s4698_s29 }
 0x334   :  { %4338 = vrot.lane.b32.xlu1 %v4342_v41, %s4699_s0  ;;  %445 = vrot.lane.b32.xlu0 %v4906_v44, %s4702_s18 }
 0x338   :  { %4348 = vrot.lane.b32.xlu1 %v4342_v41, %s4701_s30 }
 0x39e   :  { %v4329_v45 = vpop.permute.xlu1 %4328  ;;  %v4324_v46 = vpop.permute.xlu0 %4323 }
 0x39f   :  { %v4331_v47 = vunpack.i.h.bf16 %v4329_v45  ;;  %v4330_v48 = vunpack.i.l.bf16 %v4329_v45  ;;  %v4326_v49 = vunpack.i.h.bf16 %v4324_v46  ;;  %v4325_v50 = vunpack.i.l.bf16 %v4324_v46 }
 0x3a1   :  { %v4920_v51 = vpack.c.bf16 %v4326_v49, %v4325_v50  ;;  %v4922_v52 = vpack.c.bf16 %v4331_v47, %v4330_v48 }
 0x3a2   :  { %v4334_v53 = vpop.permute.xlu1 %4333  ;;  %v4344_v54 = vpop.permute.xlu0 %4343 }
 0x3a3   :  { %v4336_v55 = vunpack.i.h.bf16 %v4334_v53  ;;  %v4335_v56 = vunpack.i.l.bf16 %v4334_v53  ;;  %496 = vrot.lane.b32.xlu1 %v4920_v51, %s4702_s18  ;;  %546 = vrot.lane.b32.xlu0 %v4922_v52, %s4702_s18  ;;  %v4346_v57 = vunpack.i.h.bf16 %v4344_v54  ;;  %v4345_v58 = vunpack.i.l.bf16 %v4344_v54 }
 0x3a5   :  { %v4928_v59 = vpack.c.bf16 %v4336_v55, %v4335_v56  ;;  %v4937_v2 = vpack.c.bf16 %v4346_v57, %v4345_v58 }
 0x3a6   :  { %v4339_v60 = vpop.permute.xlu1 %4338  ;;  %v446_v61 = vpop.permute.xlu0 %445 }
 0x3a7   :  { %v4341_v62 = vunpack.i.h.bf16 %v4339_v60  ;;  %v4340_v63 = vunpack.i.l.bf16 %v4339_v60  ;;  %596 = vrot.lane.b32.xlu1 %v4928_v59, %s4702_s18  ;;  %646 = vrot.lane.b32.xlu0 %v4904_v42, %s4702_s18  ;;  %v452_v0 = vsel %vm447_vm3, %v446_v61, 0 }
 0x3a8   :  { %4038 = vmatpush3.bf16.xpose.msra.mxu1 %v452_v0 }
 0x3a9   :  { %v4935_v1 = vpack.c.bf16 %v4341_v62, %v4340_v63  ;;  %4043 = vmatprep.subr.bf16.mxu1 %v4697_v37 }
 0x3aa   :  { %v4349_v3 = vpop.permute.xlu1 %4348 }
 0x3ab   :  { %v4351_v4 = vunpack.i.h.bf16 %v4349_v3  ;;  %v4350_v5 = vunpack.i.l.bf16 %v4349_v3  ;;  %696 = vrot.lane.b32.xlu1 %v4935_v1, %s4702_s18  ;;  %746 = vrot.lane.b32.xlu0 %v4937_v2, %s4702_s18 }
 0x3ad   :  { %v4944_v6 = vpack.c.bf16 %v4351_v4, %v4350_v5 }
 0x3af   :  { %796 = vrot.lane.b32.xlu1 %v4944_v6, %s4702_s18  ;;  %4040 = vmatmul.mubr.msk.bf16.vlgmr.msra.gmra.mrb[0].mxu1 %vm447_vm3, %v4906_v44 }
 0x3b0   :  { %4045 = vmatprep.mubr.msk.bf16.mxu1 %vm4700_vm2, %v4697_v37 }
 0x415   :  { %v497_v7 = vpop.permute.xlu1 %496  ;;  %v547_v8 = vpop.permute.xlu0 %546 }
 0x416   :  { %v502_v9 = vsel %vm447_vm3, %v497_v7, 0  ;;  %v552_v12 = vsel %vm447_vm3, %v547_v8, 0 }
 0x417   :  { %4044 = vmatpush3.bf16.xpose.msra.mxu1 %v502_v9 }
 0x418   :  { %4049 = vmatprep.subr.bf16.mxu1 %v4697_v37 }
 0x419   :  { %v647_v10 = vpop.permute.xlu0 %646  ;;  %v597_v14 = vpop.permute.xlu1 %596 }
 0x41a   :  { %v602_v15 = vsel %vm447_vm3, %v597_v14, 0  ;;  %v652_v16 = vsel %vm447_vm3, %v647_v10, 0 }
 0x41d   :  { %v747_v11 = vpop.permute.xlu0 %746  ;;  %v697_v17 = vpop.permute.xlu1 %696 }
 0x41e   :  { %v752_v13 = vsel %vm447_vm3, %v747_v11, 0  ;;  %4046 = vmatmul.mubr.msk.bf16.vlgmr.msra.gmra.mrb[4].mxu1 %vm447_vm3, %v4920_v51  ;;  %v702_v18 = vsel %vm447_vm3, %v697_v17, 0 }
 0x41f   :  { %4050 = vmatpush3.bf16.xpose.msra.mxu1 %v552_v12  ;;  %4074 = vmatpush3.bf16.xpose.msra.mxu0 %v752_v13 }
 0x420   :  { %4051 = vmatprep.mubr.msk.bf16.mxu1 %vm4700_vm2, %v4697_v37  ;;  %4055 = vmatprep.subr.bf16.mxu1 %v4697_v37 }
 0x421   :  { %4085 = vmatprep.subr.bf16.mxu0 %v4697_v37  ;;  %v797_v19 = vpop.permute.xlu1 %796 }
 0x422   :  { %v802_v20 = vsel %vm447_vm3, %v797_v19, 0 }
 0x426   :  { %4052 = vmatmul.mubr.msk.bf16.vlgmr.msra.gmra.mrb[8].mxu1 %vm447_vm3, %v4922_v52  ;;  %4076 = vmatmul.mubr.msk.bf16.vlgmr.msra.gmra.mrb[12].mxu0 %vm447_vm3, %v4937_v2 }
 0x427   :  { %4056 = vmatpush3.bf16.xpose.msra.mxu1 %v602_v15  ;;  %4057 = vmatprep.mubr.msk.bf16.mxu1 %vm4700_vm2, %v4697_v37 }
 0x428   :  { %4061 = vmatprep.subr.bf16.mxu1 %v4697_v37  ;;  %4087 = vmatprep.mubr.msk.bf16.mxu0 %vm4700_vm2, %v4697_v37 }
 0x42e   :  { %4058 = vmatmul.mubr.msk.bf16.vlgmr.msra.gmra.mrb[12].mxu1 %vm447_vm3, %v4928_v59 }
 0x42f   :  { %4062 = vmatpush3.bf16.xpose.msra.mxu1 %v652_v16  ;;  %4063 = vmatprep.mubr.msk.bf16.mxu1 %vm4700_vm2, %v4697_v37 }
 0x430   :  { %4067 = vmatprep.subr.bf16.mxu1 %v4697_v37 }
 0x436   :  { %4064 = vmatmul.mubr.msk.bf16.vlgmr.msra.gmra.mrb[16].mxu1 %vm447_vm3, %v4904_v42 }
 0x437   :  { %4068 = vmatpush3.bf16.xpose.msra.mxu1 %v702_v18  ;;  %4069 = vmatprep.mubr.msk.bf16.mxu1 %vm4700_vm2, %v4697_v37 }
 0x438   :  { %4079 = vmatprep.subr.bf16.mxu1 %v4697_v37 }
 0x43e   :  { %4070 = vmatmul.mubr.msk.bf16.vlgmr.msra.gmra.mrb[20].mxu1 %vm447_vm3, %v4935_v1 }
 0x43f   :  { %4080 = vmatpush3.bf16.xpose.msra.mxu1 %v802_v20  ;;  %4081 = vmatprep.mubr.msk.bf16.mxu1 %vm4700_vm2, %v4697_v37 }
 0x440   :  { %4091 = vmatprep.subr.bf16.mxu1 %v4697_v37 }
 0x446   :  { %4082 = vmatmul.mubr.msk.bf16.vlgmr.msra.gmra.mrb[24].mxu1 %vm447_vm3, %v4944_v6 }
 0x447   :  { %4093 = vmatprep.mubr.msk.bf16.mxu1 %vm4700_vm2, %v4697_v37 }
 0x482   :  { %v4994_v21 = vpop.f32.mrb[0].mxu1 }
 0x483   :  { %v4041_v22 = vpop.f32.mrb[1].mxu1  ;;  %v846_v23 = vsel %vm845_vm4, %v4994_v21, -inf }
 0x484   :  { %847 = vmax.xlane.f32.xlu0 %v846_v23  ;;  %v4998_v25 = vpop.f32.mrb[2].mxu1 }
 0x485   :  { %v4042_v26 = vpop.f32.mrb[3].mxu1  ;;  %v849_v28 = vsel %vm845_vm4, %v4998_v25, -inf }
 0x486   :  { %850 = vmax.xlane.f32.xlu1 %v849_v28 }
 0x4f1   :  { %v5002_v29 = vpop.f32.mrb[4].mxu1 }
 0x4f2   :  { %v4047_v30 = vpop.f32.mrb[5].mxu1  ;;  %v852_v31 = vsel %vm845_vm4, %v5002_v29, -inf }
 0x4f3   :  { %853 = vmax.xlane.f32.xlu0 %v852_v31  ;;  %v5006_v32 = vpop.f32.mrb[6].mxu1 }
 0x4f4   :  { %v4048_v33 = vpop.f32.mrb[7].mxu1  ;;  %v855_v34 = vsel %vm845_vm4, %v5006_v32, -inf }
 0x4f7   :  { %856 = vmax.xlane.f32.xlu0 %v855_v34 }
 0x4f9   :  { %v5010_v35 = vpop.f32.mrb[8].mxu1  ;;  %v5012_v38 = vpop.f32.mrb[12].mxu0 }
 0x4fa   :  { %v4053_v40 = vpop.f32.mrb[9].mxu1  ;;  %v4077_v41 = vpop.f32.mrb[13].mxu0  ;;  %v858_v43 = vsel %vm845_vm4, %v5010_v35, -inf  ;;  %v882_v11 = vsel %vm845_vm4, %v5012_v38, -inf }
 0x4fb   :  { %859 = vmax.xlane.f32.xlu0 %v858_v43  ;;  %v5016_v45 = vpop.f32.mrb[10].mxu1  ;;  %v5018_v46 = vpop.f32.mrb[14].mxu0 }
 0x4fc   :  { %v4054_v47 = vpop.f32.mrb[11].mxu1  ;;  %v4078_v48 = vpop.f32.mrb[15].mxu0  ;;  %v861_v49 = vsel %vm845_vm4, %v5016_v45, -inf  ;;  %v885_v3 = vsel %vm845_vm4, %v5018_v46, -inf }
 0x4fd   :  { %862 = vmax.xlane.f32.xlu1 %v861_v49 }
 0x501   :  { %v5022_v50 = vpop.f32.mrb[12].mxu1 }
 0x502   :  { %v4059_v53 = vpop.f32.mrb[13].mxu1  ;;  %v864_v54 = vsel %vm845_vm4, %v5022_v50, -inf }
 0x503   :  { %865 = vmax.xlane.f32.xlu0 %v864_v54  ;;  %v5026_v55 = vpop.f32.mrb[14].mxu1 }
 0x504   :  { %v4060_v56 = vpop.f32.mrb[15].mxu1  ;;  %v867_v57 = vsel %vm845_vm4, %v5026_v55, -inf }
 0x505   :  { %868 = vmax.xlane.f32.xlu1 %v867_v57 }
 0x509   :  { %v5030_v58 = vpop.f32.mrb[16].mxu1 }
 0x50a   :  { %v4065_v60 = vpop.f32.mrb[17].mxu1  ;;  %v870_v61 = vsel %vm845_vm4, %v5030_v58, -inf }
 0x50b   :  { %871 = vmax.xlane.f32.xlu0 %v870_v61  ;;  %v5034_v62 = vpop.f32.mrb[18].mxu1 }
 0x50c   :  { %v4066_v63 = vpop.f32.mrb[19].mxu1  ;;  %v873_v0 = vsel %vm845_vm4, %v5034_v62, -inf }
 0x50d   :  { %874 = vmax.xlane.f32.xlu1 %v873_v0 }
 0x511   :  { %v5040_v4 = vpop.f32.mrb[20].mxu1  ;;  %886 = vmax.xlane.f32.xlu1 %v885_v3  ;;  %v848_v17 = vpop.xlane.xlu0 %847 }
 0x512   :  { %v4071_v5 = vpop.f32.mrb[21].mxu1  ;;  %v876_v7 = vsel %vm845_vm4, %v5040_v4, -inf  ;;  %v894_v18 = vsub.f32 %v4994_v21, %v848_v17 }
 0x513   :  { %877 = vmax.xlane.f32.xlu0 %v876_v7  ;;  %v5044_v8 = vpop.f32.mrb[22].mxu1 }
 0x514   :  { %v4072_v9 = vpop.f32.mrb[23].mxu1  ;;  %v879_v10 = vsel %vm845_vm4, %v5044_v8, -inf  ;;  %v910_v19 = vmul.f32 1.442695, %v894_v18 }
 0x515   :  { %880 = vmax.xlane.f32.xlu1 %v879_v10 }
 0x516   :  { %4496 = vpow2.f32 %v910_v19 }
 0x517   :  { %883 = vmax.xlane.f32.xlu0 %v882_v11 }
 0x519   :  { %v5050_v12 = vpop.f32.mrb[24].mxu1 }
 0x51a   :  { %v4083_v13 = vpop.f32.mrb[25].mxu1  ;;  %v888_v14 = vsel %vm845_vm4, %v5050_v12, -inf }
 0x51b   :  { %v5054_v15 = vpop.f32.mrb[26].mxu1  ;;  %889 = vmax.xlane.f32.xlu0 %v888_v14 }
 0x51c   :  { %v4084_v16 = vpop.f32.mrb[27].mxu1 }
 0x520   :  { %v5067_v20 = vpop.eup %4496 }
 0x526   :  { %1077 = vrot.lane.b32.xlu1 %v4920_v51, %s4703_s19  ;;  %v891_v51 = vsel %vm845_vm4, %v5054_v15, -inf }
 0x52a   :  { %1124 = vrot.lane.b32.xlu1 %v4922_v52, %s4703_s19  ;;  %v942_v52 = vsel %vm845_vm4, %v5067_v20, 0.0 }
 0x52e   :  { %1171 = vrot.lane.b32.xlu1 %v4928_v59, %s4703_s19 }
 0x531   :  { %1030 = vrot.lane.b32.xlu0 %v4906_v44, %s4703_s19  ;;  %v851_v44 = vpop.xlane.xlu1 %850 }
 0x535   :  { %1218 = vrot.lane.b32.xlu0 %v4904_v42, %s4703_s19  ;;  %v895_v42 = vsub.f32 %v4998_v25, %v851_v44 }
 0x537   :  { %v912_v59 = vmul.f32 1.442695, %v895_v42 }
 0x539   :  { %4498 = vpow2.f32 %v912_v59 }
 0x543   :  { %v5076_v21 = vpop.eup %4498 }
 0x544   :  { %v945_v22 = vsel %vm845_vm4, %v5076_v21, 0.0 }
 0x552   :  { %892 = vmax.xlane.f32.xlu1 %v891_v51 }
 0x554   :  { %943 = vadd.xlane.f32.xlu0 %v942_v52 }
 0x563   :  { %1265 = vrot.lane.b32.xlu1 %v4935_v1, %s4703_s19 }
 0x580   :  { %v854_v23 = vpop.xlane.xlu0 %853 }
 0x581   :  { %v896_v54 = vsub.f32 %v5002_v29, %v854_v23 }
 0x583   :  { %v914_v63 = vmul.f32 1.442695, %v896_v54 }
 0x584   :  { %v857_v26 = vpop.xlane.xlu0 %856 }
 0x585   :  { %v897_v1 = vsub.f32 %v5006_v32, %v857_v26 }
 0x587   :  { %946 = vadd.xlane.f32.xlu1 %v945_v22  ;;  %v916_v48 = vmul.f32 1.442695, %v897_v1 }
 0x588   :  { %v860_v30 = vpop.xlane.xlu0 %859 }
 0x58a   :  { %v863_v28 = vpop.xlane.xlu1 %862 }
 0x58b   :  { %v899_v43 = vsub.f32 %v5016_v45, %v863_v28 }
 0x58d   :  { %v920_v56 = vmul.f32 1.442695, %v899_v43 }
 0x590   :  { %v866_v33 = vpop.xlane.xlu0 %865 }
 0x592   :  { %v869_v31 = vpop.xlane.xlu1 %868 }
 0x593   :  { %v901_v60 = vsub.f32 %v5026_v55, %v869_v31  ;;  %v900_v55 = vsub.f32 %v5022_v50, %v866_v33 }
 0x595   :  { %v924_v3 = vmul.f32 1.442695, %v901_v60 }
 0x598   :  { %v872_v40 = vpop.xlane.xlu0 %871 }
 0x599   :  { %v902_v13 = vsub.f32 %v5030_v58, %v872_v40 }
 0x59a   :  { %v875_v34 = vpop.xlane.xlu1 %874 }
 0x59b   :  { %v903_v29 = vsub.f32 %v5034_v62, %v875_v34  ;;  %v922_v62 = vmul.f32 1.442695, %v900_v55  ;;  %v926_v17 = vmul.f32 1.442695, %v902_v13 }
 0x59d   :  { %v928_v9 = vmul.f32 1.442695, %v903_v29 }
 0x59e   :  { %v887_v41 = vpop.xlane.xlu1 %886 }
 0x59f   :  { %v907_v25 = vsub.f32 %v5018_v46, %v887_v41  ;;  %v898_v46 = vsub.f32 %v5010_v35, %v860_v30 }
 0x5a0   :  { %v878_v47 = vpop.xlane.xlu0 %877 }
 0x5a1   :  { %v936_v49 = vmul.f32 1.442695, %v907_v25  ;;  %v918_v5 = vmul.f32 1.442695, %v898_v46  ;;  %v904_v18 = vsub.f32 %v5040_v4, %v878_v47 }
 0x5a2   :  { %v881_v53 = vpop.xlane.xlu1 %880 }
 0x5a3   :  { %4500 = vpow2.f32 %v936_v49  ;;  %v905_v35 = vsub.f32 %v5044_v8, %v881_v53  ;;  %v930_v44 = vmul.f32 1.442695, %v904_v18 }
 0x5a4   :  { %v884_v57 = vpop.xlane.xlu0 %883  ;;  %4502 = vpow2.f32 %v916_v48 }
 0x5a5   :  { %v906_v61 = vsub.f32 %v5012_v38, %v884_v57  ;;  %4504 = vpow2.f32 %v920_v56  ;;  %v932_v50 = vmul.f32 1.442695, %v905_v35 }
 0x5a6   :  { %v1078_v32 = vpop.permute.xlu1 %1077 }
 0x5a7   :  { %v934_v0 = vmul.f32 1.442695, %v906_v61  ;;  %4092 = vmatpush3.bf16.msra.mxu1 %v1078_v32 }
 0x5a8   :  { %v890_v45 = vpop.xlane.xlu0 %889  ;;  %4103 = vmatprep.subr.bf16.mxu1 %v4697_v37 }
 0x5a9   :  { %4506 = vpow2.f32 %v934_v0  ;;  %v908_v42 = vsub.f32 %v5050_v12, %v890_v45 }
 0x5aa   :  { %4508 = vpow2.f32 %v914_v63  ;;  %v1125_v48 = vpop.permute.xlu1 %1124 }
 0x5ab   :  { %4510 = vpow2.f32 %v924_v3  ;;  %v938_v26 = vmul.f32 1.442695, %v908_v42 }
 0x5ac   :  { %v1031_v7 = vpop.permute.xlu0 %1030  ;;  %4512 = vpow2.f32 %v918_v5 }
 0x5ad   :  { %v5090_v38 = vpop.eup %4500  ;;  %4086 = vmatpush3.bf16.msra.mxu0 %v1031_v7  ;;  %4514 = vpow2.f32 %v928_v9 }
 0x5ae   :  { %v981_v10 = vsel %vm845_vm4, %v5090_v38, 0.0  ;;  %4097 = vmatprep.subr.bf16.mxu0 %v4697_v37  ;;  %v5096_v11 = vpop.eup %4502  ;;  %4516 = vpow2.f32 %v922_v62  ;;  %v1172_v49 = vpop.permute.xlu1 %1171 }
 0x5af   :  { %982 = vadd.xlane.f32.xlu1 %v981_v10  ;;  %v5099_v14 = vpop.eup %4504  ;;  %v951_v8 = vsel %vm845_vm4, %v5096_v11, 0.0  ;;  %4518 = vpow2.f32 %v932_v50 }
 0x5b0   :  { %v957_v58 = vsel %vm845_vm4, %v5099_v14, 0.0  ;;  %4520 = vpow2.f32 %v926_v17  ;;  %v1219_v61 = vpop.permute.xlu0 %1218 }
 0x5b1   :  { %4522 = vpow2.f32 %v930_v44 }
 0x5b2   :  { %4524 = vpow2.f32 %v938_v26 }
 0x5b3   :  { %v5103_v16 = vpop.eup %4506  ;;  %952 = vadd.xlane.f32.xlu1 %v951_v8 }
 0x5b4   :  { %v978_v19 = vsel %vm845_vm4, %v5103_v16, 0.0  ;;  %v5108_v51 = vpop.eup %4508 }
 0x5b5   :  { %979 = vadd.xlane.f32.xlu0 %v978_v19  ;;  %v5112_v52 = vpop.eup %4510  ;;  %v948_v4 = vsel %vm845_vm4, %v5108_v51, 0.0 }
 0x5b6   :  { %v5117_v59 = vpop.eup %4512  ;;  %v963_v22 = vsel %vm845_vm4, %v5112_v52, 0.0 }
 0x5b7   :  { %958 = vadd.xlane.f32.xlu1 %v957_v58  ;;  %v5121_v23 = vpop.eup %4514  ;;  %v954_v28 = vsel %vm845_vm4, %v5117_v59, 0.0 }
 0x5b8   :  { %v5125_v30 = vpop.eup %4516  ;;  %v969_v12 = vsel %vm845_vm4, %v5121_v23, 0.0 }
 0x5b9   :  { %949 = vadd.xlane.f32.xlu0 %v948_v4  ;;  %v5129_v31 = vpop.eup %4518  ;;  %v960_v33 = vsel %vm845_vm4, %v5125_v30, 0.0 }
 0x5ba   :  { %v5133_v34 = vpop.eup %4520  ;;  %v975_v40 = vsel %vm845_vm4, %v5129_v31, 0.0 }
 0x5bb   :  { %964 = vadd.xlane.f32.xlu1 %v963_v22  ;;  %v966_v1 = vsel %vm845_vm4, %v5133_v34, 0.0  ;;  %v5139_v41 = vpop.eup %4522 }
 0x5bc   :  { %v972_v25 = vsel %vm845_vm4, %v5139_v41, 0.0  ;;  %v5143_v43 = vpop.eup %4524 }
 0x5bd   :  { %955 = vadd.xlane.f32.xlu0 %v954_v28  ;;  %v984_v47 = vsel %vm845_vm4, %v5143_v43, 0.0 }
 0x5bf   :  { %970 = vadd.xlane.f32.xlu1 %v969_v12 }
 0x5c1   :  { %961 = vadd.xlane.f32.xlu0 %v960_v33 }
 0x5c3   :  { %976 = vadd.xlane.f32.xlu1 %v975_v40 }
 0x5c5   :  { %967 = vadd.xlane.f32.xlu0 %v966_v1 }
 0x5c9   :  { %973 = vadd.xlane.f32.xlu0 %v972_v25 }
 0x5cd   :  { %985 = vadd.xlane.f32.xlu0 %v984_v47 }
 0x5df   :  { %v893_v53 = vpop.xlane.xlu1 %892 }
 0x5e0   :  { %v909_v54 = vsub.f32 %v5054_v15, %v893_v53 }
 0x5e1   :  { %v944_v32 = vpop.xlane.xlu0 %943 }
 0x5e2   :  { %v940_v56 = vmul.f32 1.442695, %v909_v54 }
 0x5e3   :  { %1312 = vrot.lane.b32.xlu0 %v4937_v2, %s4703_s19  ;;  %v5156_v63 = vpop.permute.xlu1 %1265 }
 0x5e4   :  { %4526 = vpow2.f32 %v940_v56 }
 0x5e5   :  { %4528 = vrcp.f32 %v944_v32 }
 0x5ee   :  { %v5150_v57 = vpop.eup %4526 }
 0x5ef   :  { %v987_v60 = vsel %vm845_vm4, %v5150_v57, 0.0  ;;  %v4529_v46 = vpop.eup %4528 }
 0x5f0   :  { %988 = vadd.xlane.f32.xlu1 %v987_v60  ;;  %v1006_v2 = vmul.f32 %v4529_v46, %v5067_v20 }
 0x601   :  { %1359 = vrot.lane.b32.xlu1 %v4944_v6, %s4703_s19 }
 0x614   :  { %v947_v15 = vpop.xlane.xlu1 %946 }
 0x615   :  { %4530 = vrcp.f32 %v947_v15 }
 0x61f   :  { %v4531_v0 = vpop.eup %4530 }
 0x620   :  { %v1007_v45 = vmul.f32 %v4531_v0, %v5076_v21 }
 0x622   :  { %v1022_v3 = vpack.c.bf16 %v1007_v45, %v1006_v2 }
 0x624   :  { %4088 = vmatmul.mubr.msk.bf16.vlgmr.msra.gmra.mrb[16].mxu0 %vm845_vm4, %v1022_v3 }
 0x625   :  { %4098 = vmatpush3.bf16.msra.mxu0 %v1125_v48  ;;  %4099 = vmatprep.mubr.msk.bf16.mxu0 %vm4700_vm2, %v4697_v37 }
 0x626   :  { %4109 = vmatprep.subr.bf16.mxu0 %v4697_v37 }
 0x63c   :  { %v983_v6 = vpop.xlane.xlu1 %982 }
 0x640   :  { %v953_v29 = vpop.xlane.xlu1 %952 }
 0x641   :  { %4532 = vrcp.f32 %v953_v29 }
 0x642   :  { %v980_v5 = vpop.xlane.xlu0 %979 }
 0x644   :  { %v959_v55 = vpop.xlane.xlu1 %958 }
 0x646   :  { %v950_v7 = vpop.xlane.xlu0 %949 }
 0x647   :  { %4534 = vrcp.f32 %v950_v7 }
 0x648   :  { %v965_v9 = vpop.xlane.xlu1 %964  ;;  %4536 = vrcp.f32 %v959_v55 }
 0x64a   :  { %v956_v20 = vpop.xlane.xlu0 %955 }
 0x64b   :  { %4538 = vrcp.f32 %v956_v20  ;;  %v4533_v10 = vpop.eup %4532 }
 0x64c   :  { %v971_v21 = vpop.xlane.xlu1 %970  ;;  %4540 = vrcp.f32 %v965_v9  ;;  %v1009_v13 = vmul.f32 %v4533_v10, %v5096_v11 }
 0x64e   :  { %v962_v35 = vpop.xlane.xlu0 %961 }
 0x64f   :  { %4542 = vrcp.f32 %v962_v35 }
 0x650   :  { %4544 = vrcp.f32 %v971_v21  ;;  %v977_v8 = vpop.xlane.xlu1 %976 }
 0x651   :  { %v4535_v62 = vpop.eup %4534 }
 0x652   :  { %v1008_v50 = vmul.f32 %v4535_v62, %v5108_v51  ;;  %v968_v17 = vpop.xlane.xlu0 %967  ;;  %v4537_v18 = vpop.eup %4536 }
 0x653   :  { %4546 = vrcp.f32 %v968_v17  ;;  %v1011_v44 = vmul.f32 %v4537_v18, %v5099_v14  ;;  %v4462_v17 = vld [vmem:[%s5950_s7] sm:$0xff]  }
 0x654   :  { %v1023_v19 = vpack.c.bf16 %v1009_v13, %v1008_v50  ;;  %4548 = vrcp.f32 %v977_v8 }
 0x655   :  { %v4539_v58 = vpop.eup %4538  ;;  %4550 = vrcp.f32 %v980_v5 }
 0x656   :  { %v1010_v42 = vmul.f32 %v4539_v58, %v5117_v59  ;;  %4094 = vmatmul.mubr.msk.bf16.vlgmr.msra.gmra.mrb[28].mxu1 %vm845_vm4, %v1023_v19  ;;  %v974_v4 = vpop.xlane.xlu0 %973  ;;  %v4541_v22 = vpop.eup %4540 }
 0x657   :  { %4104 = vmatpush3.bf16.msra.mxu1 %v1172_v49  ;;  %4552 = vrcp.f32 %v974_v4  ;;  %4105 = vmatprep.mubr.msk.bf16.mxu1 %vm4700_vm2, %v4697_v37  ;;  %v1013_v26 = vmul.f32 %v4541_v22, %v5112_v52 }
 0x658   :  { %v1024_v11 = vpack.c.bf16 %v1011_v44, %v1010_v42  ;;  %4115 = vmatprep.subr.bf16.mxu1 %v4697_v37  ;;  %4554 = vrcp.f32 %v983_v6 }
 0x659   :  { %v4543_v51 = vpop.eup %4542 }
 0x65a   :  { %v1012_v14 = vmul.f32 %v4543_v51, %v5125_v30  ;;  %4100 = vmatmul.mubr.msk.bf16.vlgmr.msra.gmra.mrb[20].mxu0 %vm845_vm4, %v1024_v11  ;;  %v4545_v59 = vpop.eup %4544  ;;  %v986_v28 = vpop.xlane.xlu0 %985 }
 0x65b   :  { %4110 = vmatpush3.bf16.msra.mxu0 %v1219_v61  ;;  %4111 = vmatprep.mubr.msk.bf16.mxu0 %vm4700_vm2, %v4697_v37  ;;  %v1015_v40 = vmul.f32 %v4545_v59, %v5121_v23  ;;  %4556 = vrcp.f32 %v986_v28  ;;  %v4463_v59 = vld [vmem:[%s5950_s7 + $0x8] sm:$0xff]  }
 0x65c   :  { %v1025_v12 = vpack.c.bf16 %v1013_v26, %v1012_v14  ;;  %4121 = vmatprep.subr.bf16.mxu0 %v4697_v37 }
 0x65d   :  { %v4547_v33 = vpop.eup %4546 }
 0x65e   :  { %v1014_v1 = vmul.f32 %v4547_v33, %v5133_v34  ;;  %4106 = vmatmul.mubr.msk.bf16.vlgmr.msra.gmra.mrb[32].mxu1 %vm845_vm4, %v1025_v12  ;;  %v4549_v52 = vpop.eup %4548  ;;  %v1313_v23 = vpop.permute.xlu0 %1312 }
 0x65f   :  { %4116 = vmatpush3.bf16.msra.mxu1 %v5156_v63  ;;  %4117 = vmatprep.mubr.msk.bf16.mxu1 %vm4700_vm2, %v4697_v37  ;;  %v4551_v30 = vpop.eup %4550  ;;  %v1017_v48 = vmul.f32 %v4549_v52, %v5129_v31 }
 0x660   :  { %v1026_v25 = vpack.c.bf16 %v1015_v40, %v1014_v1  ;;  %4127 = vmatprep.subr.bf16.mxu1 %v4697_v37  ;;  %v1018_v53 = vmul.f32 %v4551_v30, %v5103_v16 }
 0x661   :  { %v4553_v47 = vpop.eup %4552 }
 0x662   :  { %v1016_v49 = vmul.f32 %v4553_v47, %v5139_v41  ;;  %4112 = vmatmul.mubr.msk.bf16.vlgmr.msra.gmra.mrb[24].mxu0 %vm845_vm4, %v1026_v25  ;;  %v4555_v34 = vpop.eup %4554 }
 0x663   :  { %4122 = vmatpush3.bf16.msra.mxu0 %v1313_v23  ;;  %4123 = vmatprep.mubr.msk.bf16.mxu0 %vm4700_vm2, %v4697_v37  ;;  %v1019_v56 = vmul.f32 %v4555_v34, %v5090_v38 }
 0x664   :  { %v1027_v54 = vpack.c.bf16 %v1017_v48, %v1016_v49  ;;  %4133 = vmatprep.subr.bf16.mxu0 %v4462_v17 }
 0x665   :  { %v1028_v31 = vpack.c.bf16 %v1019_v56, %v1018_v53  ;;  %v4557_v61 = vpop.eup %4556 }
 0x666   :  { %4118 = vmatmul.mubr.msk.bf16.vlgmr.msra.gmra.mrb[36].mxu1 %vm845_vm4, %v1027_v54  ;;  %v1020_v16 = vmul.f32 %v4557_v61, %v5143_v43 }
 0x667   :  { %4129 = vmatprep.mubr.msk.bf16.mxu1 %vm4700_vm2, %v4697_v37 }
 0x66a   :  { %4124 = vmatmul.mubr.msk.bf16.vlgmr.msra.gmra.mrb[28].mxu0 %vm845_vm4, %v1028_v31 }
 0x66b   :  { %4134 = vmatpush3.bf16.msra.mxu0 %v4462_v17 }
 0x66c   :  { %4135 = vmatprep.subr.bf16.mxu0 %v4463_v59 }
 0x66f   :  { %4136 = vmatpush3.bf16.msra.mxu0 %v4463_v59 }
 0x67d   :  { %v989_v41 = vpop.xlane.xlu1 %988 }
 0x67e   :  { %4558 = vrcp.f32 %v989_v41 }
 0x681   :  { %v1360_v60 = vpop.permute.xlu1 %1359 }
 0x682   :  { %4128 = vmatpush3.bf16.msra.mxu1 %v1360_v60 }
 0x688   :  { %v4559_v32 = vpop.eup %4558 }
 0x689   :  { %v1021_v63 = vmul.f32 %v4559_v32, %v5150_v57 }
 0x68b   :  { %v1029_v38 = vpack.c.bf16 %v1021_v63, %v1020_v16 }
 0x68d   :  { %4130 = vmatmul.mubr.msk.bf16.vlgmr.msra.gmra.mrb[40].mxu1 %vm845_vm4, %v1029_v38 }
 0x6f7   :  { %v5199_v15 = vpop.f32.mrb[16].mxu0 }
 0x6f8   :  { %v4089_v46 = vpop.f32.mrb[17].mxu0 }
 0x6f9   :  { %v1073_v0 = vpop.f32.mrb[18].mxu0 }
 0x6fa   :  { %v4090_v2 = vpop.f32.mrb[19].mxu0 }
 0x729   :  { %v1117_v45 = vpop.f32.mrb[28].mxu1 }
 0x72a   :  { %v4095_v3 = vpop.f32.mrb[29].mxu1 }
 0x72b   :  { %v1120_v6 = vpop.f32.mrb[30].mxu1 }
 0x72c   :  { %v4352_v29 = vpack.i.bf16 %v1120_v6, %v1117_v45  ;;  %v4096_v5 = vpop.f32.mrb[31].mxu1 }
 0x72d   :  { %v1164_v55 = vpop.f32.mrb[20].mxu0 }
 0x72e   :  { %4353 = vrot.lane.b32.xlu0 %v4352_v29, %s4704_s3  ;;  %v4101_v43 = vpop.f32.mrb[21].mxu0 }
 0x72f   :  { %v1167_v7 = vpop.f32.mrb[22].mxu0 }
 0x730   :  { %v4357_v57 = vpack.i.bf16 %v1167_v7, %v1164_v55  ;;  %v4102_v9 = vpop.f32.mrb[23].mxu0 }
 0x731   :  { %v1211_v20 = vpop.f32.mrb[32].mxu1 }
 0x732   :  { %4358 = vrot.lane.b32.xlu1 %v4357_v57, %s4705_s1  ;;  %v4107_v21 = vpop.f32.mrb[33].mxu1 }
 0x733   :  { %v1214_v35 = vpop.f32.mrb[34].mxu1 }
 0x734   :  { %v4362_v10 = vpack.i.bf16 %v1214_v35, %v1211_v20  ;;  %v4108_v62 = vpop.f32.mrb[35].mxu1  ;;  %v3816_v20 = vld [vmem:[%s5951_s8] ss:$0 sm:$0xff] }
 0x735   :  { %v1258_v13 = vpop.f32.mrb[24].mxu0 }
 0x736   :  { %4363 = vrot.lane.b32.xlu1 %v4362_v10, %s4706_s20  ;;  %v4113_v50 = vpop.f32.mrb[25].mxu0 }
 0x737   :  { %v1261_v8 = vpop.f32.mrb[26].mxu0 }
 0x738   :  { %v4114_v18 = vpop.f32.mrb[27].mxu0 }
 0x739   :  { %v1305_v19 = vpop.f32.mrb[36].mxu1 }
 0x73a   :  { %v4119_v58 = vpop.f32.mrb[37].mxu1 }
 0x73b   :  { %v1308_v44 = vpop.f32.mrb[38].mxu1 }
 0x73c   :  { %v4367_v42 = vpack.i.bf16 %v1308_v44, %v1305_v19  ;;  %v4120_v4 = vpop.f32.mrb[39].mxu1 }
 0x73d   :  { %v1352_v22 = vpop.f32.mrb[28].mxu0 }
 0x73e   :  { %4368 = vrot.lane.b32.xlu0 %v4367_v42, %s4704_s3  ;;  %v4125_v11 = vpop.f32.mrb[29].mxu0 }
 0x73f   :  { %v1355_v51 = vpop.f32.mrb[30].mxu0 }
 0x740   :  { %v4372_v26 = vpack.i.bf16 %v1355_v51, %v1352_v22  ;;  %v4126_v14 = vpop.f32.mrb[31].mxu0 }
 0x742   :  { %4373 = vrot.lane.b32.xlu0 %v4372_v26, %s4705_s1 }
 0x760   :  { %v1399_v28 = vpop.f32.mrb[40].mxu1 }
 0x761   :  { %v4131_v12 = vpop.f32.mrb[41].mxu1 }
 0x762   :  { %v1402_v33 = vpop.f32.mrb[42].mxu1 }
 0x763   :  { %v4377_v40 = vpack.i.bf16 %v1402_v33, %v1399_v28  ;;  %v4132_v1 = vpop.f32.mrb[43].mxu1 }
 0x765   :  { %4378 = vrot.lane.b32.xlu1 %v4377_v40, %s4706_s20 }
 0x7a0   :  { %v4354_v52 = vpop.permute.xlu0 %4353 }
 0x7a1   :  { %v4356_v25 = vunpack.i.h.bf16 %v4354_v52  ;;  %v4355_v47 = vunpack.i.l.bf16 %v4354_v52 }
 0x7a3   :  { %v1431_v34 = vsel %vm447_vm3, %v1073_v0, %v4356_v25  ;;  %v1430_v53 = vsel %vm447_vm3, %v5199_v15, %v4355_v47 }
 0x7a4   :  { %v4359_v30 = vpop.permute.xlu1 %4358 }
 0x7a5   :  { %v4361_v48 = vunpack.i.h.bf16 %v4359_v30  ;;  %v4360_v49 = vunpack.i.l.bf16 %v4359_v30 }
 0x7a7   :  { %v1432_v31 = vsel %vm845_vm4, %v1430_v53, %v4360_v49  ;;  %v1433_v41 = vsel %vm845_vm4, %v1431_v34, %v4361_v48  ;;  %v4465_v34 = vld [vmem:[%s5954_s11 + $0x8] sm:$0xff]  }
 0x7a8   :  { %v4364_v23 = vpop.permute.xlu1 %4363 }
 0x7a9   :  { %v4366_v54 = vunpack.i.h.bf16 %v4364_v23  ;;  %v4365_v56 = vunpack.i.l.bf16 %v4364_v23  ;;  %v4464_v23 = vld [vmem:[%s5954_s11] sm:$0xff]  }
 0x7aa   :  { %4141 = vmatprep.subr.bf16.mxu1 %v4464_v23 }
 0x7ab   :  { %v1435_v60 = vsel %vm1434_vm5, %v1432_v31, %v4365_v56  ;;  %v1436_v61 = vsel %vm1434_vm5, %v1433_v41, %v4366_v54  ;;  %4142 = vmatpush3.bf16.msra.mxu1 %v4464_v23 }
 0x7ac   :  { %v1471_v32 = vpack.c.bf16 %v1436_v61, %v1435_v60  ;;  %4143 = vmatprep.subr.bf16.mxu1 %v4465_v34 }
 0x7ae   :  { %4137 = vmatprep.mubr.msk.bf16.mxu0 %vm249_vm1, %v1471_v32 }
 0x7af   :  { %4144 = vmatpush3.bf16.msra.mxu1 %v4465_v34 }
 0x7b0   :  { %v4369_v16 = vpop.permute.xlu0 %4368 }
 0x7b1   :  { %v4371_v38 = vunpack.i.h.bf16 %v4369_v16  ;;  %v4370_v46 = vunpack.i.l.bf16 %v4369_v16 }
 0x7b3   :  { %v1462_v45 = vsel %vm447_vm3, %v1261_v8, %v4371_v38  ;;  %v1461_v3 = vsel %vm447_vm3, %v1258_v13, %v4370_v46 }
 0x7b4   :  { %v4374_v63 = vpop.permute.xlu0 %4373 }
 0x7b5   :  { %v4376_v0 = vunpack.i.h.bf16 %v4374_v63  ;;  %v4375_v2 = vunpack.i.l.bf16 %v4374_v63 }
 0x7b7   :  { %v1463_v5 = vsel %vm845_vm4, %v1461_v3, %v4375_v2  ;;  %v1464_v55 = vsel %vm845_vm4, %v1462_v45, %v4376_v0  ;;  %v3817_v2 = vld [vmem:[%s5952_s9] ss:$0 sm:$0xff] }
 0x7d7   :  { %v4379_v15 = vpop.permute.xlu1 %4378 }
 0x7d8   :  { %v4381_v6 = vunpack.i.h.bf16 %v4379_v15  ;;  %v4380_v29 = vunpack.i.l.bf16 %v4379_v15 }
 0x7da   :  { %v1465_v43 = vsel %vm1434_vm5, %v1463_v5, %v4380_v29  ;;  %v1466_v7 = vsel %vm1434_vm5, %v1464_v55, %v4381_v6  ;;  %v3818_v5 = vld [vmem:[%s5953_s10] ss:$0 sm:$0xff] }
 0x7db   :  { %v1472_v57 = vpack.c.bf16 %v1466_v7, %v1465_v43 }
 0x7dd   :  { %4138 = vmatmul.mubr.msk.bf16.vlgmr.msra.gmra.mrb[32].mxu0 %vm249_vm1, %v1472_v57 }
 0x8b0   :  { %v4139_v9 = vpop.f32.mrb[32].mxu0 }
 0x8b1   :  { %v1525_v21 = vpop.f32.mrb[33].mxu0  ;;  %v1542_v35 = vadd.f32 %v4139_v9, %v4872_v36 }
 0x8b2   :  { %v1540_v10 = vadd.f32 %v1525_v21, %v4858_v24  ;;  %v4140_v62 = vpop.f32.mrb[34].mxu0 }
 0x8b3   :  { %v1528_v13 = vpop.f32.mrb[35].mxu0  ;;  %v5236_v17 = vadd.f32 %v3816_v20, %v1542_v35  ;;  %v1543_v18 = vadd.f32 %v4140_v62, %v4874_v39 }
 0x8b4   :  { %v5233_v50 = vadd.f32 %v3816_v20, %v1540_v10  ;;  %v1541_v8 = vadd.f32 %v1528_v13, %v4860_v27 }
 0x8b5   :  { %v5245_v24 = vadd.f32 %v3816_v20, %v1543_v18  ;;  %v1563_v44 = vsel %vm249_vm1, %v5236_v17, 0.0  ;;  %v4466_v18 = vld [vmem:[%s5956_s13] sm:$0xff]  }
 0x8b6   :  { %v5239_v19 = vadd.f32 %v3816_v20, %v1541_v8  ;;  %v1557_v58 = vsel %vm249_vm1, %v5233_v50, 0.0  ;;  %4149 = vmatprep.subr.bf16.mxu0 %v4466_v18 }
 0x8b7   :  { %1558 = vadd.xlane.f32.xlu0 %v1557_v58  ;;  %v1566_v27 = vsel %vm249_vm1, %v5245_v24, 0.0  ;;  %4150 = vmatpush3.bf16.msra.mxu0 %v4466_v18  ;;  %v4467_v58 = vld [vmem:[%s5956_s13 + $0x8] sm:$0xff]  }
 0x8b8   :  { %v1560_v36 = vsel %vm249_vm1, %v5239_v19, 0.0  ;;  %4151 = vmatprep.subr.bf16.mxu0 %v4467_v58 }
 0x8b9   :  { %1561 = vadd.xlane.f32.xlu1 %v1560_v36  ;;  %v4468_v36 = vld [vmem:[%s5956_s13 + $0x10] sm:$0xff]  }
 0x8bb   :  { %1564 = vadd.xlane.f32.xlu0 %v1563_v44  ;;  %4152 = vmatpush3.bf16.msra.mxu0 %v4467_v58  ;;  %v4469_v44 = vld [vmem:[%s5956_s13 + $0x18] sm:$0xff]  }
 0x8bc   :  { %4153 = vmatprep.subr.bf16.mxu0 %v4468_v36 }
 0x8bf   :  { %1567 = vadd.xlane.f32.xlu0 %v1566_v27  ;;  %4154 = vmatpush3.bf16.msra.mxu0 %v4468_v36  ;;  %v4470_v27 = vld [vmem:[%s5956_s13 + $0x20] sm:$0xff]  }
 0x8c0   :  { %4155 = vmatprep.subr.bf16.mxu0 %v4469_v44 }
 0x8c3   :  { %4156 = vmatpush3.bf16.msra.mxu0 %v4469_v44 }
 0x8c4   :  { %4157 = vmatprep.subr.bf16.mxu0 %v4470_v27 }
 0x8c7   :  { %4158 = vmatpush3.bf16.msra.mxu0 %v4470_v27 }
 0x944   :  { %v1559_v39 = vpop.xlane.xlu0 %1558 }
 0x945   :  { %v1569_v42 = vmul.f32 0.03125, %v1559_v39  ;;  %v4471_v39 = vld [vmem:[%s5956_s13 + $0x28] sm:$0xff]  }
 0x946   :  { %v1562_v4 = vpop.xlane.xlu1 %1561  ;;  %4159 = vmatprep.subr.bf16.mxu0 %v4471_v39 }
 0x947   :  { %v1573_v22 = vsub.f32 %v5233_v50, %v1569_v42  ;;  %v1570_v11 = vmul.f32 0.03125, %v1562_v4  ;;  %4160 = vmatpush3.bf16.msra.mxu0 %v4471_v39  ;;  %v4472_v42 = vld [vmem:[%s5956_s13 + $0x30] sm:$0xff]   ;;  %v4473_v4 = vld [vmem:[%s5956_s13 + $0x38] sm:$0xff]  }
 0x948   :  { %v1565_v51 = vpop.xlane.xlu0 %1564  ;;  %4161 = vmatprep.subr.bf16.mxu0 %v4472_v42 }
 0x949   :  { %v1574_v26 = vsub.f32 %v5239_v19, %v1570_v11  ;;  %v1571_v14 = vmul.f32 0.03125, %v1565_v51  ;;  %v1577_v59 = vmul.f32 %v1573_v22, %v1573_v22 }
 0x94b   :  { %v1575_v28 = vsub.f32 %v5236_v17, %v1571_v14  ;;  %v1581_v12 = vsel %vm249_vm1, %v1577_v59, 0.0  ;;  %v1578_v33 = vmul.f32 %v1574_v26, %v1574_v26  ;;  %4162 = vmatpush3.bf16.msra.mxu0 %v4472_v42 }
 0x94c   :  { %1582 = vadd.xlane.f32.xlu0 %v1581_v12  ;;  %v1568_v40 = vpop.xlane.xlu0 %1567  ;;  %4163 = vmatprep.subr.bf16.mxu0 %v4473_v4 }
 0x94d   :  { %v1572_v1 = vmul.f32 0.03125, %v1568_v40  ;;  %v1584_v52 = vsel %vm249_vm1, %v1578_v33, 0.0  ;;  %v1579_v30 = vmul.f32 %v1575_v28, %v1575_v28 }
 0x94e   :  { %1585 = vadd.xlane.f32.xlu1 %v1584_v52 }
 0x94f   :  { %v1576_v25 = vsub.f32 %v5245_v24, %v1572_v1  ;;  %v1587_v47 = vsel %vm249_vm1, %v1579_v30, 0.0  ;;  %4164 = vmatpush3.bf16.msra.mxu0 %v4473_v4 }
 0x950   :  { %1588 = vadd.xlane.f32.xlu0 %v1587_v47  ;;  %4195 = vmatprep.subr.bf16.mxu0 %v4697_v37 }
 0x951   :  { %v1580_v48 = vmul.f32 %v1576_v25, %v1576_v25 }
 0x953   :  { %v1590_v49 = vsel %vm249_vm1, %v1580_v48, 0.0 }
 0x954   :  { %1591 = vadd.xlane.f32.xlu1 %v1590_v49 }
 0x9d9   :  { %v1583_v53 = vpop.xlane.xlu0 %1582 }
 0x9da   :  { %v1593_v54 = vmul.f32 0.03125, %v1583_v53 }
 0x9db   :  { %v1586_v56 = vpop.xlane.xlu1 %1585 }
 0x9dc   :  { %v1597_v31 = vadd.f32 1e-06, %v1593_v54  ;;  %v1594_v41 = vmul.f32 0.03125, %v1586_v56 }
 0x9dd   :  { %v1589_v60 = vpop.xlane.xlu0 %1588 }
 0x9de   :  { %4560 = vrsqrt.f32 %v1597_v31  ;;  %v1598_v61 = vadd.f32 1e-06, %v1594_v41  ;;  %v1595_v32 = vmul.f32 0.03125, %v1589_v60 }
 0x9e0   :  { %4562 = vrsqrt.f32 %v1598_v61  ;;  %v1599_v16 = vadd.f32 1e-06, %v1595_v32 }
 0x9e1   :  { %v1592_v63 = vpop.xlane.xlu1 %1591 }
 0x9e2   :  { %4564 = vrsqrt.f32 %v1599_v16  ;;  %v1596_v38 = vmul.f32 0.03125, %v1592_v63 }
 0x9e4   :  { %v1600_v46 = vadd.f32 1e-06, %v1596_v38 }
 0x9e6   :  { %4566 = vrsqrt.f32 %v1600_v46 }
 0x9e8   :  { %v4561_v0 = vpop.eup %4560 }
 0x9e9   :  { %v1605_v15 = vmul.f32 %v4561_v0, %v1573_v22  ;;  %v3819_v22 = vld [vmem:[%s5955_s12] ss:$0 sm:$0xff] }
 0x9ea   :  { %v4563_v45 = vpop.eup %4562 }
 0x9eb   :  { %v1606_v3 = vmul.f32 %v4563_v45, %v1574_v26  ;;  %v1615_v6 = vmul.f32 %v3817_v2, %v1605_v15 }
 0x9ec   :  { %v4565_v29 = vpop.eup %4564 }
 0x9ed   :  { %v1607_v55 = vmul.f32 %v4565_v29, %v1575_v28  ;;  %v1616_v43 = vmul.f32 %v3817_v2, %v1606_v3  ;;  %v1625_v7 = vadd.f32 %v3818_v5, %v1615_v6 }
 0x9ef   :  { %v1626_v57 = vadd.f32 %v3818_v5, %v1616_v43  ;;  %v1617_v20 = vmul.f32 %v3817_v2, %v1607_v55 }
 0x9f0   :  { %v4567_v9 = vpop.eup %4566 }
 0x9f1   :  { %v1608_v21 = vmul.f32 %v4567_v9, %v1576_v25  ;;  %v1633_v35 = vpack.c.bf16 %v1626_v57, %v1625_v7  ;;  %v1627_v62 = vadd.f32 %v3818_v5, %v1617_v20 }
 0x9f3   :  { %v1618_v10 = vmul.f32 %v3817_v2, %v1608_v21  ;;  %4145 = vmatprep.mubr.msk.bf16.mxu1 %vm249_vm1, %v1633_v35 }
 0x9f5   :  { %v1628_v13 = vadd.f32 %v3818_v5, %v1618_v10 }
 0x9f7   :  { %v1634_v8 = vpack.c.bf16 %v1628_v13, %v1627_v62 }
 0x9f9   :  { %4146 = vmatmul.mubr.msk.bf16.vlgmr.msra.gmra.mrb[44].mxu1 %vm249_vm1, %v1634_v8 }
 0xacc   :  { %v4147_v11 = vpop.f32.mrb[44].mxu1 }
 0xacd   :  { %v5301_v51 = vadd.f32 %v4147_v11, %v3819_v22  ;;  %v1694_v26 = vpop.f32.mrb[45].mxu1 }
 0xace   :  { %v5303_v14 = vadd.f32 %v3819_v22, %v1694_v26  ;;  %v4148_v59 = vpop.f32.mrb[46].mxu1 }
 0xacf   :  { %v1715_v28 = vmul.f32 0.70710677, %v5301_v51  ;;  %v5306_v12 = vadd.f32 %v4148_v59, %v3819_v22  ;;  %v1697_v33 = vpop.f32.mrb[47].mxu1 }
 0xad0   :  { %v1713_v40 = vmul.f32 0.70710677, %v5303_v14  ;;  %v5309_v1 = vadd.f32 %v3819_v22, %v1697_v33 }
 0xad1   :  { %v5311_v52 = vclamps-f32 %v1715_v28, 3.832507  ;;  %v1716_v30 = vmul.f32 0.70710677, %v5306_v12 }
 0xad2   :  { %v5314_v25 = vclamps-f32 %v1713_v40, 3.832507  ;;  %v1714_v47 = vmul.f32 0.70710677, %v5309_v1 }
 0xad3   :  { %v5319_v48 = vmul.f32 %v5311_v52, %v5311_v52  ;;  %v5321_v49 = vclamps-f32 %v1716_v30, 3.832507 }
 0xad4   :  { %v5325_v23 = vmul.f32 %v5314_v25, %v5314_v25  ;;  %v5327_v34 = vclamps-f32 %v1714_v47, 3.832507 }
 0xad5   :  { %v1731_v53 = vmul.f32 -2.7261424e-10, %v5319_v48  ;;  %v1779_v54 = vmul.f32 -1.45660715e-05, %v5319_v48  ;;  %v5333_v56 = vmul.f32 %v5321_v49, %v5321_v49 }
 0xad6   :  { %v1729_v31 = vmul.f32 -2.7261424e-10, %v5325_v23  ;;  %v1777_v41 = vmul.f32 -1.45660715e-05, %v5325_v23  ;;  %v5339_v60 = vmul.f32 %v5327_v34, %v5327_v34 }
 0xad7   :  { %v1735_v61 = vadd.f32 2.7706815e-08, %v1731_v53  ;;  %v1783_v32 = vadd.f32 -0.00021337405, %v1779_v54  ;;  %v1732_v16 = vmul.f32 -2.7261424e-10, %v5333_v56 }
 0xad8   :  { %v1733_v63 = vadd.f32 2.7706815e-08, %v1729_v31  ;;  %v1781_v38 = vadd.f32 -0.00021337405, %v1777_v41  ;;  %v1780_v46 = vmul.f32 -1.45660715e-05, %v5333_v56 }
 0xad9   :  { %v1739_v0 = vmul.f32 %v1735_v61, %v5319_v48  ;;  %v1787_v2 = vmul.f32 %v1783_v32, %v5319_v48  ;;  %v1736_v15 = vadd.f32 2.7706815e-08, %v1732_v16  ;;  %v1730_v45 = vmul.f32 -2.7261424e-10, %v5339_v60 }
 0xada   :  { %v1737_v3 = vmul.f32 %v1733_v63, %v5325_v23  ;;  %v1785_v6 = vmul.f32 %v1781_v38, %v5325_v23  ;;  %v1784_v29 = vadd.f32 -0.00021337405, %v1780_v46  ;;  %v1778_v5 = vmul.f32 -1.45660715e-05, %v5339_v60 }
 0xadb   :  { %v1743_v55 = vadd.f32 -2.101024e-06, %v1739_v0  ;;  %v1791_v43 = vadd.f32 -0.001682827, %v1787_v2  ;;  %v1740_v7 = vmul.f32 %v1736_v15, %v5333_v56  ;;  %v1734_v57 = vadd.f32 2.7706815e-08, %v1730_v45 }
 0xadc   :  { %v1741_v9 = vadd.f32 -2.101024e-06, %v1737_v3  ;;  %v1789_v20 = vadd.f32 -0.001682827, %v1785_v6  ;;  %v1788_v21 = vmul.f32 %v1784_v29, %v5333_v56  ;;  %v1782_v35 = vadd.f32 -0.00021337405, %v1778_v5 }
 0xadd   :  { %v1747_v10 = vmul.f32 %v1743_v55, %v5319_v48  ;;  %v1795_v62 = vmul.f32 %v1791_v43, %v5319_v48  ;;  %v1744_v13 = vadd.f32 -2.101024e-06, %v1740_v7  ;;  %v1738_v8 = vmul.f32 %v1734_v57, %v5339_v60 }
 0xade   :  { %v1745_v18 = vmul.f32 %v1741_v9, %v5325_v23  ;;  %v1793_v58 = vmul.f32 %v1789_v20, %v5325_v23  ;;  %v1792_v36 = vadd.f32 -0.001682827, %v1788_v21  ;;  %v1786_v44 = vmul.f32 %v1782_v35, %v5339_v60 }
 0xadf   :  { %v1751_v27 = vadd.f32 -5.6925062e-05, %v1747_v10  ;;  %v1799_v39 = vadd.f32 -0.0073733293, %v1795_v62  ;;  %v1748_v42 = vmul.f32 %v1744_v13, %v5333_v56  ;;  %v1742_v4 = vadd.f32 -2.101024e-06, %v1738_v8 }
 0xae0   :  { %v1749_v22 = vadd.f32 -5.6925062e-05, %v1745_v18  ;;  %v1797_v11 = vadd.f32 -0.0073733293, %v1793_v58  ;;  %v1796_v26 = vmul.f32 %v1792_v36, %v5333_v56  ;;  %v1790_v59 = vadd.f32 -0.001682827, %v1786_v44 }
 0xae1   :  { %v1755_v28 = vmul.f32 %v1751_v27, %v5319_v48  ;;  %v1803_v33 = vmul.f32 %v1799_v39, %v5319_v48  ;;  %v1752_v40 = vadd.f32 -5.6925062e-05, %v1748_v42  ;;  %v1746_v30 = vmul.f32 %v1742_v4, %v5339_v60 }
 0xae2   :  { %v1753_v47 = vmul.f32 %v1749_v22, %v5325_v23  ;;  %v1801_v53 = vmul.f32 %v1797_v11, %v5325_v23  ;;  %v1800_v54 = vadd.f32 -0.0073733293, %v1796_v26  ;;  %v1794_v31 = vmul.f32 %v1790_v59, %v5339_v60 }
 0xae3   :  { %v1759_v41 = vadd.f32 -0.00073499064, %v1755_v28  ;;  %v1807_v61 = vadd.f32 -0.014264739, %v1803_v33  ;;  %v1756_v32 = vmul.f32 %v1752_v40, %v5333_v56  ;;  %v1750_v16 = vadd.f32 -5.6925062e-05, %v1746_v30 }
 0xae4   :  { %v1757_v63 = vadd.f32 -0.00073499064, %v1753_v47  ;;  %v1805_v38 = vadd.f32 -0.014264739, %v1801_v53  ;;  %v1804_v46 = vmul.f32 %v1800_v54, %v5333_v56  ;;  %v1798_v0 = vadd.f32 -0.0073733293, %v1794_v31 }
 0xae5   :  { %v1763_v2 = vmul.f32 %v1759_v41, %v5319_v48  ;;  %4568 = vrcp.f32 %v1807_v61  ;;  %v1760_v15 = vadd.f32 -0.00073499064, %v1756_v32  ;;  %v1754_v45 = vmul.f32 %v1750_v16, %v5339_v60 }
 0xae6   :  { %v1761_v3 = vmul.f32 %v1757_v63, %v5325_v23  ;;  %4570 = vrcp.f32 %v1805_v38  ;;  %v1808_v6 = vadd.f32 -0.014264739, %v1804_v46  ;;  %v1802_v29 = vmul.f32 %v1798_v0, %v5339_v60 }
 0xae7   :  { %v1767_v5 = vadd.f32 -0.0029546, %v1763_v2  ;;  %v1764_v55 = vmul.f32 %v1760_v15, %v5333_v56  ;;  %v1758_v43 = vadd.f32 -0.00073499064, %v1754_v45  ;;  %v1709_v40 = vmul.f32 0.5, %v5303_v14 }
 0xae8   :  { %v1765_v7 = vadd.f32 -0.0029546, %v1761_v3  ;;  %4572 = vrcp.f32 %v1808_v6  ;;  %v1806_v57 = vadd.f32 -0.014264739, %v1802_v29  ;;  %v1710_v47 = vmul.f32 0.5, %v5309_v1 }
 0xae9   :  { %v1771_v9 = vmul.f32 %v1767_v5, %v5319_v48  ;;  %v1768_v20 = vadd.f32 -0.0029546, %v1764_v55  ;;  %v1762_v21 = vmul.f32 %v1758_v43, %v5339_v60 }
 0xaea   :  { %v1769_v35 = vmul.f32 %v1765_v7, %v5325_v23  ;;  %4574 = vrcp.f32 %v1806_v57 }
 0xaeb   :  { %v1775_v10 = vadd.f32 -0.016096033, %v1771_v9  ;;  %v1772_v62 = vmul.f32 %v1768_v20, %v5333_v56  ;;  %v1766_v13 = vadd.f32 -0.0029546, %v1762_v21 }
 0xaec   :  { %v1773_v8 = vadd.f32 -0.016096033, %v1769_v35 }
 0xaed   :  { %v1811_v18 = vmul.f32 %v5311_v52, %v1775_v10  ;;  %v1776_v58 = vadd.f32 -0.016096033, %v1772_v62  ;;  %v1770_v36 = vmul.f32 %v1766_v13, %v5339_v60  ;;  %v1711_v52 = vmul.f32 0.5, %v5301_v51 }
 0xaee   :  { %v1809_v44 = vmul.f32 %v5314_v25, %v1773_v8  ;;  %v1712_v60 = vmul.f32 0.5, %v5306_v12  ;;  %v3836_v12 = vld [vmem:[%s5957_s14] ss:$0 sm:$0xff] }
 0xaef   :  { %v4569_v27 = vpop.eup %4568  ;;  %v1812_v48 = vmul.f32 %v5321_v49, %v1776_v58  ;;  %v1774_v39 = vadd.f32 -0.016096033, %v1770_v36 }
 0xaf0   :  { %v4571_v42 = vpop.eup %4570  ;;  %v1819_v4 = vmul.f32 %v4569_v27, %v1811_v18  ;;  %v4475_v27 = vld [vmem:[%s5949_s6 + $0x18] sm:$0xff]  }
 0xaf1   :  { %v1817_v23 = vmul.f32 %v4571_v42, %v1809_v44  ;;  %v1810_v22 = vmul.f32 %v5327_v34, %v1774_v39  ;;  %v4474_v44 = vld [vmem:[%s5949_s6 + $0x10] sm:$0xff]  }
 0xaf2   :  { %v4573_v11 = vpop.eup %4572  ;;  %v1823_v56 = vadd.f32 1.0, %v1819_v4  ;;  %4169 = vmatprep.subr.bf16.mxu1 %v4474_v44 }
 0xaf3   :  { %v1820_v26 = vmul.f32 %v4573_v11, %v1812_v48  ;;  %v1821_v28 = vadd.f32 1.0, %v1817_v23  ;;  %4170 = vmatpush3.bf16.msra.mxu1 %v4474_v44 }
 0xaf4   :  { %v4575_v59 = vpop.eup %4574  ;;  %v1827_v49 = vmul.f32 %v1823_v56, %v1711_v52  ;;  %4171 = vmatprep.subr.bf16.mxu1 %v4475_v27 }
 0xaf5   :  { %v1824_v33 = vadd.f32 1.0, %v1820_v26  ;;  %v1818_v25 = vmul.f32 %v4575_v59, %v1810_v22  ;;  %v1825_v54 = vmul.f32 %v1821_v28, %v1709_v40 }
 0xaf7   :  { %v1828_v30 = vmul.f32 %v1824_v33, %v1712_v60  ;;  %v1822_v53 = vadd.f32 1.0, %v1818_v25  ;;  %4172 = vmatpush3.bf16.msra.mxu1 %v4475_v27  ;;  %v3839_v33 = vld [vmem:[%s5947_s4 + $0x1] ss:$0 sm:$0xff] }
 0xaf8   :  { %4177 = vmatprep.subr.bf16.mxu1 %v4697_v37 }
 0xaf9   :  { %v1846_v34 = vpack.c.bf16 %v1828_v30, %v1827_v49  ;;  %v1826_v31 = vmul.f32 %v1822_v53, %v1710_v47  ;;  %v3840_v53 = vld [vmem:[%s5948_s5 + $0x1] ss:$0 sm:$0xff] }
 0xafb   :  { %v1845_v41 = vpack.c.bf16 %v1826_v31, %v1825_v54 }
 0xafd   :  { %4165 = vmatprep.mubr.bf16.mxu0 %v1845_v41 }
 0xafe   :  { %4166 = vmatmul.mubr.bf16.vlgmr.msra.gmra.mrb[36].mxu0 %v1846_v34 }
 0xaff   :  { %4197 = vmatprep.mubr.msk.bf16.mxu0 %vm4700_vm2, %v4697_v37 }
 0xbd1   :  { %v4167_v51 = vpop.f32.mrb[36].mxu0 }
 0xbd2   :  { %v1929_v14 = vpop.f32.mrb[37].mxu0  ;;  %v1946_v61 = vadd.f32 %v4167_v51, %v5236_v17 }
 0xbd3   :  { %v1944_v1 = vadd.f32 %v1929_v14, %v5233_v50  ;;  %v4168_v32 = vpop.f32.mrb[38].mxu0 }
 0xbd4   :  { %v1932_v16 = vpop.f32.mrb[39].mxu0  ;;  %v1947_v38 = vadd.f32 %v4168_v32, %v5245_v24  ;;  %v5396_v0 = vadd.f32 %v3836_v12, %v1946_v61 }
 0xbd5   :  { %v5392_v63 = vadd.f32 %v3836_v12, %v1944_v1  ;;  %v1945_v46 = vadd.f32 %v1932_v16, %v5239_v19 }
 0xbd6   :  { %v5402_v45 = vadd.f32 %v3836_v12, %v1947_v38  ;;  %v1969_v17 = vsel %vm249_vm1, %v5396_v0, 0.0 }
 0xbd7   :  { %v5398_v2 = vadd.f32 %v3836_v12, %v1945_v46  ;;  %v1963_v15 = vsel %vm249_vm1, %v5392_v63, 0.0 }
 0xbd8   :  { %1964 = vadd.xlane.f32.xlu0 %v1963_v15  ;;  %v1972_v19 = vsel %vm249_vm1, %v5402_v45, 0.0 }
 0xbd9   :  { %v1966_v50 = vsel %vm249_vm1, %v5398_v2, 0.0 }
 0xbda   :  { %1967 = vadd.xlane.f32.xlu1 %v1966_v50 }
 0xbdc   :  { %1970 = vadd.xlane.f32.xlu0 %v1969_v17 }
 0xbde   :  { %1973 = vadd.xlane.f32.xlu1 %v1972_v19 }
 0xc65   :  { %v1965_v24 = vpop.xlane.xlu0 %1964 }
 0xc66   :  { %v1975_v3 = vmul.f32 0.03125, %v1965_v24 }
 0xc67   :  { %v1968_v6 = vpop.xlane.xlu1 %1967 }
 0xc68   :  { %v1979_v29 = vsub.f32 %v5392_v63, %v1975_v3  ;;  %v1976_v5 = vmul.f32 0.03125, %v1968_v6 }
 0xc69   :  { %v1971_v55 = vpop.xlane.xlu0 %1970 }
 0xc6a   :  { %v1980_v43 = vsub.f32 %v5398_v2, %v1976_v5  ;;  %v1977_v7 = vmul.f32 0.03125, %v1971_v55  ;;  %v1983_v57 = vmul.f32 %v1979_v29, %v1979_v29 }
 0xc6b   :  { %v1974_v9 = vpop.xlane.xlu1 %1973 }
 0xc6c   :  { %v1981_v20 = vsub.f32 %v5396_v0, %v1977_v7  ;;  %v1978_v21 = vmul.f32 0.03125, %v1974_v9  ;;  %v1987_v35 = vsel %vm249_vm1, %v1983_v57, 0.0  ;;  %v1984_v10 = vmul.f32 %v1980_v43, %v1980_v43 }
 0xc6d   :  { %1988 = vadd.xlane.f32.xlu0 %v1987_v35 }
 0xc6e   :  { %v1982_v62 = vsub.f32 %v5402_v45, %v1978_v21  ;;  %v1990_v13 = vsel %vm249_vm1, %v1984_v10, 0.0  ;;  %v1985_v8 = vmul.f32 %v1981_v20, %v1981_v20 }
 0xc6f   :  { %1991 = vadd.xlane.f32.xlu1 %v1990_v13 }
 0xc70   :  { %v1993_v18 = vsel %vm249_vm1, %v1985_v8, 0.0  ;;  %v1986_v58 = vmul.f32 %v1982_v62, %v1982_v62 }
 0xc71   :  { %1994 = vadd.xlane.f32.xlu0 %v1993_v18 }
 0xc72   :  { %v1996_v36 = vsel %vm249_vm1, %v1986_v58, 0.0 }
 0xc73   :  { %1997 = vadd.xlane.f32.xlu1 %v1996_v36 }
 0xcfa   :  { %v1989_v48 = vpop.xlane.xlu0 %1988 }
 0xcfb   :  { %v1999_v39 = vmul.f32 0.03125, %v1989_v48 }
 0xcfc   :  { %v1992_v42 = vpop.xlane.xlu1 %1991 }
 0xcfd   :  { %v2003_v4 = vadd.f32 1e-06, %v1999_v39  ;;  %v2000_v23 = vmul.f32 0.03125, %v1992_v42 }
 0xcfe   :  { %v1995_v22 = vpop.xlane.xlu0 %1994 }
 0xcff   :  { %4576 = vrsqrt.f32 %v2003_v4  ;;  %v2004_v11 = vadd.f32 1e-06, %v2000_v23  ;;  %v2001_v56 = vmul.f32 0.03125, %v1995_v22 }
 0xd00   :  { %v1998_v26 = vpop.xlane.xlu1 %1997 }
 0xd01   :  { %4578 = vrsqrt.f32 %v2004_v11  ;;  %v2005_v59 = vadd.f32 1e-06, %v2001_v56  ;;  %v2002_v52 = vmul.f32 0.03125, %v1998_v26 }
 0xd03   :  { %4580 = vrsqrt.f32 %v2005_v59  ;;  %v2006_v28 = vadd.f32 1e-06, %v2002_v52 }
 0xd05   :  { %4582 = vrsqrt.f32 %v2006_v28 }
 0xd09   :  { %v4577_v60 = vpop.eup %4576 }
 0xd0a   :  { %v2011_v25 = vmul.f32 %v4577_v60, %v1979_v29 }
 0xd0b   :  { %v4579_v40 = vpop.eup %4578 }
 0xd0c   :  { %v2012_v49 = vmul.f32 %v4579_v40, %v1980_v43  ;;  %v2021_v30 = vmul.f32 %v3839_v33, %v2011_v25 }
 0xd0d   :  { %v4581_v47 = vpop.eup %4580 }
 0xd0e   :  { %v2013_v54 = vmul.f32 %v4581_v47, %v1981_v20  ;;  %v2022_v34 = vmul.f32 %v3839_v33, %v2012_v49  ;;  %v2031_v12 = vadd.f32 %v3840_v53, %v2021_v30 }
 0xd0f   :  { %v4583_v31 = vpop.eup %4582 }
 0xd10   :  { %v2023_v41 = vmul.f32 %v3839_v33, %v2013_v54  ;;  %v2014_v51 = vmul.f32 %v4583_v31, %v1982_v62  ;;  %v2032_v14 = vadd.f32 %v3840_v53, %v2022_v34 }
 0xd12   :  { %v2024_v61 = vmul.f32 %v3839_v33, %v2014_v51  ;;  %v2040_v1 = vpack.c.bf16 %v2032_v14, %v2031_v12  ;;  %v2033_v32 = vadd.f32 %v3840_v53, %v2023_v41 }
 0xd14   :  { %4173 = vmatprep.mubr.msk.bf16.mxu1 %vm249_vm1, %v2040_v1  ;;  %v2034_v16 = vadd.f32 %v3840_v53, %v2024_v61 }
 0xd16   :  { %v2041_v38 = vpack.c.bf16 %v2034_v16, %v2033_v32 }
 0xd18   :  { %4174 = vmatmul.mubr.msk.bf16.vlgmr.msra.gmra.mrb[48].mxu1 %vm249_vm1, %v2041_v38 }
 0xd19   :  { %4179 = vmatprep.mubr.msk.bf16.mxu1 %vm4700_vm2, %v4697_v37 }
 0xdeb   :  { %v4175_v46 = vpop.f32.mrb[48].mxu1 }
 0xdec   :  { %v2094_v15 = vpop.f32.mrb[49].mxu1 }
 0xded   :  { %v4176_v50 = vpop.f32.mrb[50].mxu1 }
 0xdee   :  { %v2097_v17 = vpop.f32.mrb[51].mxu1  ;;  %v4402_v19 = vpack.i.bf16 %v4176_v50, %v4175_v46  ;;  %v5435_v24 = vpack.c.bf16 %v4176_v50, %v4175_v46 }
 0xdef   :  { %v4387_v3 = vpack.i.bf16 %v2097_v17, %v2094_v15  ;;  %v5437_v6 = vpack.c.bf16 %v2097_v17, %v2094_v15 }
 0xdf1   :  { %4388 = vrot.lane.b32.xlu1 %v4387_v3, %s4698_s29  ;;  %4383 = vrot.lane.b32.xlu0 %v4387_v3, %s4699_s0 }
 0xdf5   :  { %4393 = vrot.lane.b32.xlu1 %v4387_v3, %s4701_s30  ;;  %4403 = vrot.lane.b32.xlu0 %v4402_v19, %s4698_s29 }
 0xdf9   :  { %4398 = vrot.lane.b32.xlu1 %v4402_v19, %s4699_s0  ;;  %2158 = vrot.lane.b32.xlu0 %v5437_v6, %s4702_s18 }
 0xdfd   :  { %4408 = vrot.lane.b32.xlu1 %v4402_v19, %s4701_s30 }
 0xe63   :  { %v4389_v29 = vpop.permute.xlu1 %4388  ;;  %v4384_v5 = vpop.permute.xlu0 %4383 }
 0xe64   :  { %v4391_v55 = vunpack.i.h.bf16 %v4389_v29  ;;  %v4390_v43 = vunpack.i.l.bf16 %v4389_v29  ;;  %v4386_v7 = vunpack.i.h.bf16 %v4384_v5  ;;  %v4385_v57 = vunpack.i.l.bf16 %v4384_v5 }
 0xe66   :  { %v5447_v9 = vpack.c.bf16 %v4391_v55, %v4390_v43  ;;  %v5449_v20 = vpack.c.bf16 %v4386_v7, %v4385_v57 }
 0xe67   :  { %v4394_v21 = vpop.permute.xlu1 %4393  ;;  %v4404_v35 = vpop.permute.xlu0 %4403 }
 0xe68   :  { %v4396_v10 = vunpack.i.h.bf16 %v4394_v21  ;;  %v4395_v62 = vunpack.i.l.bf16 %v4394_v21  ;;  %2208 = vrot.lane.b32.xlu1 %v5449_v20, %s4702_s18  ;;  %2258 = vrot.lane.b32.xlu0 %v5447_v9, %s4702_s18  ;;  %v4406_v8 = vunpack.i.h.bf16 %v4404_v35  ;;  %v4405_v18 = vunpack.i.l.bf16 %v4404_v35 }
 0xe6a   :  { %v5455_v13 = vpack.c.bf16 %v4396_v10, %v4395_v62  ;;  %v5462_v39 = vpack.c.bf16 %v4406_v8, %v4405_v18 }
 0xe6b   :  { %v4399_v58 = vpop.permute.xlu1 %4398  ;;  %v2159_v36 = vpop.permute.xlu0 %2158 }
 0xe6c   :  { %v4401_v44 = vunpack.i.h.bf16 %v4399_v58  ;;  %v4400_v27 = vunpack.i.l.bf16 %v4399_v58  ;;  %v2164_v48 = vsel %vm447_vm3, %v2159_v36, 0  ;;  %2308 = vrot.lane.b32.xlu1 %v5455_v13, %s4702_s18  ;;  %2358 = vrot.lane.b32.xlu0 %v5435_v24, %s4702_s18 }
 0xe6d   :  { %4178 = vmatpush3.bf16.xpose.msra.mxu1 %v2164_v48 }
 0xe6e   :  { %v5464_v42 = vpack.c.bf16 %v4401_v44, %v4400_v27  ;;  %4183 = vmatprep.subr.bf16.mxu1 %v4697_v37 }
 0xe6f   :  { %v4409_v4 = vpop.permute.xlu1 %4408 }
 0xe70   :  { %v4411_v23 = vunpack.i.h.bf16 %v4409_v4  ;;  %v4410_v22 = vunpack.i.l.bf16 %v4409_v4  ;;  %2408 = vrot.lane.b32.xlu1 %v5464_v42, %s4702_s18  ;;  %2458 = vrot.lane.b32.xlu0 %v5462_v39, %s4702_s18 }
 0xe72   :  { %v5471_v11 = vpack.c.bf16 %v4411_v23, %v4410_v22 }
 0xe74   :  { %2508 = vrot.lane.b32.xlu1 %v5471_v11, %s4702_s18  ;;  %4180 = vmatmul.mubr.msk.bf16.vlgmr.msra.gmra.mrb[52].mxu1 %vm447_vm3, %v5437_v6 }
 0xe75   :  { %4185 = vmatprep.mubr.msk.bf16.mxu1 %vm4700_vm2, %v4697_v37 }
 0xeda   :  { %v2209_v56 = vpop.permute.xlu1 %2208  ;;  %v2259_v28 = vpop.permute.xlu0 %2258 }
 0xedb   :  { %v2214_v26 = vsel %vm447_vm3, %v2209_v56, 0  ;;  %v2264_v60 = vsel %vm447_vm3, %v2259_v28, 0 }
 0xedc   :  { %4184 = vmatpush3.bf16.xpose.msra.mxu1 %v2214_v26 }
 0xedd   :  { %4189 = vmatprep.subr.bf16.mxu1 %v4697_v37 }
 0xede   :  { %v2309_v59 = vpop.permute.xlu1 %2308  ;;  %v2359_v40 = vpop.permute.xlu0 %2358 }
 0xedf   :  { %v2314_v52 = vsel %vm447_vm3, %v2309_v59, 0  ;;  %v2364_v49 = vsel %vm447_vm3, %v2359_v40, 0 }
 0xee0   :  { %4196 = vmatpush3.bf16.xpose.msra.mxu0 %v2314_v52 }
 0xee1   :  { %4207 = vmatprep.subr.bf16.mxu0 %v4697_v37 }
 0xee2   :  { %v2409_v33 = vpop.permute.xlu1 %2408  ;;  %v2459_v53 = vpop.permute.xlu0 %2458 }
 0xee3   :  { %4186 = vmatmul.mubr.msk.bf16.vlgmr.msra.gmra.mrb[56].mxu1 %vm447_vm3, %v5449_v20  ;;  %v2414_v25 = vsel %vm447_vm3, %v2409_v33, 0  ;;  %v2464_v54 = vsel %vm447_vm3, %v2459_v53, 0 }
 0xee4   :  { %4190 = vmatpush3.bf16.xpose.msra.mxu1 %v2264_v60  ;;  %4191 = vmatprep.mubr.msk.bf16.mxu1 %vm4700_vm2, %v4697_v37 }
 0xee5   :  { %4201 = vmatprep.subr.bf16.mxu1 %v4697_v37 }
 0xee6   :  { %v2509_v30 = vpop.permute.xlu1 %2508 }
 0xee7   :  { %4198 = vmatmul.mubr.msk.bf16.vlgmr.msra.gmra.mrb[40].mxu0 %vm447_vm3, %v5455_v13  ;;  %v2514_v47 = vsel %vm447_vm3, %v2509_v30, 0 }
 0xee8   :  { %4208 = vmatpush3.bf16.xpose.msra.mxu0 %v2414_v25  ;;  %4209 = vmatprep.mubr.msk.bf16.mxu0 %vm4700_vm2, %v4697_v37 }
 0xee9   :  { %4219 = vmatprep.subr.bf16.mxu0 %v4697_v37 }
 0xeeb   :  { %4192 = vmatmul.mubr.msk.bf16.vlgmr.msra.gmra.mrb[60].mxu1 %vm447_vm3, %v5447_v9 }
 0xeec   :  { %4202 = vmatpush3.bf16.xpose.msra.mxu1 %v2364_v49  ;;  %4203 = vmatprep.mubr.msk.bf16.mxu1 %vm4700_vm2, %v4697_v37 }
 0xeed   :  { %4213 = vmatprep.subr.bf16.mxu1 %v4697_v37 }
 0xeef   :  { %4210 = vmatmul.mubr.msk.bf16.vlgmr.msra.gmra.mrb[44].mxu0 %vm447_vm3, %v5464_v42 }
 0xef0   :  { %4220 = vmatpush3.bf16.xpose.msra.mxu0 %v2514_v47  ;;  %4221 = vmatprep.mubr.msk.bf16.mxu0 %vm4700_vm2, %v4697_v37 }
 0xef1   :  { %4231 = vmatprep.subr.bf16.mxu0 %v4697_v37 }
 0xef3   :  { %4204 = vmatmul.mubr.msk.bf16.vlgmr.msra.gmra.mrb[64].mxu1 %vm447_vm3, %v5435_v24 }
 0xef4   :  { %4214 = vmatpush3.bf16.xpose.msra.mxu1 %v2464_v54  ;;  %4215 = vmatprep.mubr.msk.bf16.mxu1 %vm4700_vm2, %v4697_v37 }
 0xef5   :  { %4225 = vmatprep.subr.bf16.mxu1 %v4697_v37 }
 0xef7   :  { %4222 = vmatmul.mubr.msk.bf16.vlgmr.msra.gmra.mrb[48].mxu0 %vm447_vm3, %v5471_v11 }
 0xef8   :  { %4233 = vmatprep.mubr.msk.bf16.mxu0 %vm4700_vm2, %v4697_v37 }
 0xefb   :  { %4216 = vmatmul.mubr.msk.bf16.vlgmr.msra.gmra.mrb[68].mxu1 %vm447_vm3, %v5462_v39 }
 0xefc   :  { %4227 = vmatprep.mubr.msk.bf16.mxu1 %vm4700_vm2, %v4697_v37 }
 0xf47   :  { %v5521_v34 = vpop.f32.mrb[52].mxu1 }
 0xf48   :  { %v4181_v31 = vpop.f32.mrb[53].mxu1  ;;  %v2557_v41 = vsel %vm845_vm4, %v5521_v34, -inf }
 0xf49   :  { %2558 = vmax.xlane.f32.xlu0 %v2557_v41  ;;  %v5525_v51 = vpop.f32.mrb[54].mxu1 }
 0xf4a   :  { %v4182_v12 = vpop.f32.mrb[55].mxu1  ;;  %v2560_v14 = vsel %vm845_vm4, %v5525_v51, -inf }
 0xf4b   :  { %2561 = vmax.xlane.f32.xlu1 %v2560_v14 }
 0xfb6   :  { %v5529_v61 = vpop.f32.mrb[56].mxu1 }
 0xfb7   :  { %v4187_v1 = vpop.f32.mrb[57].mxu1  ;;  %v2563_v32 = vsel %vm845_vm4, %v5529_v61, -inf }
 0xfb8   :  { %2564 = vmax.xlane.f32.xlu0 %v2563_v32  ;;  %v5533_v16 = vpop.f32.mrb[58].mxu1 }
 0xfb9   :  { %v4188_v38 = vpop.f32.mrb[59].mxu1  ;;  %v2566_v50 = vsel %vm845_vm4, %v5533_v16, -inf }
 0xfba   :  { %v5535_v46 = vpop.f32.mrb[40].mxu0 }
 0xfbb   :  { %v4199_v15 = vpop.f32.mrb[41].mxu0  ;;  %v2575_v55 = vsel %vm845_vm4, %v5535_v46, -inf }
 0xfbc   :  { %v5539_v17 = vpop.f32.mrb[42].mxu0  ;;  %2567 = vmax.xlane.f32.xlu0 %v2566_v50 }
 0xfbd   :  { %v4200_v19 = vpop.f32.mrb[43].mxu0  ;;  %v2578_v3 = vsel %vm845_vm4, %v5539_v17, -inf }
 0xfbe   :  { %2579 = vmax.xlane.f32.xlu1 %v2578_v3  ;;  %v5543_v29 = vpop.f32.mrb[60].mxu1 }
 0xfbf   :  { %v4193_v5 = vpop.f32.mrb[61].mxu1  ;;  %v2569_v10 = vsel %vm845_vm4, %v5543_v29, -inf }
 0xfc0   :  { %2576 = vmax.xlane.f32.xlu0 %v2575_v55  ;;  %v5547_v43 = vpop.f32.mrb[62].mxu1 }
 0xfc1   :  { %v4194_v7 = vpop.f32.mrb[63].mxu1  ;;  %v2572_v57 = vsel %vm845_vm4, %v5547_v43, -inf }
 0xfc2   :  { %v5551_v21 = vpop.f32.mrb[44].mxu0  ;;  %2573 = vmax.xlane.f32.xlu1 %v2572_v57 }
 0xfc3   :  { %v4211_v35 = vpop.f32.mrb[45].mxu0  ;;  %v2587_v44 = vsel %vm845_vm4, %v5551_v21, -inf }
 0xfc4   :  { %v5555_v62 = vpop.f32.mrb[46].mxu0  ;;  %2570 = vmax.xlane.f32.xlu0 %v2569_v10 }
 0xfc5   :  { %v4212_v8 = vpop.f32.mrb[47].mxu0  ;;  %v2590_v18 = vsel %vm845_vm4, %v5555_v62, -inf }
 0xfc6   :  { %2591 = vmax.xlane.f32.xlu1 %v2590_v18  ;;  %v5559_v58 = vpop.f32.mrb[64].mxu1 }
 0xfc7   :  { %v4205_v36 = vpop.f32.mrb[65].mxu1  ;;  %v2581_v56 = vsel %vm845_vm4, %v5559_v58, -inf }
 0xfc8   :  { %2588 = vmax.xlane.f32.xlu0 %v2587_v44  ;;  %v5563_v27 = vpop.f32.mrb[66].mxu1 }
 0xfc9   :  { %v4206_v48 = vpop.f32.mrb[67].mxu1  ;;  %v2584_v4 = vsel %vm845_vm4, %v5563_v27, -inf }
 0xfca   :  { %v5567_v23 = vpop.f32.mrb[48].mxu0  ;;  %2585 = vmax.xlane.f32.xlu1 %v2584_v4 }
 0xfcb   :  { %v4223_v22 = vpop.f32.mrb[49].mxu0  ;;  %v2599_v33 = vsel %vm845_vm4, %v5567_v23, -inf }
 0xfcc   :  { %v5571_v26 = vpop.f32.mrb[50].mxu0  ;;  %2582 = vmax.xlane.f32.xlu0 %v2581_v56 }
 0xfcd   :  { %v4224_v59 = vpop.f32.mrb[51].mxu0  ;;  %v2602_v52 = vsel %vm845_vm4, %v5571_v26, -inf }
 0xfce   :  { %2603 = vmax.xlane.f32.xlu1 %v2602_v52  ;;  %v5575_v28 = vpop.f32.mrb[68].mxu1 }
 0xfcf   :  { %v4217_v60 = vpop.f32.mrb[69].mxu1  ;;  %v2593_v49 = vsel %vm845_vm4, %v5575_v28, -inf }
 0xfd0   :  { %2600 = vmax.xlane.f32.xlu0 %v2599_v33  ;;  %v5579_v25 = vpop.f32.mrb[70].mxu1 }
 0xfd1   :  { %v4218_v40 = vpop.f32.mrb[71].mxu1 }
 0xfd4   :  { %2594 = vmax.xlane.f32.xlu0 %v2593_v49 }
 0xfd6   :  { %v2559_v30 = vpop.xlane.xlu0 %2558 }
 0xfd7   :  { %v2605_v47 = vsub.f32 %v5521_v34, %v2559_v30 }
 0xfd9   :  { %v2621_v53 = vmul.f32 1.442695, %v2605_v47 }
 0xfdb   :  { %4584 = vpow2.f32 %v2621_v53 }
 0xfdf   :  { %2788 = vrot.lane.b32.xlu1 %v5449_v20, %s4703_s19  ;;  %v2596_v20 = vsel %vm845_vm4, %v5579_v25, -inf }
 0xfe3   :  { %2835 = vrot.lane.b32.xlu1 %v5447_v9, %s4703_s19 }
 0xfe5   :  { %v5594_v54 = vpop.eup %4584 }
 0xfe6   :  { %v2653_v9 = vsel %vm845_vm4, %v5594_v54, 0.0 }
 0xfe7   :  { %2882 = vrot.lane.b32.xlu1 %v5455_v13, %s4703_s19 }
 0xfea   :  { %2741 = vrot.lane.b32.xlu0 %v5437_v6, %s4703_s19  ;;  %v2562_v6 = vpop.xlane.xlu1 %2561 }
 0xfee   :  { %2929 = vrot.lane.b32.xlu0 %v5435_v24, %s4703_s19  ;;  %v2606_v24 = vsub.f32 %v5525_v51, %v2562_v6 }
 0xff0   :  { %v2623_v13 = vmul.f32 1.442695, %v2606_v24 }
 0xff2   :  { %4586 = vpow2.f32 %v2623_v13 }
 0xffc   :  { %v5603_v34 = vpop.eup %4586 }
 0xffd   :  { %v2656_v31 = vsel %vm845_vm4, %v5603_v34, 0.0 }
0x100b   :  { %2597 = vmax.xlane.f32.xlu1 %v2596_v20 }
0x100d   :  { %2654 = vadd.xlane.f32.xlu0 %v2653_v9 }
0x101c   :  { %2976 = vrot.lane.b32.xlu1 %v5464_v42, %s4703_s19 }
0x1040   :  { %2657 = vadd.xlane.f32.xlu1 %v2656_v31 }
0x1045   :  { %v2565_v41 = vpop.xlane.xlu0 %2564 }
0x1046   :  { %v2607_v12 = vsub.f32 %v5529_v61, %v2565_v41 }
0x1048   :  { %v2625_v14 = vmul.f32 1.442695, %v2607_v12 }
0x1049   :  { %v2568_v1 = vpop.xlane.xlu0 %2567 }
0x104a   :  { %4588 = vpow2.f32 %v2625_v14  ;;  %v2608_v32 = vsub.f32 %v5533_v16, %v2568_v1 }
0x104b   :  { %v2580_v42 = vpop.xlane.xlu1 %2579 }
0x104c   :  { %v2627_v38 = vmul.f32 1.442695, %v2608_v32  ;;  %v2612_v51 = vsub.f32 %v5539_v17, %v2580_v42 }
0x104d   :  { %v2577_v15 = vpop.xlane.xlu0 %2576 }
0x104e   :  { %4590 = vpow2.f32 %v2627_v38  ;;  %v2635_v50 = vmul.f32 1.442695, %v2612_v51  ;;  %v2611_v19 = vsub.f32 %v5535_v46, %v2577_v15 }
0x104f   :  { %v2574_v3 = vpop.xlane.xlu1 %2573 }
0x1050   :  { %4592 = vpow2.f32 %v2635_v50  ;;  %v2633_v5 = vmul.f32 1.442695, %v2611_v19  ;;  %v2610_v55 = vsub.f32 %v5547_v43, %v2574_v3 }
0x1051   :  { %v2571_v61 = vpop.xlane.xlu0 %2570 }
0x1052   :  { %4594 = vpow2.f32 %v2633_v5  ;;  %v2631_v7 = vmul.f32 1.442695, %v2610_v55  ;;  %v2609_v57 = vsub.f32 %v5543_v29, %v2571_v61 }
0x1053   :  { %v2592_v16 = vpop.xlane.xlu1 %2591 }
0x1054   :  { %v5613_v35 = vpop.eup %4588  ;;  %4596 = vpow2.f32 %v2631_v7  ;;  %v2629_v17 = vmul.f32 1.442695, %v2609_v57  ;;  %v2616_v10 = vsub.f32 %v5555_v62, %v2592_v16 }
0x1055   :  { %v2589_v8 = vpop.xlane.xlu0 %2588  ;;  %v2659_v46 = vsel %vm845_vm4, %v5613_v35, 0.0 }
0x1056   :  { %4598 = vpow2.f32 %v2629_v17  ;;  %v2643_v18 = vmul.f32 1.442695, %v2616_v10  ;;  %v2615_v43 = vsub.f32 %v5551_v21, %v2589_v8  ;;  %2660 = vadd.xlane.f32.xlu0 %v2659_v46 }
0x1057   :  { %v2586_v36 = vpop.xlane.xlu1 %2585 }
0x1058   :  { %v5619_v44 = vpop.eup %4590  ;;  %4600 = vpow2.f32 %v2643_v18  ;;  %v2641_v29 = vmul.f32 1.442695, %v2615_v43  ;;  %v2614_v48 = vsub.f32 %v5563_v27, %v2586_v36 }
0x1059   :  { %v2583_v4 = vpop.xlane.xlu0 %2582  ;;  %v2662_v62 = vsel %vm845_vm4, %v5619_v44, 0.0 }
0x105a   :  { %v5624_v22 = vpop.eup %4592  ;;  %4602 = vpow2.f32 %v2641_v29  ;;  %v2639_v56 = vmul.f32 1.442695, %v2614_v48  ;;  %v2613_v59 = vsub.f32 %v5559_v58, %v2583_v4  ;;  %2663 = vadd.xlane.f32.xlu1 %v2662_v62 }
0x105b   :  { %v2604_v21 = vpop.xlane.xlu1 %2603  ;;  %v2674_v27 = vsel %vm845_vm4, %v5624_v22, 0.0 }
0x105c   :  { %v5627_v52 = vpop.eup %4594  ;;  %4604 = vpow2.f32 %v2639_v56  ;;  %v2637_v60 = vmul.f32 1.442695, %v2613_v59  ;;  %v2620_v33 = vsub.f32 %v5571_v26, %v2604_v21 }
0x105d   :  { %v2601_v40 = vpop.xlane.xlu0 %2600  ;;  %v2671_v49 = vsel %vm845_vm4, %v5627_v52, 0.0 }
0x105e   :  { %v5634_v30 = vpop.eup %4596  ;;  %4606 = vpow2.f32 %v2637_v60  ;;  %v2651_v47 = vmul.f32 1.442695, %v2620_v33  ;;  %v2619_v58 = vsub.f32 %v5567_v23, %v2601_v40  ;;  %2675 = vadd.xlane.f32.xlu1 %v2674_v27  ;;  %2672 = vadd.xlane.f32.xlu0 %v2671_v49 }
0x105f   :  { %v2789_v53 = vpop.permute.xlu1 %2788  ;;  %v2668_v6 = vsel %vm845_vm4, %v5634_v30, 0.0 }
0x1060   :  { %v5637_v20 = vpop.eup %4598  ;;  %4608 = vpow2.f32 %v2651_v47  ;;  %v2649_v26 = vmul.f32 1.442695, %v2619_v58  ;;  %4232 = vmatpush3.bf16.msra.mxu0 %v2789_v53 }
0x1061   :  { %v2595_v9 = vpop.xlane.xlu0 %2594  ;;  %v2665_v24 = vsel %vm845_vm4, %v5637_v20, 0.0  ;;  %4243 = vmatprep.subr.bf16.mxu0 %v4697_v37 }
0x1062   :  { %v5644_v13 = vpop.eup %4600  ;;  %4610 = vpow2.f32 %v2649_v26  ;;  %v2617_v23 = vsub.f32 %v5575_v28, %v2595_v9  ;;  %2669 = vadd.xlane.f32.xlu1 %v2668_v6  ;;  %2666 = vadd.xlane.f32.xlu0 %v2665_v24 }
0x1063   :  { %v2686_v14 = vsel %vm845_vm4, %v5644_v13, 0.0  ;;  %v2836_v55 = vpop.permute.xlu1 %2835 }
0x1064   :  { %v5647_v31 = vpop.eup %4602  ;;  %v2645_v41 = vmul.f32 1.442695, %v2617_v23 }
0x1065   :  { %v2742_v12 = vpop.permute.xlu0 %2741  ;;  %v2683_v1 = vsel %vm845_vm4, %v5647_v31, 0.0 }
0x1066   :  { %v5653_v32 = vpop.eup %4604  ;;  %4612 = vpow2.f32 %v2645_v41  ;;  %2687 = vadd.xlane.f32.xlu1 %v2686_v14  ;;  %2684 = vadd.xlane.f32.xlu0 %v2683_v1 }
0x1067   :  { %4226 = vmatpush3.bf16.msra.mxu1 %v2742_v12  ;;  %v2680_v28 = vsel %vm845_vm4, %v5653_v32, 0.0  ;;  %v2883_v61 = vpop.permute.xlu1 %2882 }
0x1068   :  { %v5655_v42 = vpop.eup %4606  ;;  %4237 = vmatprep.subr.bf16.mxu1 %v4697_v37 }
0x1069   :  { %v2677_v38 = vsel %vm845_vm4, %v5655_v42, 0.0  ;;  %v2930_v8 = vpop.permute.xlu0 %2929 }
0x106a   :  { %v5662_v51 = vpop.eup %4608  ;;  %2681 = vadd.xlane.f32.xlu1 %v2680_v28  ;;  %2678 = vadd.xlane.f32.xlu0 %v2677_v38 }
0x106b   :  { %v2698_v50 = vsel %vm845_vm4, %v5662_v51, 0.0 }
0x106c   :  { %v5664_v15 = vpop.eup %4610 }
0x106d   :  { %v2695_v19 = vsel %vm845_vm4, %v5664_v15, 0.0 }
0x106e   :  { %2699 = vadd.xlane.f32.xlu1 %v2698_v50  ;;  %2696 = vadd.xlane.f32.xlu0 %v2695_v19 }
0x1070   :  { %v5670_v3 = vpop.eup %4612 }
0x1071   :  { %v2689_v5 = vsel %vm845_vm4, %v5670_v3, 0.0 }
0x1072   :  { %2690 = vadd.xlane.f32.xlu0 %v2689_v5 }
0x1088   :  { %3023 = vrot.lane.b32.xlu0 %v5462_v39, %s4703_s19 }
0x1098   :  { %v2598_v7 = vpop.xlane.xlu1 %2597 }
0x1099   :  { %v2618_v57 = vsub.f32 %v5579_v25, %v2598_v7 }
0x109a   :  { %v2655_v46 = vpop.xlane.xlu0 %2654 }
0x109b   :  { %v2647_v16 = vmul.f32 1.442695, %v2618_v57 }
0x109c   :  { %v2977_v18 = vpop.permute.xlu1 %2976 }
0x109d   :  { %4614 = vpow2.f32 %v2647_v16 }
0x109e   :  { %4616 = vrcp.f32 %v2655_v46 }
0x10a7   :  { %v5677_v17 = vpop.eup %4614 }
0x10a8   :  { %v2692_v10 = vsel %vm845_vm4, %v5677_v17, 0.0  ;;  %v4617_v43 = vpop.eup %4616 }
0x10a9   :  { %2693 = vadd.xlane.f32.xlu1 %v2692_v10  ;;  %v2717_v25 = vmul.f32 %v4617_v43, %v5594_v54 }
0x10ba   :  { %3070 = vrot.lane.b32.xlu1 %v5471_v11, %s4703_s19 }
0x10cd   :  { %v2658_v39 = vpop.xlane.xlu1 %2657 }
0x10ce   :  { %4618 = vrcp.f32 %v2658_v39 }
0x10d8   :  { %v4619_v36 = vpop.eup %4618 }
0x10d9   :  { %v2718_v29 = vmul.f32 %v4619_v36, %v5603_v34 }
0x10db   :  { %v2733_v48 = vpack.c.bf16 %v2718_v29, %v2717_v25 }
0x10dd   :  { %4228 = vmatmul.mubr.msk.bf16.vlgmr.msra.gmra.mrb[72].mxu1 %vm845_vm4, %v2733_v48 }
0x10de   :  { %4238 = vmatpush3.bf16.msra.mxu1 %v2836_v55  ;;  %4239 = vmatprep.mubr.msk.bf16.mxu1 %vm4700_vm2, %v4697_v37 }
0x10df   :  { %4249 = vmatprep.subr.bf16.mxu1 %v4697_v37 }
0x10e3   :  { %v2661_v11 = vpop.xlane.xlu0 %2660 }
0x10e4   :  { %4620 = vrcp.f32 %v2661_v11 }
0x10e7   :  { %v2664_v4 = vpop.xlane.xlu1 %2663 }
0x10e8   :  { %4622 = vrcp.f32 %v2664_v4 }
0x10eb   :  { %v2676_v62 = vpop.xlane.xlu1 %2675  ;;  %v2673_v56 = vpop.xlane.xlu0 %2672 }
0x10ec   :  { %4624 = vrcp.f32 %v2676_v62 }
0x10ed   :  { %4626 = vrcp.f32 %v2673_v56 }
0x10ee   :  { %v4621_v34 = vpop.eup %4620 }
0x10ef   :  { %v2670_v54 = vpop.xlane.xlu1 %2669  ;;  %v2667_v59 = vpop.xlane.xlu0 %2666  ;;  %v2719_v60 = vmul.f32 %v4621_v34, %v5613_v35 }
0x10f0   :  { %4628 = vrcp.f32 %v2670_v54 }
0x10f1   :  { %4630 = vrcp.f32 %v2667_v59 }
0x10f2   :  { %v4623_v21 = vpop.eup %4622 }
0x10f3   :  { %v2720_v33 = vmul.f32 %v4623_v21, %v5619_v44  ;;  %v2688_v40 = vpop.xlane.xlu1 %2687  ;;  %v2685_v27 = vpop.xlane.xlu0 %2684 }
0x10f4   :  { %4632 = vrcp.f32 %v2688_v40 }
0x10f5   :  { %4634 = vrcp.f32 %v2685_v27  ;;  %v2734_v49 = vpack.c.bf16 %v2720_v33, %v2719_v60 }
0x10f6   :  { %v4625_v47 = vpop.eup %4624 }
0x10f7   :  { %v4627_v58 = vpop.eup %4626  ;;  %v2682_v53 = vpop.xlane.xlu1 %2681  ;;  %4234 = vmatmul.mubr.msk.bf16.vlgmr.msra.gmra.mrb[52].mxu0 %vm845_vm4, %v2734_v49  ;;  %v2724_v35 = vmul.f32 %v4625_v47, %v5624_v22 }
0x10f8   :  { %v2679_v26 = vpop.xlane.xlu0 %2678  ;;  %4636 = vrcp.f32 %v2682_v53  ;;  %4244 = vmatpush3.bf16.msra.mxu0 %v2883_v61  ;;  %4245 = vmatprep.mubr.msk.bf16.mxu0 %vm4700_vm2, %v4697_v37  ;;  %v2723_v44 = vmul.f32 %v4627_v58, %v5627_v52 }
0x10f9   :  { %4638 = vrcp.f32 %v2679_v26  ;;  %4255 = vmatprep.subr.bf16.mxu0 %v4697_v37 }
0x10fa   :  { %v4629_v9 = vpop.eup %4628  ;;  %v2736_v12 = vpack.c.bf16 %v2724_v35, %v2723_v44 }
0x10fb   :  { %v4631_v6 = vpop.eup %4630  ;;  %v2722_v24 = vmul.f32 %v4629_v9, %v5634_v30  ;;  %v2700_v55 = vpop.xlane.xlu1 %2699  ;;  %v4476_v9 = vld [vmem:[%s5950_s7 + $0x10] sm:$0xff]  }
0x10fc   :  { %v2721_v23 = vmul.f32 %v4631_v6, %v5637_v20  ;;  %v2697_v41 = vpop.xlane.xlu0 %2696  ;;  %4640 = vrcp.f32 %v2700_v55 }
0x10fd   :  { %4642 = vrcp.f32 %v2697_v41  ;;  %v4477_v41 = vld [vmem:[%s5950_s7 + $0x18] sm:$0xff]  }
0x10fe   :  { %v4633_v14 = vpop.eup %4632  ;;  %v2735_v1 = vpack.c.bf16 %v2722_v24, %v2721_v23 }
0x10ff   :  { %v4635_v28 = vpop.eup %4634  ;;  %4246 = vmatmul.mubr.msk.bf16.vlgmr.msra.gmra.mrb[56].mxu0 %vm845_vm4, %v2736_v12  ;;  %v2728_v22 = vmul.f32 %v4633_v14, %v5644_v13 }
0x1100   :  { %4240 = vmatmul.mubr.msk.bf16.vlgmr.msra.gmra.mrb[76].mxu1 %vm845_vm4, %v2735_v1  ;;  %4256 = vmatpush3.bf16.msra.mxu0 %v2977_v18  ;;  %v2727_v52 = vmul.f32 %v4635_v28, %v5647_v31  ;;  %v2691_v20 = vpop.xlane.xlu0 %2690 }
0x1101   :  { %4250 = vmatpush3.bf16.msra.mxu1 %v2930_v8  ;;  %4251 = vmatprep.mubr.msk.bf16.mxu1 %vm4700_vm2, %v4697_v37  ;;  %4644 = vrcp.f32 %v2691_v20 }
0x1102   :  { %v4637_v30 = vpop.eup %4636  ;;  %4257 = vmatprep.mubr.msk.bf16.mxu0 %vm4700_vm2, %v4697_v37  ;;  %4261 = vmatprep.subr.bf16.mxu1 %v4697_v37  ;;  %v2738_v19 = vpack.c.bf16 %v2728_v22, %v2727_v52 }
0x1103   :  { %v4639_v38 = vpop.eup %4638  ;;  %v2726_v50 = vmul.f32 %v4637_v30, %v5653_v32  ;;  %4267 = vmatprep.subr.bf16.mxu0 %v4697_v37 }
0x1104   :  { %v2725_v13 = vmul.f32 %v4639_v38, %v5655_v42  ;;  %v3024_v5 = vpop.permute.xlu0 %3023 }
0x1106   :  { %v2737_v31 = vpack.c.bf16 %v2726_v50, %v2725_v13  ;;  %v4641_v32 = vpop.eup %4640 }
0x1107   :  { %4258 = vmatmul.mubr.msk.bf16.vlgmr.msra.gmra.mrb[60].mxu0 %vm845_vm4, %v2738_v19  ;;  %v4643_v61 = vpop.eup %4642  ;;  %v2732_v7 = vmul.f32 %v4641_v32, %v5662_v51 }
0x1108   :  { %4252 = vmatmul.mubr.msk.bf16.vlgmr.msra.gmra.mrb[80].mxu1 %vm845_vm4, %v2737_v31  ;;  %4269 = vmatprep.mubr.msk.bf16.mxu0 %vm4700_vm2, %v4697_v37  ;;  %v2731_v57 = vmul.f32 %v4643_v61, %v5664_v15 }
0x1109   :  { %4262 = vmatpush3.bf16.msra.mxu1 %v3024_v5  ;;  %4263 = vmatprep.mubr.msk.bf16.mxu1 %vm4700_vm2, %v4697_v37 }
0x110a   :  { %v2740_v10 = vpack.c.bf16 %v2732_v7, %v2731_v57  ;;  %4273 = vmatprep.subr.bf16.mxu1 %v4476_v9 }
0x110b   :  { %v4645_v8 = vpop.eup %4644 }
0x110c   :  { %v2729_v37 = vmul.f32 %v4645_v8, %v5670_v3 }
0x1136   :  { %v2694_v42 = vpop.xlane.xlu1 %2693 }
0x1137   :  { %4646 = vrcp.f32 %v2694_v42 }
0x113a   :  { %v3071_v16 = vpop.permute.xlu1 %3070 }
0x113b   :  { %4268 = vmatpush3.bf16.msra.mxu0 %v3071_v16 }
0x113e   :  { %4270 = vmatmul.mubr.msk.bf16.vlgmr.msra.gmra.mrb[64].mxu0 %vm845_vm4, %v2740_v10 }
0x1141   :  { %v4647_v46 = vpop.eup %4646 }
0x1142   :  { %v2730_v18 = vmul.f32 %v4647_v46, %v5677_v17 }
0x1144   :  { %v2739_v39 = vpack.c.bf16 %v2730_v18, %v2729_v37 }
0x1146   :  { %4264 = vmatmul.mubr.msk.bf16.vlgmr.msra.gmra.mrb[84].mxu1 %vm845_vm4, %v2739_v39 }
0x1147   :  { %4274 = vmatpush3.bf16.msra.mxu1 %v4476_v9 }
0x1148   :  { %4275 = vmatprep.subr.bf16.mxu1 %v4477_v41 }
0x114b   :  { %4276 = vmatpush3.bf16.msra.mxu1 %v4477_v41 }
0x11b0   :  { %v2781_v43 = vpop.f32.mrb[72].mxu1 }
0x11b1   :  { %v4229_v36 = vpop.f32.mrb[73].mxu1 }
0x11b2   :  { %v2784_v25 = vpop.f32.mrb[74].mxu1 }
0x11b3   :  { %v4230_v51 = vpop.f32.mrb[75].mxu1 }
0x11ca   :  { %v2828_v29 = vpop.f32.mrb[52].mxu0 }
0x11cb   :  { %v4235_v15 = vpop.f32.mrb[53].mxu0 }
0x11cc   :  { %v2831_v48 = vpop.f32.mrb[54].mxu0 }
0x11cd   :  { %v4412_v11 = vpack.i.bf16 %v2831_v48, %v2828_v29  ;;  %v4236_v4 = vpop.f32.mrb[55].mxu0 }
0x11cf   :  { %4413 = vrot.lane.b32.xlu0 %v4412_v11, %s4704_s3 }
0x11d2   :  { %v2922_v62 = vpop.f32.mrb[56].mxu0 }
0x11d3   :  { %v2875_v56 = vpop.f32.mrb[76].mxu1  ;;  %v4247_v54 = vpop.f32.mrb[57].mxu0 }
0x11d4   :  { %v4241_v3 = vpop.f32.mrb[77].mxu1  ;;  %v2925_v59 = vpop.f32.mrb[58].mxu0 }
0x11d5   :  { %v2878_v17 = vpop.f32.mrb[78].mxu1  ;;  %v4422_v34 = vpack.i.bf16 %v2925_v59, %v2922_v62  ;;  %v4248_v21 = vpop.f32.mrb[59].mxu0  ;;  %v3874_v59 = vld [vmem:[%s5951_s8 + $0x1] ss:$0 sm:$0xff] }
0x11d6   :  { %v4417_v60 = vpack.i.bf16 %v2878_v17, %v2875_v56  ;;  %v4242_v33 = vpop.f32.mrb[79].mxu1 }
0x11d8   :  { %4418 = vrot.lane.b32.xlu1 %v4417_v60, %s4705_s1 }
0x11da   :  { %v3016_v40 = vpop.f32.mrb[60].mxu0 }
0x11db   :  { %v2969_v27 = vpop.f32.mrb[80].mxu1  ;;  %v4259_v49 = vpop.f32.mrb[61].mxu0 }
0x11dc   :  { %4423 = vrot.lane.b32.xlu1 %v4422_v34, %s4706_s20  ;;  %v4253_v47 = vpop.f32.mrb[81].mxu1  ;;  %v3019_v58 = vpop.f32.mrb[62].mxu0 }
0x11dd   :  { %v2972_v53 = vpop.f32.mrb[82].mxu1  ;;  %v4427_v26 = vpack.i.bf16 %v3019_v58, %v3016_v40  ;;  %v4260_v35 = vpop.f32.mrb[63].mxu0 }
0x11de   :  { %v4254_v44 = vpop.f32.mrb[83].mxu1 }
0x11df   :  { %4428 = vrot.lane.b32.xlu0 %v4427_v26, %s4704_s3 }
0x1211   :  { %v3110_v6 = vpop.f32.mrb[64].mxu0 }
0x1212   :  { %v4271_v24 = vpop.f32.mrb[65].mxu0 }
0x1213   :  { %v3113_v23 = vpop.f32.mrb[66].mxu0 }
0x1214   :  { %v4437_v12 = vpack.i.bf16 %v3113_v23, %v3110_v6  ;;  %v4272_v14 = vpop.f32.mrb[67].mxu0 }
0x1216   :  { %4438 = vrot.lane.b32.xlu1 %v4437_v12, %s4706_s20  ;;  %s4707_s20 = smov [#allocation2]  }
0x1219   :  { %v3063_v1 = vpop.f32.mrb[84].mxu1 }
0x121a   :  { %v4265_v28 = vpop.f32.mrb[85].mxu1 }
0x121b   :  { %v3066_v22 = vpop.f32.mrb[86].mxu1 }
0x121c   :  { %v4432_v52 = vpack.i.bf16 %v3066_v22, %v3063_v1  ;;  %v4266_v30 = vpop.f32.mrb[87].mxu1 }
0x121e   :  { %4433 = vrot.lane.b32.xlu0 %v4432_v52, %s4705_s1 }
0x1241   :  { %v4414_v20 = vpop.permute.xlu0 %4413 }
0x1242   :  { %v4416_v50 = vunpack.i.h.bf16 %v4414_v20  ;;  %v4415_v13 = vunpack.i.l.bf16 %v4414_v20 }
0x1244   :  { %v3142_v55 = vsel %vm447_vm3, %v2784_v25, %v4416_v50  ;;  %v3141_v32 = vsel %vm447_vm3, %v2781_v43, %v4415_v13 }
0x124a   :  { %v4419_v38 = vpop.permute.xlu1 %4418 }
0x124b   :  { %v4421_v19 = vunpack.i.h.bf16 %v4419_v38  ;;  %v4420_v31 = vunpack.i.l.bf16 %v4419_v38 }
0x124d   :  { %v3143_v7 = vsel %vm845_vm4, %v3141_v32, %v4420_v31  ;;  %v3144_v57 = vsel %vm845_vm4, %v3142_v55, %v4421_v19  ;;  %v4478_v31 = vld [vmem:[%s5954_s11 + $0x10] sm:$0xff]  }
0x124e   :  { %v4424_v5 = vpop.permute.xlu1 %4423  ;;  %4281 = vmatprep.subr.bf16.mxu0 %v4478_v31 }
0x124f   :  { %v4426_v61 = vunpack.i.h.bf16 %v4424_v5  ;;  %v4425_v42 = vunpack.i.l.bf16 %v4424_v5  ;;  %v4479_v5 = vld [vmem:[%s5954_s11 + $0x18] sm:$0xff]   ;;  %4282 = vmatpush3.bf16.msra.mxu0 %v4478_v31 }
0x1250   :  { %4283 = vmatprep.subr.bf16.mxu0 %v4479_v5 }
0x1251   :  { %v3145_v16 = vsel %vm1434_vm5, %v3143_v7, %v4425_v42  ;;  %v3146_v10 = vsel %vm1434_vm5, %v3144_v57, %v4426_v61  ;;  %v4429_v46 = vpop.permute.xlu0 %4428 }
0x1252   :  { %v3182_v8 = vpack.c.bf16 %v3146_v10, %v3145_v16  ;;  %v4431_v37 = vunpack.i.h.bf16 %v4429_v46  ;;  %v4430_v18 = vunpack.i.l.bf16 %v4429_v46 }
0x1253   :  { %4284 = vmatpush3.bf16.msra.mxu0 %v4479_v5 }
0x1254   :  { %4277 = vmatprep.mubr.msk.bf16.mxu1 %vm249_vm1, %v3182_v8  ;;  %v3172_v51 = vsel %vm447_vm3, %v2972_v53, %v4431_v37  ;;  %v3171_v29 = vsel %vm447_vm3, %v2969_v27, %v4430_v18 }
0x1288   :  { %v4439_v39 = vpop.permute.xlu1 %4438 }
0x1289   :  { %v4441_v15 = vunpack.i.h.bf16 %v4439_v39  ;;  %v4440_v48 = vunpack.i.l.bf16 %v4439_v39 }
0x1290   :  { %v4434_v36 = vpop.permute.xlu0 %4433 }
0x1291   :  { %v4436_v25 = vunpack.i.h.bf16 %v4434_v36  ;;  %v4435_v43 = vunpack.i.l.bf16 %v4434_v36  ;;  %v3877_v36 = vld [vmem:[%s5952_s9 + $0x1] ss:$0 sm:$0xff] }
0x1293   :  { %v3173_v11 = vsel %vm845_vm4, %v3171_v29, %v4435_v43  ;;  %v3174_v4 = vsel %vm845_vm4, %v3172_v51, %v4436_v25 }
0x1294   :  { %v3175_v62 = vsel %vm1434_vm5, %v3173_v11, %v4440_v48  ;;  %v3176_v56 = vsel %vm1434_vm5, %v3174_v4, %v4441_v15  ;;  %v3878_v48 = vld [vmem:[%s5953_s10 + $0x1] ss:$0 sm:$0xff] }
0x1295   :  { %v3183_v54 = vpack.c.bf16 %v3176_v56, %v3175_v62 }
0x1297   :  { %4278 = vmatmul.mubr.msk.bf16.vlgmr.msra.gmra.mrb[88].mxu1 %vm249_vm1, %v3183_v54 }
0x136a   :  { %v4279_v3 = vpop.f32.mrb[88].mxu1 }
0x136b   :  { %v3236_v17 = vpop.f32.mrb[89].mxu1  ;;  %v3253_v34 = vadd.f32 %v4279_v3, %v5396_v0 }
0x136c   :  { %v3251_v21 = vadd.f32 %v3236_v17, %v5392_v63  ;;  %v4280_v60 = vpop.f32.mrb[90].mxu1 }
0x136d   :  { %v3239_v33 = vpop.f32.mrb[91].mxu1  ;;  %v5757_v49 = vadd.f32 %v3874_v59, %v3253_v34  ;;  %v3254_v47 = vadd.f32 %v4280_v60, %v5402_v45 }
0x136e   :  { %v5754_v40 = vadd.f32 %v3874_v59, %v3251_v21  ;;  %v3252_v27 = vadd.f32 %v3239_v33, %v5398_v2 }
0x136f   :  { %v5766_v63 = vadd.f32 %v3874_v59, %v3254_v47  ;;  %v3277_v26 = vsel %vm249_vm1, %v5757_v49, 0.0  ;;  %v4481_v47 = vld [vmem:[%s5956_s13 + $0x48] sm:$0xff]  }
0x1370   :  { %v5760_v58 = vadd.f32 %v3874_v59, %v3252_v27  ;;  %v3271_v53 = vsel %vm249_vm1, %v5754_v40, 0.0  ;;  %v4480_v27 = vld [vmem:[%s5956_s13 + $0x40] sm:$0xff]  }
0x1371   :  { %3272 = vadd.xlane.f32.xlu0 %v3271_v53  ;;  %v3280_v2 = vsel %vm249_vm1, %v5766_v63, 0.0  ;;  %4289 = vmatprep.subr.bf16.mxu1 %v4480_v27  ;;  %v4482_v53 = vld [vmem:[%s5956_s13 + $0x50] sm:$0xff]  }
0x1372   :  { %v3274_v0 = vsel %vm249_vm1, %v5760_v58, 0.0  ;;  %4290 = vmatpush3.bf16.msra.mxu1 %v4480_v27 }
0x1373   :  { %3275 = vadd.xlane.f32.xlu1 %v3274_v0  ;;  %4291 = vmatprep.subr.bf16.mxu1 %v4481_v47  ;;  %v4483_v0 = vld [vmem:[%s5956_s13 + $0x58] sm:$0xff]  }
0x1375   :  { %3278 = vadd.xlane.f32.xlu0 %v3277_v26  ;;  %v4484_v26 = vld [vmem:[%s5956_s13 + $0x60] sm:$0xff]  }
0x1376   :  { %4292 = vmatpush3.bf16.msra.mxu1 %v4481_v47 }
0x1377   :  { %4293 = vmatprep.subr.bf16.mxu1 %v4482_v53 }
0x1379   :  { %3281 = vadd.xlane.f32.xlu0 %v3280_v2  ;;  %v4485_v2 = vld [vmem:[%s5956_s13 + $0x68] sm:$0xff]  }
0x137a   :  { %4294 = vmatpush3.bf16.msra.mxu1 %v4482_v53 }
0x137b   :  { %4295 = vmatprep.subr.bf16.mxu1 %v4483_v0 }
0x137e   :  { %4296 = vmatpush3.bf16.msra.mxu1 %v4483_v0 }
0x137f   :  { %4297 = vmatprep.subr.bf16.mxu1 %v4484_v26 }
0x1382   :  { %4298 = vmatpush3.bf16.msra.mxu1 %v4484_v26 }
0x1383   :  { %4299 = vmatprep.subr.bf16.mxu1 %v4485_v2 }
0x1386   :  { %4300 = vmatpush3.bf16.msra.mxu1 %v4485_v2 }
0x13fe   :  { %v3273_v45 = vpop.xlane.xlu0 %3272 }
0x13ff   :  { %v3283_v35 = vmul.f32 0.03125, %v3273_v45  ;;  %v4486_v45 = vld [vmem:[%s5956_s13 + $0x70] sm:$0xff]  }
0x1400   :  { %v3276_v44 = vpop.xlane.xlu1 %3275  ;;  %4301 = vmatprep.subr.bf16.mxu1 %v4486_v45 }
0x1401   :  { %v3287_v9 = vsub.f32 %v5754_v40, %v3283_v35  ;;  %v3284_v6 = vmul.f32 0.03125, %v3276_v44  ;;  %4302 = vmatpush3.bf16.msra.mxu1 %v4486_v45  ;;  %v4487_v35 = vld [vmem:[%s5956_s13 + $0x78] sm:$0xff]   ;;  %v3884_v44 = vld [vmem:[%s5955_s12 + $0x1] ss:$0 sm:$0xff] }
0x1402   :  { %v3279_v24 = vpop.xlane.xlu0 %3278  ;;  %4303 = vmatprep.subr.bf16.mxu1 %v4487_v35 }
0x1403   :  { %v3288_v23 = vsub.f32 %v5760_v58, %v3284_v6  ;;  %v3285_v41 = vmul.f32 0.03125, %v3279_v24  ;;  %v3291_v12 = vmul.f32 %v3287_v9, %v3287_v9 }
0x1405   :  { %v3289_v14 = vsub.f32 %v5757_v49, %v3285_v41  ;;  %v3295_v1 = vsel %vm249_vm1, %v3291_v12, 0.0  ;;  %v3292_v28 = vmul.f32 %v3288_v23, %v3288_v23  ;;  %4304 = vmatpush3.bf16.msra.mxu1 %v4487_v35 }
0x1406   :  { %3296 = vadd.xlane.f32.xlu0 %v3295_v1  ;;  %v3282_v22 = vpop.xlane.xlu0 %3281 }
0x1407   :  { %v3286_v52 = vmul.f32 0.03125, %v3282_v22  ;;  %v3298_v30 = vsel %vm249_vm1, %v3292_v28, 0.0  ;;  %v3293_v20 = vmul.f32 %v3289_v14, %v3289_v14 }
0x1408   :  { %3299 = vadd.xlane.f32.xlu1 %v3298_v30 }
0x1409   :  { %v3290_v38 = vsub.f32 %v5766_v63, %v3286_v52  ;;  %v3301_v50 = vsel %vm249_vm1, %v3293_v20, 0.0 }
0x140a   :  { %3302 = vadd.xlane.f32.xlu0 %v3301_v50 }
0x140b   :  { %v3294_v13 = vmul.f32 %v3290_v38, %v3290_v38 }
0x140d   :  { %v3304_v19 = vsel %vm249_vm1, %v3294_v13, 0.0 }
0x140e   :  { %3305 = vadd.xlane.f32.xlu1 %v3304_v19 }
0x1493   :  { %v3297_v55 = vpop.xlane.xlu0 %3296 }
0x1494   :  { %v3307_v32 = vmul.f32 0.03125, %v3297_v55 }
0x1495   :  { %v3300_v61 = vpop.xlane.xlu1 %3299 }
0x1496   :  { %v3311_v42 = vadd.f32 1e-06, %v3307_v32  ;;  %v3308_v7 = vmul.f32 0.03125, %v3300_v61 }
0x1497   :  { %v3303_v57 = vpop.xlane.xlu0 %3302 }
0x1498   :  { %4648 = vrsqrt.f32 %v3311_v42  ;;  %v3312_v16 = vadd.f32 1e-06, %v3308_v7  ;;  %v3309_v10 = vmul.f32 0.03125, %v3303_v57 }
0x149a   :  { %4650 = vrsqrt.f32 %v3312_v16  ;;  %v3313_v8 = vadd.f32 1e-06, %v3309_v10 }
0x149b   :  { %v3306_v46 = vpop.xlane.xlu1 %3305 }
0x149c   :  { %4652 = vrsqrt.f32 %v3313_v8  ;;  %v3310_v37 = vmul.f32 0.03125, %v3306_v46 }
0x149e   :  { %v3314_v18 = vadd.f32 1e-06, %v3310_v37 }
0x14a0   :  { %4654 = vrsqrt.f32 %v3314_v18 }
0x14a2   :  { %v4649_v39 = vpop.eup %4648 }
0x14a3   :  { %v3319_v25 = vmul.f32 %v4649_v39, %v3287_v9 }
0x14a4   :  { %v4651_v43 = vpop.eup %4650 }
0x14a5   :  { %v3320_v51 = vmul.f32 %v4651_v43, %v3288_v23  ;;  %v3329_v29 = vmul.f32 %v3877_v36, %v3319_v25 }
0x14a6   :  { %v4653_v15 = vpop.eup %4652 }
0x14a7   :  { %v3321_v11 = vmul.f32 %v4653_v15, %v3289_v14  ;;  %v3330_v4 = vmul.f32 %v3877_v36, %v3320_v51  ;;  %v3339_v62 = vadd.f32 %v3878_v48, %v3329_v29 }
0x14a9   :  { %v3340_v56 = vadd.f32 %v3878_v48, %v3330_v4  ;;  %v3331_v3 = vmul.f32 %v3877_v36, %v3321_v11 }
0x14aa   :  { %v4655_v54 = vpop.eup %4654 }
0x14ab   :  { %v3322_v59 = vmul.f32 %v4655_v54, %v3290_v38  ;;  %v3348_v17 = vpack.c.bf16 %v3340_v56, %v3339_v62  ;;  %v3341_v21 = vadd.f32 %v3878_v48, %v3331_v3 }
0x14ad   :  { %v3332_v34 = vmul.f32 %v3877_v36, %v3322_v59  ;;  %4285 = vmatprep.mubr.msk.bf16.mxu0 %vm249_vm1, %v3348_v17 }
0x14af   :  { %v3342_v60 = vadd.f32 %v3878_v48, %v3332_v34 }
0x14b1   :  { %v3349_v33 = vpack.c.bf16 %v3342_v60, %v3341_v21 }
0x14b3   :  { %4286 = vmatmul.mubr.msk.bf16.vlgmr.msra.gmra.mrb[68].mxu0 %vm249_vm1, %v3349_v33 }
0x1586   :  { %v4287_v9 = vpop.f32.mrb[68].mxu0 }
0x1587   :  { %v5821_v6 = vadd.f32 %v4287_v9, %v3884_v44  ;;  %v3410_v24 = vpop.f32.mrb[69].mxu0 }
0x1588   :  { %v5823_v23 = vadd.f32 %v3884_v44, %v3410_v24  ;;  %v4288_v41 = vpop.f32.mrb[70].mxu0 }
0x1589   :  { %v3431_v12 = vmul.f32 0.70710677, %v5821_v6  ;;  %v5826_v14 = vadd.f32 %v4288_v41, %v3884_v44  ;;  %v3413_v1 = vpop.f32.mrb[71].mxu0 }
0x158a   :  { %v3429_v28 = vmul.f32 0.70710677, %v5823_v23  ;;  %v5829_v22 = vadd.f32 %v3884_v44, %v3413_v1 }
0x158b   :  { %v5831_v52 = vclamps-f32 %v3431_v12, 3.832507  ;;  %v3432_v30 = vmul.f32 0.70710677, %v5826_v14 }
0x158c   :  { %v5834_v20 = vclamps-f32 %v3429_v28, 3.832507  ;;  %v3430_v38 = vmul.f32 0.70710677, %v5829_v22 }
0x158d   :  { %v5839_v50 = vmul.f32 %v5831_v52, %v5831_v52  ;;  %v5841_v13 = vclamps-f32 %v3432_v30, 3.832507 }
0x158e   :  { %v5845_v19 = vmul.f32 %v5834_v20, %v5834_v20  ;;  %v5847_v31 = vclamps-f32 %v3430_v38, 3.832507 }
0x158f   :  { %v3447_v5 = vmul.f32 -2.7261424e-10, %v5839_v50  ;;  %v3495_v55 = vmul.f32 -1.45660715e-05, %v5839_v50  ;;  %v5853_v32 = vmul.f32 %v5841_v13, %v5841_v13 }
0x1590   :  { %v3445_v61 = vmul.f32 -2.7261424e-10, %v5845_v19  ;;  %v3493_v42 = vmul.f32 -1.45660715e-05, %v5845_v19  ;;  %v5859_v7 = vmul.f32 %v5847_v31, %v5847_v31 }
0x1591   :  { %v3451_v57 = vadd.f32 2.7706815e-08, %v3447_v5  ;;  %v3499_v16 = vadd.f32 -0.00021337405, %v3495_v55  ;;  %v3448_v10 = vmul.f32 -2.7261424e-10, %v5853_v32 }
0x1592   :  { %v3449_v8 = vadd.f32 2.7706815e-08, %v3445_v61  ;;  %v3497_v46 = vadd.f32 -0.00021337405, %v3493_v42  ;;  %v3496_v37 = vmul.f32 -1.45660715e-05, %v5853_v32 }
0x1593   :  { %v3455_v18 = vmul.f32 %v3451_v57, %v5839_v50  ;;  %v3503_v39 = vmul.f32 %v3499_v16, %v5839_v50  ;;  %v3452_v36 = vadd.f32 2.7706815e-08, %v3448_v10  ;;  %v3446_v25 = vmul.f32 -2.7261424e-10, %v5859_v7 }
0x1594   :  { %v3453_v43 = vmul.f32 %v3449_v8, %v5845_v19  ;;  %v3501_v51 = vmul.f32 %v3497_v46, %v5845_v19  ;;  %v3500_v29 = vadd.f32 -0.00021337405, %v3496_v37  ;;  %v3494_v15 = vmul.f32 -1.45660715e-05, %v5859_v7 }
0x1595   :  { %v3459_v48 = vadd.f32 -2.101024e-06, %v3455_v18  ;;  %v3507_v11 = vadd.f32 -0.001682827, %v3503_v39  ;;  %v3456_v4 = vmul.f32 %v3452_v36, %v5853_v32  ;;  %v3450_v62 = vadd.f32 2.7706815e-08, %v3446_v25 }
0x1596   :  { %v3457_v56 = vadd.f32 -2.101024e-06, %v3453_v43  ;;  %v3505_v54 = vadd.f32 -0.001682827, %v3501_v51  ;;  %v3504_v3 = vmul.f32 %v3500_v29, %v5853_v32  ;;  %v3498_v59 = vadd.f32 -0.00021337405, %v3494_v15 }
0x1597   :  { %v3463_v17 = vmul.f32 %v3459_v48, %v5839_v50  ;;  %v3511_v34 = vmul.f32 %v3507_v11, %v5839_v50  ;;  %v3460_v21 = vadd.f32 -2.101024e-06, %v3456_v4  ;;  %v3454_v60 = vmul.f32 %v3450_v62, %v5859_v7 }
0x1598   :  { %v3461_v33 = vmul.f32 %v3457_v56, %v5845_v19  ;;  %v3509_v27 = vmul.f32 %v3505_v54, %v5845_v19  ;;  %v3508_v47 = vadd.f32 -0.001682827, %v3504_v3  ;;  %v3502_v53 = vmul.f32 %v3498_v59, %v5859_v7 }
0x1599   :  { %v3467_v0 = vadd.f32 -5.6925062e-05, %v3463_v17  ;;  %v3515_v26 = vadd.f32 -0.0073733293, %v3511_v34  ;;  %v3464_v2 = vmul.f32 %v3460_v21, %v5853_v32  ;;  %v3458_v45 = vadd.f32 -2.101024e-06, %v3454_v60 }
0x159a   :  { %v3465_v35 = vadd.f32 -5.6925062e-05, %v3461_v33  ;;  %v3513_v44 = vadd.f32 -0.0073733293, %v3509_v27  ;;  %v3512_v9 = vmul.f32 %v3508_v47, %v5853_v32  ;;  %v3506_v24 = vadd.f32 -0.001682827, %v3502_v53 }
0x159b   :  { %v3471_v41 = vmul.f32 %v3467_v0, %v5839_v50  ;;  %v3519_v12 = vmul.f32 %v3515_v26, %v5839_v50  ;;  %v3468_v1 = vadd.f32 -5.6925062e-05, %v3464_v2  ;;  %v3462_v28 = vmul.f32 %v3458_v45, %v5859_v7 }
0x159c   :  { %v3469_v30 = vmul.f32 %v3465_v35, %v5845_v19  ;;  %v3517_v38 = vmul.f32 %v3513_v44, %v5845_v19  ;;  %v3516_v5 = vadd.f32 -0.0073733293, %v3512_v9  ;;  %v3510_v55 = vmul.f32 %v3506_v24, %v5859_v7 }
0x159d   :  { %v3475_v61 = vadd.f32 -0.00073499064, %v3471_v41  ;;  %v3523_v42 = vadd.f32 -0.014264739, %v3519_v12  ;;  %v3472_v57 = vmul.f32 %v3468_v1, %v5853_v32  ;;  %v3466_v16 = vadd.f32 -5.6925062e-05, %v3462_v28 }
0x159e   :  { %v3473_v10 = vadd.f32 -0.00073499064, %v3469_v30  ;;  %v3521_v8 = vadd.f32 -0.014264739, %v3517_v38  ;;  %v3520_v46 = vmul.f32 %v3516_v5, %v5853_v32  ;;  %v3514_v37 = vadd.f32 -0.0073733293, %v3510_v55 }
0x159f   :  { %v3479_v18 = vmul.f32 %v3475_v61, %v5839_v50  ;;  %4656 = vrcp.f32 %v3523_v42  ;;  %v3476_v39 = vadd.f32 -0.00073499064, %v3472_v57  ;;  %v3470_v36 = vmul.f32 %v3466_v16, %v5859_v7 }
0x15a0   :  { %v3477_v25 = vmul.f32 %v3473_v10, %v5845_v19  ;;  %4658 = vrcp.f32 %v3521_v8  ;;  %v3524_v43 = vadd.f32 -0.014264739, %v3520_v46  ;;  %v3518_v51 = vmul.f32 %v3514_v37, %v5859_v7 }
0x15a1   :  { %v3483_v29 = vadd.f32 -0.0029546, %v3479_v18  ;;  %v3480_v15 = vmul.f32 %v3476_v39, %v5853_v32  ;;  %v3474_v48 = vadd.f32 -0.00073499064, %v3470_v36  ;;  %v3425_v12 = vmul.f32 0.5, %v5823_v23 }
0x15a2   :  { %v3481_v11 = vadd.f32 -0.0029546, %v3477_v25  ;;  %4660 = vrcp.f32 %v3524_v43  ;;  %v3522_v4 = vadd.f32 -0.014264739, %v3518_v51  ;;  %v3426_v28 = vmul.f32 0.5, %v5829_v22 }
0x15a3   :  { %v3487_v62 = vmul.f32 %v3483_v29, %v5839_v50  ;;  %v3484_v56 = vadd.f32 -0.0029546, %v3480_v15  ;;  %v3478_v54 = vmul.f32 %v3474_v48, %v5859_v7 }
0x15a4   :  { %v3485_v3 = vmul.f32 %v3481_v11, %v5845_v19  ;;  %4662 = vrcp.f32 %v3522_v4 }
0x15a5   :  { %v3491_v59 = vadd.f32 -0.016096033, %v3487_v62  ;;  %v3488_v17 = vmul.f32 %v3484_v56, %v5853_v32  ;;  %v3482_v34 = vadd.f32 -0.0029546, %v3478_v54 }
0x15a6   :  { %v3489_v21 = vadd.f32 -0.016096033, %v3485_v3 }
0x15a7   :  { %v3527_v60 = vmul.f32 %v5831_v52, %v3491_v59  ;;  %v3492_v33 = vadd.f32 -0.016096033, %v3488_v17  ;;  %v3486_v27 = vmul.f32 %v3482_v34, %v5859_v7  ;;  %v3427_v52 = vmul.f32 0.5, %v5821_v6  ;;  %v3918_v6 = vld [vmem:[%s5957_s14 + $0x1] ss:$0 sm:$0xff] }
0x15a8   :  { %v3525_v47 = vmul.f32 %v5834_v20, %v3489_v21  ;;  %v3428_v7 = vmul.f32 0.5, %v5826_v14 }
0x15a9   :  { %v4657_v53 = vpop.eup %4656  ;;  %v3528_v50 = vmul.f32 %v5841_v13, %v3492_v33  ;;  %v3490_v0 = vadd.f32 -0.016096033, %v3486_v27 }
0x15aa   :  { %v4659_v26 = vpop.eup %4658  ;;  %v3535_v2 = vmul.f32 %v4657_v53, %v3527_v60 }
0x15ab   :  { %v3533_v19 = vmul.f32 %v4659_v26, %v3525_v47  ;;  %v3526_v45 = vmul.f32 %v5847_v31, %v3490_v0 }
0x15ac   :  { %v4661_v35 = vpop.eup %4660  ;;  %v3539_v32 = vadd.f32 1.0, %v3535_v2 }
0x15ad   :  { %v3536_v44 = vmul.f32 %v4661_v35, %v3528_v50  ;;  %v3537_v24 = vadd.f32 1.0, %v3533_v19 }
0x15ae   :  { %v4663_v9 = vpop.eup %4662  ;;  %v3543_v13 = vmul.f32 %v3539_v32, %v3427_v52  ;;  %v3919_v52 = vld [vmem:[%s5958_s15] ss:$0 sm:$0xff]  ;;  %s3760_s15 = sshll.u32 %s4707_s20, 4  ;;  %s3761_s15 = int_to_ptr.vmem [resolvable:$true] %s3760_s15 }
0x15af   :  { %v3540_v41 = vadd.f32 1.0, %v3536_v44  ;;  %v3534_v20 = vmul.f32 %v4663_v9, %v3526_v45  ;;  %v3541_v38 = vmul.f32 %v3537_v24, %v3425_v12  ;;  %p4677_p1 = scmp.lt.s32.totalorder %s3761_s15, %s3761_s15 }
0x15b1   :  { %v3544_v1 = vmul.f32 %v3540_v41, %v3428_v7  ;;  %v3538_v30 = vadd.f32 1.0, %v3534_v20  ;;  %v3920_v41 = vld [vmem:[%s5959_s16] ss:$0 sm:$0xff]  ;;  %s4672_s16 = scalar_lea.vmem %s3761_s15, 512 }
0x15b2   :  { %p4673_p0 = scmp.ne.s32.totalorder %s3761_s15, %s4672_s16  ;;  %p4678_p2 = scmp.lt.s32.totalorder %s4672_s16, %s4672_s16 }
0x15b3   :  { %v3563_v31 = vpack.c.bf16 %v3544_v1, %v3543_v13  ;;  %v3542_v5 = vmul.f32 %v3538_v30, %v3426_v28 }
0x15b4   :  { %p4679_p3 = por %p4678_p2, %p4677_p1 }
0x15b5   :  { %v3562_v55 = vpack.c.bf16 %v3542_v5, %v3541_v38 }
0x15b6   :  { %p4680_p4 = pnand %p4679_p3, %p4673_p0 }
0x15b7   :  { %4305 = vmatprep.mubr.bf16.mxu1 %v3562_v55 }
0x15b8   :  { %4306 = vmatmul.mubr.bf16.vlgmr.msra.gmra.mrb[92].mxu1 %v3563_v31 }
0x168b   :  { %v4307_v61 = vpop.f32.mrb[92].mxu1 }
0x168c   :  { %v3646_v14 = vpop.f32.mrb[93].mxu1  ;;  %v3663_v42 = vadd.f32 %v4307_v61, %v5757_v49 }
0x168d   :  { %v3661_v23 = vadd.f32 %v3646_v14, %v5754_v40  ;;  %v4308_v57 = vpop.f32.mrb[94].mxu1 }
0x168e   :  { %v3649_v16 = vpop.f32.mrb[95].mxu1  ;;  %v3664_v10 = vadd.f32 %v4308_v57, %v5766_v63  ;;  %v3675_v46 = vadd.f32 %v3918_v6, %v3663_v42 }
0x168f   :  { %v3673_v22 = vadd.f32 %v3918_v6, %v3661_v23  ;;  %v3662_v8 = vadd.f32 %v3649_v16, %v5760_v58 }
0x1690   :  { %v3676_v39 = vadd.f32 %v3918_v6, %v3664_v10  ;;  %v3685_v49 = vsel %vm249_vm1, %v3675_v46, 0.0 }
0x1691   :  { %v3674_v37 = vadd.f32 %v3918_v6, %v3662_v8  ;;  %v3679_v18 = vsel %vm249_vm1, %v3673_v22, 0.0 }
0x1692   :  { %3680 = vadd.xlane.f32.xlu0 %v3679_v18  ;;  %v3688_v40 = vsel %vm249_vm1, %v3676_v39, 0.0 }
0x1693   :  { %v3682_v36 = vsel %vm249_vm1, %v3674_v37, 0.0 }
0x1694   :  { %3683 = vadd.xlane.f32.xlu1 %v3682_v36 }
0x1696   :  { %3686 = vadd.xlane.f32.xlu0 %v3685_v49 }
0x1698   :  { %3689 = vadd.xlane.f32.xlu1 %v3688_v40 }
0x171f   :  { %v3681_v25 = vpop.xlane.xlu0 %3680 }
0x1720   :  { %v3691_v43 = vmul.f32 0.03125, %v3681_v25 }
0x1721   :  { %v3684_v63 = vpop.xlane.xlu1 %3683 }
0x1722   :  { %v3695_v51 = vsub.f32 %v3673_v22, %v3691_v43  ;;  %v3692_v58 = vmul.f32 0.03125, %v3684_v63 }
0x1723   :  { %v3687_v29 = vpop.xlane.xlu0 %3686 }
0x1724   :  { %v3696_v15 = vsub.f32 %v3674_v37, %v3692_v58  ;;  %v3693_v48 = vmul.f32 0.03125, %v3687_v29  ;;  %v3699_v11 = vmul.f32 %v3695_v51, %v3695_v51 }
0x1725   :  { %v3690_v4 = vpop.xlane.xlu1 %3689 }
0x1726   :  { %v3697_v62 = vsub.f32 %v3675_v46, %v3693_v48  ;;  %v3694_v56 = vmul.f32 0.03125, %v3690_v4  ;;  %v3703_v54 = vsel %vm249_vm1, %v3699_v11, 0.0  ;;  %v3700_v3 = vmul.f32 %v3696_v15, %v3696_v15 }
0x1727   :  { %3704 = vadd.xlane.f32.xlu0 %v3703_v54 }
0x1728   :  { %v3698_v59 = vsub.f32 %v3676_v39, %v3694_v56  ;;  %v3706_v17 = vsel %vm249_vm1, %v3700_v3, 0.0  ;;  %v3701_v34 = vmul.f32 %v3697_v62, %v3697_v62 }
0x1729   :  { %3707 = vadd.xlane.f32.xlu1 %v3706_v17 }
0x172a   :  { %v3709_v21 = vsel %vm249_vm1, %v3701_v34, 0.0  ;;  %v3702_v60 = vmul.f32 %v3698_v59, %v3698_v59 }
0x172b   :  { %3710 = vadd.xlane.f32.xlu0 %v3709_v21 }
0x172c   :  { %v3712_v33 = vsel %vm249_vm1, %v3702_v60, 0.0 }
0x172d   :  { %3713 = vadd.xlane.f32.xlu1 %v3712_v33 }
0x17b4   :  { %v3705_v27 = vpop.xlane.xlu0 %3704 }
0x17b5   :  { %v3715_v47 = vmul.f32 0.03125, %v3705_v27 }
0x17b6   :  { %v3708_v53 = vpop.xlane.xlu1 %3707 }
0x17b7   :  { %v3719_v50 = vadd.f32 1e-06, %v3715_v47  ;;  %v3716_v0 = vmul.f32 0.03125, %v3708_v53 }
0x17b8   :  { %v3711_v26 = vpop.xlane.xlu0 %3710 }
0x17b9   :  { %4664 = vrsqrt.f32 %v3719_v50  ;;  %v3720_v2 = vadd.f32 1e-06, %v3716_v0  ;;  %v3717_v19 = vmul.f32 0.03125, %v3711_v26 }
0x17ba   :  { %v3714_v45 = vpop.xlane.xlu1 %3713 }
0x17bb   :  { %4666 = vrsqrt.f32 %v3720_v2  ;;  %v3721_v35 = vadd.f32 1e-06, %v3717_v19  ;;  %v3718_v32 = vmul.f32 0.03125, %v3714_v45 }
0x17bd   :  { %4668 = vrsqrt.f32 %v3721_v35  ;;  %v3722_v44 = vadd.f32 1e-06, %v3718_v32 }
0x17bf   :  { %4670 = vrsqrt.f32 %v3722_v44 }
0x17c3   :  { %v4665_v9 = vpop.eup %4664 }
0x17c4   :  { %v3727_v24 = vmul.f32 %v4665_v9, %v3695_v51 }
0x17c5   :  { %v4667_v7 = vpop.eup %4666 }
0x17c6   :  { %v3737_v20 = vmul.f32 %v3919_v52, %v3727_v24  ;;  %v3728_v12 = vmul.f32 %v4667_v7, %v3696_v15 }
0x17c7   :  { %v4669_v13 = vpop.eup %4668 }
0x17c8   :  { %v3747_v1 = vadd.f32 %v3920_v41, %v3737_v20  ;;  %v3738_v28 = vmul.f32 %v3919_v52, %v3728_v12  ;;  %v3729_v30 = vmul.f32 %v4669_v13, %v3697_v62 }
0x17c9   :  { %v4671_v38 = vpop.eup %4670 }
0x17ca   :  { %3751 = vst.msk [vmem:[#allocation2] sm:$0xff] %vm249_vm1, %v3747_v1  ;;  %v3748_v31 = vadd.f32 %v3920_v41, %v3738_v28  ;;  %v3739_v5 = vmul.f32 %v3919_v52, %v3729_v30  ;;  %v3730_v55 = vmul.f32 %v4671_v38, %v3698_v59 }
0x17cc   :  { %3752 = vst.msk [vmem:[#allocation2 + $0x8] sm:$0xff] %vm249_vm1, %v3748_v31  ;;  %v3749_v61 = vadd.f32 %v3920_v41, %v3739_v5  ;;  %v3740_v6 = vmul.f32 %v3919_v52, %v3730_v55 }
0x17ce   :  { %3753 = vst.msk [vmem:[#allocation2 + $0x10] sm:$0xff] %vm249_vm1, %v3749_v61  ;;  %v3750_v14 = vadd.f32 %v3920_v41, %v3740_v6 }
0x17d0   :  { %3754 = vst.msk [vmem:[#allocation2 + $0x18] sm:$0xff] %vm249_vm1, %v3750_v14 }
0x17d1   :  { %4683 = shalt.err (!%p4680_p4)
}
0x17d2   :  { %s4684_s9 = scalar_lea.hbm %s5960_s17, 512 }
0x17d3   :  { %p4685_p5 = scmp.ne.s32.totalorder %s5960_s17, %s4684_s9  ;;  %p4688_p6 = scmp.lt.u32.totalorder %s4684_s9, %s5960_s17 }
0x17d5   :  { %p4690_p7 = pnand %p4688_p6, %p4685_p5 }
0x17d7   :  { %4693 = shalt.err (!%p4690_p7)
}
0x17d8   :  { %s4708_s22 = smov 128  }
0x17d9   :  { %3766 = dma.vmem_to_hbm [thread:$0]  %s3761_s15, 512, %s5960_s17, [#allocation3], %s4708_s22, %s4708_s22, %s4704_s3  }
0x17da   :  { %4694 = dma.done.wait [#allocation3], 512  }
0x17db   :  { %4695 = vsyncadd [#allocation3], 4294966784 }
0x17dc   :  { %3770 = vsyncpa [#allocation3], 1 }

</bundles_post_ra>
